<compile_context>
chip_gen: v7x
topology: tpu7x:2x2x1
jax: 0.10.0
libtpu: 0.0.40
codegen_flags: <defaults>
</compile_context>

<pallas_src>
import jax
import jax.numpy as jnp
from jax.experimental import pallas as pl
from jax.experimental.pallas import tpu as pltpu

B = 2
H = W = 28              # input spatial (required by fc1 = 64*13*13)
CIN = 3
COUT = 64
KH = KW = 3
CH = CW = H - KH + 1    # 26: spatial after valid 3x3 conv
PH = PW = 13            # spatial after 2x2 max-pool
KTAPS = KH * KW * CIN   # 27 contracted conv taps
KPAD = 32               # taps padded for MXU contraction dim
GRP = 176               # pooled positions 169 padded to a multiple of 16
FEAT = COUT * PH * PW   # 10816 (PyTorch fc1 input size)
FEATP = GRP * COUT      # 11264 padded flattened features
HID = 32
NCLS = 10


# ----------------------------- kernels --------------------------------------

def conv_pool_kernel(p_ref, w_ref, b_ref, o_ref):
    """im2col conv (MXU) + bias + ReLU + 2x2 max-pool for one sample.

    p_ref: (1, 4*GRP, KPAD) bf16  im2col patches; row s*GRP + p holds the 27
           conv taps (zero-padded to 32) of pooled position p = ph*13+pw for
           pool-parity slot s = 2*r + c; rows 169..175 of each slot are zero.
    w_ref: (KPAD, COUT) bf16      conv weights, (kh,kw,cin)-flattened, padded.
    b_ref: (1, COUT) f32
    o_ref: (1, GRP, COUT) bf16    pooled activations (position-major, padded).
    """
    # Single MXU matmul for all 4 pool parities at once: (704,32)@(32,64).
    conv = jnp.dot(p_ref[0], w_ref[...], preferred_element_type=jnp.float32)
    # 2x2 max-pool = elementwise max over the 4 parity groups (sublane-aligned
    # static slices: 0/176/352/528 are all multiples of 8).
    pooled = jnp.maximum(
        jnp.maximum(conv[0 * GRP:1 * GRP], conv[1 * GRP:2 * GRP]),
        jnp.maximum(conv[2 * GRP:3 * GRP], conv[3 * GRP:4 * GRP]))
    # ReLU(max(h) + b) == MaxPool(ReLU(h + b)): bias is shared, ReLU monotone.
    pooled = jnp.maximum(pooled + b_ref[...], 0.0)
    o_ref[0] = pooled.astype(o_ref.dtype)


def mlp_head_kernel(f_ref, w1_ref, b1_ref, w2_ref, b2_ref, o_ref):
    """fc1 + ReLU + fc2 + sigmoid on the (padded) flattened pooled features."""
    h = jnp.dot(f_ref[...], w1_ref[...], preferred_element_type=jnp.float32)
    h = jnp.maximum(h + b1_ref[...], 0.0)
    logits = jnp.dot(h.astype(jnp.bfloat16), w2_ref[...],
                     preferred_element_type=jnp.float32) + b2_ref[...]
    o_ref[...] = (1.0 / (1.0 + jnp.exp(-logits))).astype(o_ref.dtype)


# ----------------------------- wrapper ---------------------------------------

def cnn_classify_forward(x_nchw, params):
    conv_w, conv_b, fc1_w, fc1_b, fc2_w, fc2_b = params   # PyTorch-shaped params
    b = x_nchw.shape[0]

    # ---- im2col + pool-parity regroup (cheap XLA glue on a ~180 KB tensor) ---
    x = jnp.transpose(x_nchw, (0, 2, 3, 1)).astype(jnp.float32)        # (B,28,28,3)
    taps = jnp.stack([x[:, kh:kh + CH, kw:kw + CW, :]
                      for kh in range(KH) for kw in range(KW)], axis=3)  # (B,26,26,9,3)
    taps = taps.reshape(b, CH, CW, KTAPS)                              # (B,26,26,27)
    slots = jnp.stack([taps[:, r::2, s::2, :] for r in (0, 1) for s in (0, 1)],
                      axis=1)                                          # (B,4,13,13,27)
    slots = slots.reshape(b, 4, PH * PW, KTAPS)
    slots = jnp.pad(slots, ((0, 0), (0, 0), (0, GRP - PH * PW), (0, KPAD - KTAPS)))
    patches = slots.reshape(b, 4 * GRP, KPAD).astype(jnp.bfloat16)     # (B,704,32)

    # ---- parameter repacks (constant-foldable / hoistable for static params) -
    w_conv = jnp.transpose(conv_w, (2, 3, 1, 0)).reshape(KTAPS, COUT)  # (27,64)
    w_conv = jnp.pad(w_conv, ((0, KPAD - KTAPS), (0, 0))).astype(jnp.bfloat16)
    b_conv = conv_b.reshape(1, COUT).astype(jnp.float32)

    # fc1 weight permuted from PyTorch's (C,H,W) flatten to the kernel's
    # position-major (H*W padded, C) flatten; padded rows are zero.
    w1 = jnp.transpose(fc1_w.reshape(HID, COUT, PH * PW), (2, 1, 0))   # (169,64,32)
    w1 = jnp.pad(w1, ((0, GRP - PH * PW), (0, 0), (0, 0)))
    w1 = w1.reshape(FEATP, HID).astype(jnp.bfloat16)                   # (11264,32)
    b1 = fc1_b.reshape(1, HID).astype(jnp.float32)
    w2 = jnp.transpose(fc2_w, (1, 0)).astype(jnp.bfloat16)             # (32,10)
    b2 = fc2_b.reshape(1, NCLS).astype(jnp.float32)

    pooled = pl.pallas_call(
        conv_pool_kernel,
        out_shape=jax.ShapeDtypeStruct((b, GRP, COUT), jnp.bfloat16),
        grid_spec=pltpu.PrefetchScalarGridSpec(
            num_scalar_prefetch=0,
            grid=(b,),
            in_specs=[
                pl.BlockSpec((1, 4 * GRP, KPAD), lambda i: (i, 0, 0)),
                pl.BlockSpec((KPAD, COUT), lambda i: (0, 0)),
                pl.BlockSpec((1, COUT), lambda i: (0, 0)),
            ],
            out_specs=pl.BlockSpec((1, GRP, COUT), lambda i: (i, 0, 0)),
        ),
        compiler_params=pltpu.CompilerParams(dimension_semantics=("parallel",)),
    )(patches, w_conv, b_conv)

    # TODO(synk): nn.Dropout(0.3) is treated as identity (inference/eval mode);
    # training-mode dropout would use pltpu.prng_seed / pltpu.prng_random_bits.

    # Free bitcast reshape in XLA (row-major contiguous); matches w1's layout.
    feats = pooled.reshape(b, FEATP)

    out = pl.pallas_call(
        mlp_head_kernel,
        out_shape=jax.ShapeDtypeStruct((b, NCLS), jnp.float32),
        grid_spec=pltpu.PrefetchScalarGridSpec(
            num_scalar_prefetch=0,
            grid=(1,),
            in_specs=[
                pl.BlockSpec((b, FEATP), lambda i: (0, 0)),
                pl.BlockSpec((FEATP, HID), lambda i: (0, 0)),
                pl.BlockSpec((1, HID), lambda i: (0, 0)),
                pl.BlockSpec((HID, NCLS), lambda i: (0, 0)),
                pl.BlockSpec((1, NCLS), lambda i: (0, 0)),
            ],
            out_specs=pl.BlockSpec((b, NCLS), lambda i: (0, 0)),
        ),
    )(feats, w1, b1, w2, b2)
    return out


# ----------------------------- reference (pure JAX) ---------------------------

def reference_forward(x_nchw, params):
    conv_w, conv_b, fc1_w, fc1_b, fc2_w, fc2_b = params
    hp = jax.lax.Precision.HIGHEST
    y = jax.lax.conv_general_dilated(
        x_nchw.astype(jnp.float32), conv_w, window_strides=(1, 1),
        padding="VALID", dimension_numbers=("NCHW", "OIHW", "NCHW"),
        precision=hp)
    y = jnp.maximum(y + conv_b[None, :, None, None], 0.0)
    y = jax.lax.reduce_window(y, -jnp.inf, jax.lax.max,
                              (1, 1, 2, 2), (1, 1, 2, 2), "VALID")
    f = y.reshape(y.shape[0], -1)                       # PyTorch flatten (C,H,W)
    h = jnp.maximum(jnp.dot(f, fc1_w.T, precision=hp) + fc1_b, 0.0)
    logits = jnp.dot(h, fc2_w.T, precision=hp) + fc2_b
    return 1.0 / (1.0 + jnp.exp(-logits))


# ----------------------------- params & main ----------------------------------

def init_params(key):
    ks = jax.random.split(key, 6)
    conv_w = jax.random.normal(ks[0], (COUT, CIN, KH, KW), jnp.float32) * (1.0 / (CIN * KH * KW) ** 0.5)
    conv_b = jax.random.normal(ks[1], (COUT,), jnp.float32) * 0.05
    fc1_w = jax.random.normal(ks[2], (HID, FEAT), jnp.float32) * (1.0 / FEAT ** 0.5)
    fc1_b = jax.random.normal(ks[3], (HID,), jnp.float32) * 0.05
    fc2_w = jax.random.normal(ks[4], (NCLS, HID), jnp.float32) * (1.0 / HID ** 0.5)
    fc2_b = jax.random.normal(ks[5], (NCLS,), jnp.float32) * 0.05
    return conv_w, conv_b, fc1_w, fc1_b, fc2_w, fc2_b


if __name__ == "__main__":
    key = jax.random.PRNGKey(0)
    kx, kp = jax.random.split(key)
    x = jax.random.normal(kx, (B, CIN, H, W), jnp.float32)
    params = init_params(kp)

    out = jax.jit(cnn_classify_forward)(x, params)
    out = jax.block_until_ready(out)

    ref = jax.block_until_ready(reference_forward(x, params))
    assert out.shape == (B, NCLS), out.shape
    max_err = float(jnp.max(jnp.abs(out - ref)))
    assert max_err < 1e-2, f"mismatch vs reference: {max_err}"

    print("KERNEL_OK")
</pallas_src>

<mosaic_0001>
module attributes {stable_mosaic.version = 11 : i64} {
  func.func @conv_pool_kernel(%arg0: i32, %arg1: memref<1x704x32xbf16, #tpu.memory_space<vmem>>, %arg2: memref<32x64xbf16, #tpu.memory_space<vmem>>, %arg3: memref<1x64xf32, #tpu.memory_space<vmem>>, %arg4: memref<1x176x64xbf16, #tpu.memory_space<vmem>>) attributes {dimension_semantics = [#tpu.dimension_semantics<parallel>], iteration_bounds = array<i64: 2>, scalar_prefetch = 0 : i64, scratch_operands = 0 : i64, tpu.core_type = #tpu.core_type<tc>, window_params = [{transform_indices = @transform_0, window_bounds = array<i64: 1, 704, 32>}, {pipeline_mode = #tpu.pipeline_mode<synchronous>, transform_indices = @transform_1, window_bounds = array<i64: 32, 64>}, {pipeline_mode = #tpu.pipeline_mode<synchronous>, transform_indices = @transform_2, window_bounds = array<i64: 1, 64>}, {transform_indices = @transform_3, window_bounds = array<i64: 1, 176, 64>}]} {
    %c0 = arith.constant 0 : index
    %c0_0 = arith.constant 0 : index
    %c0_1 = arith.constant 0 : index
    %0 = vector.load %arg1[%c0, %c0_0, %c0_1] : memref<1x704x32xbf16, #tpu.memory_space<vmem>>, vector<1x704x32xbf16>
    %1 = vector.shape_cast %0 : vector<1x704x32xbf16> to vector<704x32xbf16>
    %c0_2 = arith.constant 0 : index
    %c0_3 = arith.constant 0 : index
    %2 = vector.load %arg2[%c0_2, %c0_3] : memref<32x64xbf16, #tpu.memory_space<vmem>>, vector<32x64xbf16>
    %cst = arith.constant dense<0.000000e+00> : vector<704x64xf32>
    %3 = tpu.matmul %1, %2, %cst {dimension_numbers = #tpu.dot_dimension_numbers<[1], [0], [0], [1], [0, 0, 1, 1], [], []>} : vector<704x32xbf16>, vector<32x64xbf16>, vector<704x64xf32> -> vector<704x64xf32>
    %4 = vector.extract_strided_slice %3 {offsets = [0, 0], sizes = [176, 64], strides = [1, 1]} : vector<704x64xf32> to vector<176x64xf32>
    %5 = vector.extract_strided_slice %3 {offsets = [176, 0], sizes = [176, 64], strides = [1, 1]} : vector<704x64xf32> to vector<176x64xf32>
    %6 = arith.maximumf %4, %5 : vector<176x64xf32>
    %7 = vector.extract_strided_slice %3 {offsets = [352, 0], sizes = [176, 64], strides = [1, 1]} : vector<704x64xf32> to vector<176x64xf32>
    %8 = vector.extract_strided_slice %3 {offsets = [528, 0], sizes = [176, 64], strides = [1, 1]} : vector<704x64xf32> to vector<176x64xf32>
    %9 = arith.maximumf %7, %8 : vector<176x64xf32>
    %10 = arith.maximumf %6, %9 : vector<176x64xf32>
    %c0_4 = arith.constant 0 : index
    %c0_5 = arith.constant 0 : index
    %11 = vector.load %arg3[%c0_4, %c0_5] : memref<1x64xf32, #tpu.memory_space<vmem>>, vector<1x64xf32>
    %12 = vector.broadcast %11 : vector<1x64xf32> to vector<176x64xf32>
    %13 = arith.addf %10, %12 : vector<176x64xf32>
    %cst_6 = arith.constant 0.000000e+00 : f32
    %14 = vector.broadcast %cst_6 : f32 to vector<176x64xf32>
    %15 = arith.maximumf %13, %14 : vector<176x64xf32>
    %16 = arith.truncf %15 : vector<176x64xf32> to vector<176x64xbf16>
    %c0_7 = arith.constant 0 : index
    %c0_8 = arith.constant 0 : index
    %c0_9 = arith.constant 0 : index
    %17 = vector.load %arg4[%c0_7, %c0_8, %c0_9] : memref<1x176x64xbf16, #tpu.memory_space<vmem>>, vector<1x176x64xbf16>
    %18 = vector.shape_cast %17 : vector<1x176x64xbf16> to vector<176x64xbf16>
    %19 = vector.shape_cast %16 : vector<176x64xbf16> to vector<1x176x64xbf16>
    tpu.vector_store %arg4[%c0_7, %c0_8, %c0_9], %19 {strides = array<i32>} : memref<1x176x64xbf16, #tpu.memory_space<vmem>>, vector<1x176x64xbf16>,
    return
  }
  func.func @transform_0(%arg0: i32) -> (i32, i32, i32) {
    %c0_i32 = arith.constant 0 : i32
    %c0_i32_0 = arith.constant 0 : i32
    %c0_i32_1 = arith.constant 0 : i32
    return %arg0, %c0_i32, %c0_i32_0 : i32, i32, i32
  }
  func.func @transform_1(%arg0: i32) -> (i32, i32) {
    %c0_i32 = arith.constant 0 : i32
    %c0_i32_0 = arith.constant 0 : i32
    %c0_i32_1 = arith.constant 0 : i32
    return %c0_i32, %c0_i32_0 : i32, i32
  }
  func.func @transform_2(%arg0: i32) -> (i32, i32) {
    %c0_i32 = arith.constant 0 : i32
    %c0_i32_0 = arith.constant 0 : i32
    %c0_i32_1 = arith.constant 0 : i32
    return %c0_i32, %c0_i32_0 : i32, i32
  }
  func.func @transform_3(%arg0: i32) -> (i32, i32, i32) {
    %c0_i32 = arith.constant 0 : i32
    %c0_i32_0 = arith.constant 0 : i32
    %c0_i32_1 = arith.constant 0 : i32
    return %arg0, %c0_i32, %c0_i32_0 : i32, i32, i32
  }
}

module attributes {stable_mosaic.version = 11 : i64} {
  func.func @mlp_head_kernel(%arg0: i32, %arg1: memref<2x11264xbf16, #tpu.memory_space<vmem>>, %arg2: memref<11264x32xbf16, #tpu.memory_space<vmem>>, %arg3: memref<1x32xf32, #tpu.memory_space<vmem>>, %arg4: memref<32x10xbf16, #tpu.memory_space<vmem>>, %arg5: memref<1x10xf32, #tpu.memory_space<vmem>>, %arg6: memref<2x10xf32, #tpu.memory_space<vmem>>) attributes {dimension_semantics = [#tpu.dimension_semantics<arbitrary>], iteration_bounds = array<i64: 1>, scalar_prefetch = 0 : i64, scratch_operands = 0 : i64, tpu.core_type = #tpu.core_type<tc>, window_params = [{pipeline_mode = #tpu.pipeline_mode<synchronous>, transform_indices = @transform_0, window_bounds = array<i64: 2, 11264>}, {pipeline_mode = #tpu.pipeline_mode<synchronous>, transform_indices = @transform_1, window_bounds = array<i64: 11264, 32>}, {pipeline_mode = #tpu.pipeline_mode<synchronous>, transform_indices = @transform_2, window_bounds = array<i64: 1, 32>}, {pipeline_mode = #tpu.pipeline_mode<synchronous>, transform_indices = @transform_3, window_bounds = array<i64: 32, 10>}, {pipeline_mode = #tpu.pipeline_mode<synchronous>, transform_indices = @transform_4, window_bounds = array<i64: 1, 10>}, {pipeline_mode = #tpu.pipeline_mode<synchronous>, transform_indices = @transform_5, window_bounds = array<i64: 2, 10>}]} {
    %c0 = arith.constant 0 : index
    %c0_0 = arith.constant 0 : index
    %0 = vector.load %arg1[%c0, %c0_0] : memref<2x11264xbf16, #tpu.memory_space<vmem>>, vector<2x11264xbf16>
    %c0_1 = arith.constant 0 : index
    %c0_2 = arith.constant 0 : index
    %1 = vector.load %arg2[%c0_1, %c0_2] : memref<11264x32xbf16, #tpu.memory_space<vmem>>, vector<11264x32xbf16>
    %cst = arith.constant dense<0.000000e+00> : vector<2x32xf32>
    %2 = tpu.matmul %0, %1, %cst {dimension_numbers = #tpu.dot_dimension_numbers<[1], [0], [0], [1], [0, 0, 1, 1], [], []>} : vector<2x11264xbf16>, vector<11264x32xbf16>, vector<2x32xf32> -> vector<2x32xf32>
    %c0_3 = arith.constant 0 : index
    %c0_4 = arith.constant 0 : index
    %3 = vector.load %arg3[%c0_3, %c0_4] : memref<1x32xf32, #tpu.memory_space<vmem>>, vector<1x32xf32>
    %4 = vector.broadcast %3 : vector<1x32xf32> to vector<2x32xf32>
    %5 = arith.addf %2, %4 : vector<2x32xf32>
    %cst_5 = arith.constant 0.000000e+00 : f32
    %6 = vector.broadcast %cst_5 : f32 to vector<2x32xf32>
    %7 = arith.maximumf %5, %6 : vector<2x32xf32>
    %8 = arith.truncf %7 : vector<2x32xf32> to vector<2x32xbf16>
    %c0_6 = arith.constant 0 : index
    %c0_7 = arith.constant 0 : index
    %9 = vector.load %arg4[%c0_6, %c0_7] : memref<32x10xbf16, #tpu.memory_space<vmem>>, vector<32x10xbf16>
    %cst_8 = arith.constant dense<0.000000e+00> : vector<2x10xf32>
    %10 = tpu.matmul %8, %9, %cst_8 {dimension_numbers = #tpu.dot_dimension_numbers<[1], [0], [0], [1], [0, 0, 1, 1], [], []>} : vector<2x32xbf16>, vector<32x10xbf16>, vector<2x10xf32> -> vector<2x10xf32>
    %c0_9 = arith.constant 0 : index
    %c0_10 = arith.constant 0 : index
    %11 = vector.load %arg5[%c0_9, %c0_10] : memref<1x10xf32, #tpu.memory_space<vmem>>, vector<1x10xf32>
    %12 = vector.broadcast %11 : vector<1x10xf32> to vector<2x10xf32>
    %13 = arith.addf %10, %12 : vector<2x10xf32>
    %cst_11 = arith.constant 0.000000e+00 : f32
    %14 = vector.broadcast %cst_11 : f32 to vector<2x10xf32>
    %15 = arith.subf %14, %13 : vector<2x10xf32>
    %16 = math.exp %15 : vector<2x10xf32>
    %cst_12 = arith.constant 1.000000e+00 : f32
    %17 = vector.broadcast %cst_12 : f32 to vector<2x10xf32>
    %18 = arith.addf %17, %16 : vector<2x10xf32>
    %cst_13 = arith.constant 1.000000e+00 : f32
    %19 = vector.broadcast %cst_13 : f32 to vector<2x10xf32>
    %20 = arith.divf %19, %18 : vector<2x10xf32>
    %c0_14 = arith.constant 0 : index
    %c0_15 = arith.constant 0 : index
    %21 = vector.load %arg6[%c0_14, %c0_15] : memref<2x10xf32, #tpu.memory_space<vmem>>, vector<2x10xf32>
    tpu.vector_store %arg6[%c0_14, %c0_15], %20 {strides = array<i32>} : memref<2x10xf32, #tpu.memory_space<vmem>>, vector<2x10xf32>,
    return
  }
  func.func @transform_0(%arg0: i32) -> (i32, i32) {
    %c0_i32 = arith.constant 0 : i32
    %c0_i32_0 = arith.constant 0 : i32
    %c0_i32_1 = arith.constant 0 : i32
    return %c0_i32, %c0_i32_0 : i32, i32
  }
  func.func @transform_1(%arg0: i32) -> (i32, i32) {
    %c0_i32 = arith.constant 0 : i32
    %c0_i32_0 = arith.constant 0 : i32
    %c0_i32_1 = arith.constant 0 : i32
    return %c0_i32, %c0_i32_0 : i32, i32
  }
  func.func @transform_2(%arg0: i32) -> (i32, i32) {
    %c0_i32 = arith.constant 0 : i32
    %c0_i32_0 = arith.constant 0 : i32
    %c0_i32_1 = arith.constant 0 : i32
    return %c0_i32, %c0_i32_0 : i32, i32
  }
  func.func @transform_3(%arg0: i32) -> (i32, i32) {
    %c0_i32 = arith.constant 0 : i32
    %c0_i32_0 = arith.constant 0 : i32
    %c0_i32_1 = arith.constant 0 : i32
    return %c0_i32, %c0_i32_0 : i32, i32
  }
  func.func @transform_4(%arg0: i32) -> (i32, i32) {
    %c0_i32 = arith.constant 0 : i32
    %c0_i32_0 = arith.constant 0 : i32
    %c0_i32_1 = arith.constant 0 : i32
    return %c0_i32, %c0_i32_0 : i32, i32
  }
  func.func @transform_5(%arg0: i32) -> (i32, i32) {
    %c0_i32 = arith.constant 0 : i32
    %c0_i32_0 = arith.constant 0 : i32
    %c0_i32_1 = arith.constant 0 : i32
    return %c0_i32, %c0_i32_0 : i32, i32
  }
}

</mosaic_0001>

<bundles_post_ra>
// kernel: cnn_classify_forward.2
= control target key start
LH: loop header
LB: loop body
LE: loop exit
PB: predicated region body
PF: predicated region fallthrough
CT: control target
= control target key end

     0   :  { %s1667_s12 = smov 0   ;;  %s1977_s0 = inlined_call_operand.vmem [shape: bf16[2,704,32], index: 0, kind: input, shape index: {}]   ;;  %s1978_s1 = inlined_call_operand.vmem [shape: bf16[32,64], index: 1, kind: input, shape index: {}]   ;;  %s1979_s2 = inlined_call_operand.vmem [shape: f32[1,64], index: 2, kind: input, shape index: {}]   ;;  %s1980_s3 = inlined_call_operand.vmem [shape: bf16[2,176,64], index: 3, kind: output, shape index: {}]  }
   0x1 LB: > { %s1297_s13 = sadd.s32 4294967295, %s1645_s12   ;;  %p1301_p0 = scmp.ge.s32.totalorder %s1645_s12, 1  ;;  %s1645_s12 = sphi %s1667_s12, %s13_s12  }
   0x2   : > { %p137_p1 = scmp.lt.s32.totalorder %s1645_s12, 3 }
   0x4   : > { %p138_p2 = pnand %p1301_p0, %p137_p1 }
   0x5   : > { %v1593_v0 = vld [vmem:[%s1978_s1] sm:$0xff] (!%p138_p2)   ;;  %p161_p3 = scmp.lt.s32.totalorder (!%p138_p2), %s1297_s13, 1  ;;  %v1594_v1 = vld [vmem:[%s1978_s1 + $0x8] sm:$0xff] (!%p138_p2)   ;;  %vm496_vm0 = vcmask (!%p138_p2), 261120   ;;  %vm1219_vm1 = vcmask (!%p138_p2), 519168  }
   0x6   : > { %141 = sbr.rel (%p138_p2) target bundleno = 325 (0x145), region = 32  ;;  %1487 = vmatprep.subr.bf16.mxu0 (!%p138_p2), %v1593_v0  ;;  %1579 = vmatprep.subr.bf16.mxu1 (!%p138_p2), %v1593_v0 }
   0x7   : > { %1488 = vmatpush3.bf16.msra.mxu0 (!%p138_p2), %v1593_v0  ;;  %1581 = vmatpush3.bf16.msra.mxu1 (!%p138_p2), %v1593_v0 }
   0x8   : > { %1489 = vmatprep.subr.bf16.mxu0 (!%p138_p2), %v1594_v1  ;;  %1580 = vmatprep.subr.bf16.mxu1 (!%p138_p2), %v1594_v1 }
   0xb   : > { %1490 = vmatpush3.bf16.msra.mxu0 (!%p138_p2), %v1594_v1  ;;  %1582 = vmatpush3.bf16.msra.mxu1 (!%p138_p2), %v1594_v1 }
   0xd   : > { %s1982_s13 = smov (!%p161_p3, %s1297_s13), 1 }
   0xe   : > { %s1583_s18 = smul.u32 352, %s1982_s13 }
   0xf   : > { %s1584_s24 = smul.u32 88, %s1982_s13 }
  0x10   : > { %s1687_s21 = scalar_lea.vmem %s1977_s0, %s1583_s18 }
  0x11   : > { %v1595_v2 = vld [vmem:[%s1687_s21] sm:$0xff]   ;;  %v1596_v3 = vld [vmem:[%s1687_s21 + $0xb0] sm:$0xff]   ;;  %v1597_v4 = vld [vmem:[%s1687_s21 + $0x8] sm:$0xff]   ;;  %s1868_s27 = scalar_lea.vmem %s1980_s3, %s1584_s24 }
  0x12   : > { %1491 = vmatprep.mubr.msk.bf16.mxu0 %vm496_vm0, %v1595_v2  ;;  %1535 = vmatprep.mubr.msk.bf16.mxu1 %vm496_vm0, %v1596_v3  ;;  %v1598_v5 = vld [vmem:[%s1687_s21 + $0xb8] sm:$0xff]   ;;  %v1599_v6 = vld [vmem:[%s1687_s21 + $0x10] sm:$0xff]   ;;  %v1600_v7 = vld [vmem:[%s1687_s21 + $0xc0] sm:$0xff]  }
  0x13   : > { %1492 = vmatmul.mubr.msk.bf16.vlgmr.msra.gmra.mrb[0].mxu0 %vm496_vm0, %v1597_v4  ;;  %1536 = vmatmul.mubr.msk.bf16.vlgmr.msra.gmra.mrb[0].mxu1 %vm496_vm0, %v1598_v5  ;;  %v1601_v8 = vld [vmem:[%s1687_s21 + $0x18] sm:$0xff]   ;;  %v1602_v9 = vld [vmem:[%s1687_s21 + $0xc8] sm:$0xff]   ;;  %v1603_v10 = vld [vmem:[%s1687_s21 + $0x20] sm:$0xff]  }
  0x14   : > { %1495 = vmatprep.mubr.msk.bf16.mxu0 %vm496_vm0, %v1599_v6  ;;  %1539 = vmatprep.mubr.msk.bf16.mxu1 %vm496_vm0, %v1600_v7  ;;  %v1604_v11 = vld [vmem:[%s1687_s21 + $0xd0] sm:$0xff]   ;;  %v1605_v12 = vld [vmem:[%s1687_s21 + $0x28] sm:$0xff]   ;;  %v1606_v13 = vld [vmem:[%s1687_s21 + $0xd8] sm:$0xff]  }
  0x15   : > { %v1607_v14 = vld [vmem:[%s1687_s21 + $0x30] sm:$0xff]   ;;  %v1608_v15 = vld [vmem:[%s1687_s21 + $0xe0] sm:$0xff]   ;;  %v1609_v16 = vld [vmem:[%s1687_s21 + $0x38] sm:$0xff]  }
  0x16   : > { %v1610_v17 = vld [vmem:[%s1687_s21 + $0xe8] sm:$0xff]   ;;  %v1611_v18 = vld [vmem:[%s1687_s21 + $0x40] sm:$0xff]   ;;  %v1612_v19 = vld [vmem:[%s1687_s21 + $0xf0] sm:$0xff]  }
  0x17   : > { %v1613_v20 = vld [vmem:[%s1687_s21 + $0x48] sm:$0xff]   ;;  %v1614_v21 = vld [vmem:[%s1687_s21 + $0xf8] sm:$0xff]   ;;  %v1615_v22 = vld [vmem:[%s1687_s21 + $0x50] sm:$0xff]  }
  0x18   : > { %v1616_v23 = vld [vmem:[%s1687_s21 + $0x100] sm:$0xff]   ;;  %v1617_v24 = vld [vmem:[%s1687_s21 + $0x58] sm:$0xff]   ;;  %v1618_v25 = vld [vmem:[%s1687_s21 + $0x108] sm:$0xff]  }
  0x19   : > { %v1619_v26 = vld [vmem:[%s1687_s21 + $0x60] sm:$0xff]   ;;  %v1620_v27 = vld [vmem:[%s1687_s21 + $0x110] sm:$0xff]   ;;  %v1621_v28 = vld [vmem:[%s1687_s21 + $0x68] sm:$0xff]  }
  0x1a   : > { %v1622_v29 = vld [vmem:[%s1687_s21 + $0x118] sm:$0xff]   ;;  %v1623_v30 = vld [vmem:[%s1687_s21 + $0x70] sm:$0xff]   ;;  %v1624_v31 = vld [vmem:[%s1687_s21 + $0x120] sm:$0xff]  }
  0x1b   : > { %1496 = vmatmul.mubr.msk.bf16.gmra.mrb[4].mxu0 %vm496_vm0, %v1601_v8  ;;  %1540 = vmatmul.mubr.msk.bf16.gmra.mrb[4].mxu1 %vm496_vm0, %v1602_v9  ;;  %v1625_v32 = vld [vmem:[%s1687_s21 + $0x78] sm:$0xff]   ;;  %v1626_v33 = vld [vmem:[%s1687_s21 + $0x128] sm:$0xff]   ;;  %v1627_v34 = vld [vmem:[%s1687_s21 + $0x80] sm:$0xff]  }
  0x1c   : > { %1499 = vmatprep.mubr.msk.bf16.mxu0 %vm496_vm0, %v1603_v10  ;;  %1543 = vmatprep.mubr.msk.bf16.mxu1 %vm496_vm0, %v1604_v11  ;;  %v1628_v35 = vld [vmem:[%s1687_s21 + $0x130] sm:$0xff]   ;;  %v1629_v36 = vld [vmem:[%s1687_s21 + $0x88] sm:$0xff]   ;;  %v1630_v37 = vld [vmem:[%s1687_s21 + $0x138] sm:$0xff]  }
  0x1d   : > { %v1631_v38 = vld [vmem:[%s1687_s21 + $0x90] sm:$0xff]   ;;  %v1632_v39 = vld [vmem:[%s1687_s21 + $0x140] sm:$0xff]   ;;  %v1633_v40 = vld [vmem:[%s1687_s21 + $0x98] sm:$0xff]  }
  0x1e   : > { %v1634_v41 = vld [vmem:[%s1687_s21 + $0x148] sm:$0xff]   ;;  %v1635_v42 = vld [vmem:[%s1687_s21 + $0xa0] sm:$0xff]   ;;  %v1636_v43 = vld [vmem:[%s1687_s21 + $0x150] sm:$0xff]  }
  0x1f   : > { %v1637_v44 = vld [vmem:[%s1687_s21 + $0xa8] sm:$0xff]   ;;  %v1638_v45 = vld [vmem:[%s1687_s21 + $0x158] sm:$0xff]  }
  0x23   : > { %1500 = vmatmul.mubr.msk.bf16.gmra.mrb[8].mxu0 %vm496_vm0, %v1605_v12  ;;  %1544 = vmatmul.mubr.msk.bf16.gmra.mrb[8].mxu1 %vm496_vm0, %v1606_v13 }
  0x24   : > { %1503 = vmatprep.mubr.msk.bf16.mxu0 %vm496_vm0, %v1607_v14  ;;  %1547 = vmatprep.mubr.msk.bf16.mxu1 %vm496_vm0, %v1608_v15 }
  0x2b   : > { %1504 = vmatmul.mubr.msk.bf16.gmra.mrb[12].mxu0 %vm496_vm0, %v1609_v16  ;;  %1548 = vmatmul.mubr.msk.bf16.gmra.mrb[12].mxu1 %vm496_vm0, %v1610_v17 }
  0x2c   : > { %1507 = vmatprep.mubr.msk.bf16.mxu0 %vm496_vm0, %v1611_v18  ;;  %1551 = vmatprep.mubr.msk.bf16.mxu1 %vm496_vm0, %v1612_v19 }
  0x33   : > { %1508 = vmatmul.mubr.msk.bf16.gmra.mrb[16].mxu0 %vm496_vm0, %v1613_v20  ;;  %1552 = vmatmul.mubr.msk.bf16.gmra.mrb[16].mxu1 %vm496_vm0, %v1614_v21 }
  0x34   : > { %1511 = vmatprep.mubr.msk.bf16.mxu0 %vm496_vm0, %v1615_v22  ;;  %1555 = vmatprep.mubr.msk.bf16.mxu1 %vm496_vm0, %v1616_v23 }
  0x3b   : > { %1512 = vmatmul.mubr.msk.bf16.gmra.mrb[20].mxu0 %vm496_vm0, %v1617_v24  ;;  %1556 = vmatmul.mubr.msk.bf16.gmra.mrb[20].mxu1 %vm496_vm0, %v1618_v25 }
  0x3c   : > { %1515 = vmatprep.mubr.msk.bf16.mxu0 %vm496_vm0, %v1619_v26  ;;  %1559 = vmatprep.mubr.msk.bf16.mxu1 %vm496_vm0, %v1620_v27 }
  0x43   : > { %1516 = vmatmul.mubr.msk.bf16.gmra.mrb[24].mxu0 %vm496_vm0, %v1621_v28  ;;  %1560 = vmatmul.mubr.msk.bf16.gmra.mrb[24].mxu1 %vm496_vm0, %v1622_v29  ;;  %v1856_v29 = vld [vmem:[%s1979_s2] ss:$0 sm:$0xff] }
  0x44   : > { %1519 = vmatprep.mubr.msk.bf16.mxu0 %vm496_vm0, %v1623_v30  ;;  %1563 = vmatprep.mubr.msk.bf16.mxu1 %vm496_vm0, %v1624_v31 }
  0x4b   : > { %1520 = vmatmul.mubr.msk.bf16.gmra.mrb[28].mxu0 %vm496_vm0, %v1625_v32  ;;  %1564 = vmatmul.mubr.msk.bf16.gmra.mrb[28].mxu1 %vm496_vm0, %v1626_v33 }
  0x4c   : > { %1523 = vmatprep.mubr.msk.bf16.mxu0 %vm496_vm0, %v1627_v34  ;;  %1567 = vmatprep.mubr.msk.bf16.mxu1 %vm496_vm0, %v1628_v35 }
  0x53   : > { %1524 = vmatmul.mubr.msk.bf16.gmra.mrb[32].mxu0 %vm496_vm0, %v1629_v36  ;;  %1568 = vmatmul.mubr.msk.bf16.gmra.mrb[32].mxu1 %vm496_vm0, %v1630_v37 }
  0x54   : > { %1527 = vmatprep.mubr.msk.bf16.mxu0 %vm496_vm0, %v1631_v38  ;;  %1571 = vmatprep.mubr.msk.bf16.mxu1 %vm496_vm0, %v1632_v39 }
  0x5b   : > { %1528 = vmatmul.mubr.msk.bf16.gmra.mrb[36].mxu0 %vm496_vm0, %v1633_v40  ;;  %1572 = vmatmul.mubr.msk.bf16.gmra.mrb[36].mxu1 %vm496_vm0, %v1634_v41 }
  0x5c   : > { %1531 = vmatprep.mubr.msk.bf16.mxu0 %vm496_vm0, %v1635_v42  ;;  %1575 = vmatprep.mubr.msk.bf16.mxu1 %vm496_vm0, %v1636_v43 }
  0x63   : > { %1532 = vmatmul.mubr.msk.bf16.gmra.mrb[40].mxu0 %vm496_vm0, %v1637_v44  ;;  %1576 = vmatmul.mubr.msk.bf16.gmra.mrb[40].mxu1 %vm496_vm0, %v1638_v45 }
  0xe6   : > { %v1777_v46 = vpop.f32.mrb[0].mxu0  ;;  %v1779_v47 = vpop.f32.mrb[0].mxu1 }
  0xe7   : > { %v663_v48 = vpop.f32.mrb[1].mxu0  ;;  %v839_v49 = vpop.f32.mrb[1].mxu1 }
  0xe8   : > { %v1781_v50 = vpop.f32.mrb[2].mxu0  ;;  %v1783_v51 = vpop.f32.mrb[2].mxu1 }
  0xe9   : > { %v666_v52 = vpop.f32.mrb[3].mxu0  ;;  %v842_v53 = vpop.f32.mrb[3].mxu1 }
  0xee   : > { %v1785_v54 = vpop.f32.mrb[4].mxu0  ;;  %v1787_v55 = vpop.f32.mrb[4].mxu1 }
  0xef   : > { %v1789_v56 = vpop.f32.mrb[5].mxu0  ;;  %v1791_v57 = vpop.f32.mrb[5].mxu1 }
  0xf0   : > { %v1793_v58 = vpop.f32.mrb[6].mxu0  ;;  %v1795_v59 = vpop.f32.mrb[6].mxu1 }
  0xf1   : > { %v1797_v60 = vpop.f32.mrb[7].mxu0  ;;  %v1799_v61 = vpop.f32.mrb[7].mxu1 }
  0xf6   : > { %v1801_v62 = vpop.f32.mrb[8].mxu0  ;;  %v1803_v63 = vpop.f32.mrb[8].mxu1 }
  0xf7   : > { %v1805_v0 = vpop.f32.mrb[9].mxu0  ;;  %v1807_v1 = vpop.f32.mrb[9].mxu1 }
  0xf8   : > { %v1809_v2 = vpop.f32.mrb[10].mxu0  ;;  %v1811_v3 = vpop.f32.mrb[10].mxu1 }
  0xf9   : > { %v1813_v4 = vpop.f32.mrb[11].mxu0  ;;  %v1815_v5 = vpop.f32.mrb[11].mxu1 }
  0xfe   : > { %v1817_v6 = vpop.f32.mrb[12].mxu0  ;;  %v1819_v7 = vpop.f32.mrb[12].mxu1 }
  0xff   : > { %v1821_v8 = vpop.f32.mrb[13].mxu0  ;;  %v1823_v9 = vpop.f32.mrb[13].mxu1 }
 0x100   : > { %v1825_v10 = vpop.f32.mrb[14].mxu0  ;;  %v1827_v11 = vpop.f32.mrb[14].mxu1 }
 0x101   : > { %v1829_v12 = vpop.f32.mrb[15].mxu0  ;;  %v1831_v13 = vpop.f32.mrb[15].mxu1 }
 0x106   : > { %v1833_v14 = vpop.f32.mrb[16].mxu0  ;;  %v1835_v15 = vpop.f32.mrb[16].mxu1 }
 0x107   : > { %v1837_v16 = vpop.f32.mrb[17].mxu0  ;;  %v1839_v17 = vpop.f32.mrb[17].mxu1 }
 0x108   : > { %v1841_v18 = vpop.f32.mrb[18].mxu0  ;;  %v1843_v19 = vpop.f32.mrb[18].mxu1 }
 0x109   : > { %v1845_v20 = vpop.f32.mrb[19].mxu0  ;;  %v1847_v21 = vpop.f32.mrb[19].mxu1 }
 0x10e   : > { %v1513_v22 = vpop.f32.mrb[20].mxu0  ;;  %v1557_v24 = vpop.f32.mrb[20].mxu1 }
 0x10f   : > { %v1014_v23 = vmax.f32 %v663_v48, %v1513_v22  ;;  %v1849_v25 = vpop.f32.mrb[21].mxu0  ;;  %v1036_v26 = vmax.f32 %v839_v49, %v1557_v24  ;;  %v1851_v27 = vpop.f32.mrb[21].mxu1 }
 0x110   : > { %v1514_v28 = vpop.f32.mrb[22].mxu0  ;;  %v1558_v31 = vpop.f32.mrb[22].mxu1 }
 0x111   : > { %v1015_v30 = vmax.f32 %v666_v52, %v1514_v28  ;;  %v1858_v32 = vpop.f32.mrb[23].mxu0  ;;  %v1058_v33 = vmax.f32 %v1014_v23, %v1036_v26  ;;  %v1037_v34 = vmax.f32 %v842_v53, %v1558_v31  ;;  %v1860_v35 = vpop.f32.mrb[23].mxu1 }
 0x113   : > { %v1087_v36 = vadd.f32 %v1856_v29, %v1058_v33  ;;  %v1059_v37 = vmax.f32 %v1015_v30, %v1037_v34 }
 0x115   : > { %v1109_v38 = vmax.f32 %v1087_v36, 0.0  ;;  %v1088_v39 = vadd.f32 %v1856_v29, %v1059_v37 }
 0x116   : > { %v1517_v40 = vpop.f32.mrb[24].mxu0  ;;  %v1561_v42 = vpop.f32.mrb[24].mxu1 }
 0x117   : > { %v1018_v41 = vmax.f32 %v1789_v56, %v1517_v40  ;;  %v759_v43 = vpop.f32.mrb[25].mxu0  ;;  %v1419_v44 = vpack.c.bf16 %v1109_v38, %v1109_v38  ;;  %v1110_v45 = vmax.f32 %v1088_v39, 0.0  ;;  %v1040_v48 = vmax.f32 %v1791_v57, %v1561_v42  ;;  %v935_v52 = vpop.f32.mrb[25].mxu1 }
 0x118   : > { %v1016_v49 = vmax.f32 %v1777_v46, %v759_v43  ;;  %v1518_v53 = vpop.f32.mrb[26].mxu0  ;;  %v1038_v22 = vmax.f32 %v1779_v47, %v935_v52  ;;  %v1562_v24 = vpop.f32.mrb[26].mxu1 }
 0x119   : > { %v1019_v23 = vmax.f32 %v1797_v60, %v1518_v53  ;;  %v762_v26 = vpop.f32.mrb[27].mxu0  ;;  %1220 = vst.msk [vmem:[%s1868_s27] sm:$0xf] %vm1219_vm1, %v1419_v44  ;;  %v1420_v56 = vpack.c.bf16 %v1110_v45, %v1110_v45  ;;  %v1062_v28 = vmax.f32 %v1018_v41, %v1040_v48  ;;  %v1041_v30 = vmax.f32 %v1799_v61, %v1562_v24  ;;  %v938_v57 = vpop.f32.mrb[27].mxu1 }
 0x11a   : > { %v1017_v31 = vmax.f32 %v1781_v50, %v762_v26  ;;  %v1060_v33 = vmax.f32 %v1016_v49, %v1038_v22  ;;  %v1039_v46 = vmax.f32 %v1783_v51, %v938_v57 }
 0x11b   : > { %1221 = vst.msk [vmem:[%s1868_s27 + $0x4] sm:$0xf] %vm1219_vm1, %v1420_v56  ;;  %v1091_v47 = vadd.f32 %v1856_v29, %v1062_v28  ;;  %v1063_v34 = vmax.f32 %v1019_v23, %v1041_v30 }
 0x11c   : > { %v1089_v60 = vadd.f32 %v1856_v29, %v1060_v33  ;;  %v1061_v36 = vmax.f32 %v1017_v31, %v1039_v46 }
 0x11d   : > { %v1113_v37 = vmax.f32 %v1091_v47, 0.0  ;;  %v1092_v38 = vadd.f32 %v1856_v29, %v1063_v34 }
 0x11e   : > { %v1521_v39 = vpop.f32.mrb[28].mxu0  ;;  %v1111_v40 = vmax.f32 %v1089_v60, 0.0  ;;  %v1090_v61 = vadd.f32 %v1856_v29, %v1061_v36  ;;  %v1565_v41 = vpop.f32.mrb[28].mxu1 }
 0x11f   : > { %v1022_v50 = vmax.f32 %v1805_v0, %v1521_v39  ;;  %v775_v51 = vpop.f32.mrb[29].mxu0  ;;  %v1423_v42 = vpack.c.bf16 %v1113_v37, %v1113_v37  ;;  %v1114_v43 = vmax.f32 %v1092_v38, 0.0  ;;  %v1044_v44 = vmax.f32 %v1807_v1, %v1565_v41  ;;  %v951_v48 = vpop.f32.mrb[29].mxu1 }
 0x120   : > { %v1020_v45 = vmax.f32 %v1785_v54, %v775_v51  ;;  %v1522_v49 = vpop.f32.mrb[30].mxu0  ;;  %v1421_v52 = vpack.c.bf16 %v1111_v40, %v1111_v40  ;;  %v1112_v53 = vmax.f32 %v1090_v61, 0.0  ;;  %v1042_v22 = vmax.f32 %v1787_v55, %v951_v48  ;;  %v1566_v0 = vpop.f32.mrb[30].mxu1 }
 0x121   : > { %v1023_v23 = vmax.f32 %v1813_v4, %v1522_v49  ;;  %v778_v24 = vpop.f32.mrb[31].mxu0  ;;  %1224 = vst.msk [vmem:[%s1868_s27 + $0x10] sm:$0xf] %vm1219_vm1, %v1423_v42  ;;  %v1424_v26 = vpack.c.bf16 %v1114_v43, %v1114_v43  ;;  %v1066_v56 = vmax.f32 %v1022_v50, %v1044_v44  ;;  %v1045_v1 = vmax.f32 %v1815_v5, %v1566_v0  ;;  %v954_v28 = vpop.f32.mrb[31].mxu1 }
 0x122   : > { %v1021_v54 = vmax.f32 %v1793_v58, %v778_v24  ;;  %1222 = vst.msk [vmem:[%s1868_s27 + $0x8] sm:$0xf] %vm1219_vm1, %v1421_v52  ;;  %v1422_v30 = vpack.c.bf16 %v1112_v53, %v1112_v53  ;;  %v1064_v31 = vmax.f32 %v1020_v45, %v1042_v22  ;;  %v1043_v55 = vmax.f32 %v1795_v59, %v954_v28 }
 0x123   : > { %1225 = vst.msk [vmem:[%s1868_s27 + $0x14] sm:$0xf] %vm1219_vm1, %v1424_v26  ;;  %v1095_v4 = vadd.f32 %v1856_v29, %v1066_v56  ;;  %v1067_v57 = vmax.f32 %v1023_v23, %v1045_v1 }
 0x124   : > { %1223 = vst.msk [vmem:[%s1868_s27 + $0xc] sm:$0xf] %vm1219_vm1, %v1422_v30  ;;  %v1093_v33 = vadd.f32 %v1856_v29, %v1064_v31  ;;  %v1065_v46 = vmax.f32 %v1021_v54, %v1043_v55 }
 0x125   : > { %v1117_v5 = vmax.f32 %v1095_v4, 0.0  ;;  %v1096_v58 = vadd.f32 %v1856_v29, %v1067_v57 }
 0x126   : > { %v1525_v47 = vpop.f32.mrb[32].mxu0  ;;  %v1115_v34 = vmax.f32 %v1093_v33, 0.0  ;;  %v1094_v60 = vadd.f32 %v1856_v29, %v1065_v46  ;;  %v1569_v36 = vpop.f32.mrb[32].mxu1 }
 0x127   : > { %v1026_v59 = vmax.f32 %v1821_v8, %v1525_v47  ;;  %v791_v37 = vpop.f32.mrb[33].mxu0  ;;  %v1427_v38 = vpack.c.bf16 %v1117_v5, %v1117_v5  ;;  %v1118_v39 = vmax.f32 %v1096_v58, 0.0  ;;  %v1048_v40 = vmax.f32 %v1823_v9, %v1569_v36  ;;  %v967_v50 = vpop.f32.mrb[33].mxu1 }
 0x128   : > { %v1024_v61 = vmax.f32 %v1801_v62, %v791_v37  ;;  %v1526_v41 = vpop.f32.mrb[34].mxu0  ;;  %v1425_v51 = vpack.c.bf16 %v1115_v34, %v1115_v34  ;;  %v1116_v42 = vmax.f32 %v1094_v60, 0.0  ;;  %v1046_v43 = vmax.f32 %v1803_v63, %v967_v50  ;;  %v1570_v8 = vpop.f32.mrb[34].mxu1 }
 0x129   : > { %v1027_v44 = vmax.f32 %v1829_v12, %v1526_v41  ;;  %v794_v45 = vpop.f32.mrb[35].mxu0  ;;  %1228 = vst.msk [vmem:[%s1868_s27 + $0x20] sm:$0xf] %vm1219_vm1, %v1427_v38  ;;  %v1428_v48 = vpack.c.bf16 %v1118_v39, %v1118_v39  ;;  %v1070_v49 = vmax.f32 %v1026_v59, %v1048_v40  ;;  %v1049_v9 = vmax.f32 %v1831_v13, %v1570_v8  ;;  %v970_v52 = vpop.f32.mrb[35].mxu1 }
 0x12a   : > { %v1025_v62 = vmax.f32 %v1809_v2, %v794_v45  ;;  %1226 = vst.msk [vmem:[%s1868_s27 + $0x18] sm:$0xf] %vm1219_vm1, %v1425_v51  ;;  %v1426_v53 = vpack.c.bf16 %v1116_v42, %v1116_v42  ;;  %v1068_v22 = vmax.f32 %v1024_v61, %v1046_v43  ;;  %v1047_v63 = vmax.f32 %v1811_v3, %v970_v52 }
 0x12b   : > { %1229 = vst.msk [vmem:[%s1868_s27 + $0x24] sm:$0xf] %vm1219_vm1, %v1428_v48  ;;  %v1099_v12 = vadd.f32 %v1856_v29, %v1070_v49  ;;  %v1071_v23 = vmax.f32 %v1027_v44, %v1049_v9 }
 0x12c   : > { %1227 = vst.msk [vmem:[%s1868_s27 + $0x1c] sm:$0xf] %vm1219_vm1, %v1426_v53  ;;  %v1097_v0 = vadd.f32 %v1856_v29, %v1068_v22  ;;  %v1069_v24 = vmax.f32 %v1025_v62, %v1047_v63 }
 0x12d   : > { %v1121_v13 = vmax.f32 %v1099_v12, 0.0  ;;  %v1100_v2 = vadd.f32 %v1856_v29, %v1071_v23 }
 0x12e   : > { %v1529_v26 = vpop.f32.mrb[36].mxu0  ;;  %v1119_v56 = vmax.f32 %v1097_v0, 0.0  ;;  %v1098_v1 = vadd.f32 %v1856_v29, %v1069_v24  ;;  %v1573_v54 = vpop.f32.mrb[36].mxu1 }
 0x12f   : > { %v1030_v3 = vmax.f32 %v1837_v16, %v1529_v26  ;;  %v807_v28 = vpop.f32.mrb[37].mxu0  ;;  %v1431_v30 = vpack.c.bf16 %v1121_v13, %v1121_v13  ;;  %v1122_v31 = vmax.f32 %v1100_v2, 0.0  ;;  %v1052_v55 = vmax.f32 %v1839_v17, %v1573_v54  ;;  %v983_v57 = vpop.f32.mrb[37].mxu1 }
 0x130   : > { %v1028_v4 = vmax.f32 %v1817_v6, %v807_v28  ;;  %v1530_v33 = vpop.f32.mrb[38].mxu0  ;;  %v1429_v46 = vpack.c.bf16 %v1119_v56, %v1119_v56  ;;  %v1120_v5 = vmax.f32 %v1098_v1, 0.0  ;;  %v1050_v58 = vmax.f32 %v1819_v7, %v983_v57  ;;  %v1574_v16 = vpop.f32.mrb[38].mxu1 }
 0x131   : > { %v1031_v47 = vmax.f32 %v1845_v20, %v1530_v33  ;;  %v810_v34 = vpop.f32.mrb[39].mxu0  ;;  %1232 = vst.msk [vmem:[%s1868_s27 + $0x30] sm:$0xf] %vm1219_vm1, %v1431_v30  ;;  %v1432_v60 = vpack.c.bf16 %v1122_v31, %v1122_v31  ;;  %v1074_v59 = vmax.f32 %v1030_v3, %v1052_v55  ;;  %v1053_v17 = vmax.f32 %v1847_v21, %v1574_v16  ;;  %v986_v36 = vpop.f32.mrb[39].mxu1 }
 0x132   : > { %v1029_v6 = vmax.f32 %v1825_v10, %v810_v34  ;;  %1230 = vst.msk [vmem:[%s1868_s27 + $0x28] sm:$0xf] %vm1219_vm1, %v1429_v46  ;;  %v1430_v37 = vpack.c.bf16 %v1120_v5, %v1120_v5  ;;  %v1072_v38 = vmax.f32 %v1028_v4, %v1050_v58  ;;  %v1051_v7 = vmax.f32 %v1827_v11, %v986_v36 }
 0x133   : > { %1233 = vst.msk [vmem:[%s1868_s27 + $0x34] sm:$0xf] %vm1219_vm1, %v1432_v60  ;;  %v1103_v20 = vadd.f32 %v1856_v29, %v1074_v59  ;;  %v1075_v39 = vmax.f32 %v1031_v47, %v1053_v17 }
 0x134   : > { %1231 = vst.msk [vmem:[%s1868_s27 + $0x2c] sm:$0xf] %vm1219_vm1, %v1430_v37  ;;  %v1101_v40 = vadd.f32 %v1856_v29, %v1072_v38  ;;  %v1073_v61 = vmax.f32 %v1029_v6, %v1051_v7 }
 0x135   : > { %v1125_v21 = vmax.f32 %v1103_v20, 0.0  ;;  %v1104_v10 = vadd.f32 %v1856_v29, %v1075_v39 }
 0x136   : > { %v1533_v50 = vpop.f32.mrb[40].mxu0  ;;  %v1123_v41 = vmax.f32 %v1101_v40, 0.0  ;;  %v1102_v51 = vadd.f32 %v1856_v29, %v1073_v61  ;;  %v1577_v42 = vpop.f32.mrb[40].mxu1 }
 0x137   : > { %v1034_v11 = vmax.f32 %v1849_v25, %v1533_v50  ;;  %v823_v43 = vpop.f32.mrb[41].mxu0  ;;  %v1435_v44 = vpack.c.bf16 %v1125_v21, %v1125_v21  ;;  %v1126_v8 = vmax.f32 %v1104_v10, 0.0  ;;  %v1056_v45 = vmax.f32 %v1851_v27, %v1577_v42  ;;  %v999_v49 = vpop.f32.mrb[41].mxu1 }
 0x138   : > { %v1032_v48 = vmax.f32 %v1833_v14, %v823_v43  ;;  %v1534_v9 = vpop.f32.mrb[42].mxu0  ;;  %v1433_v62 = vpack.c.bf16 %v1123_v41, %v1123_v41  ;;  %v1124_v52 = vmax.f32 %v1102_v51, 0.0  ;;  %v1054_v53 = vmax.f32 %v1835_v15, %v999_v49  ;;  %v1578_v25 = vpop.f32.mrb[42].mxu1 }
 0x139   : > { %v1035_v22 = vmax.f32 %v1858_v32, %v1534_v9  ;;  %v826_v63 = vpop.f32.mrb[43].mxu0  ;;  %1236 = vst.msk [vmem:[%s1868_s27 + $0x40] sm:$0xf] %vm1219_vm1, %v1435_v44  ;;  %v1436_v12 = vpack.c.bf16 %v1126_v8, %v1126_v8  ;;  %v1078_v23 = vmax.f32 %v1034_v11, %v1056_v45  ;;  %v1057_v27 = vmax.f32 %v1860_v35, %v1578_v25  ;;  %v1002_v0 = vpop.f32.mrb[43].mxu1 }
 0x13a   : > { %v1033_v14 = vmax.f32 %v1841_v18, %v826_v63  ;;  %1234 = vst.msk [vmem:[%s1868_s27 + $0x38] sm:$0xf] %vm1219_vm1, %v1433_v62  ;;  %v1434_v24 = vpack.c.bf16 %v1124_v52, %v1124_v52  ;;  %v1076_v13 = vmax.f32 %v1032_v48, %v1054_v53  ;;  %v1055_v15 = vmax.f32 %v1843_v19, %v1002_v0 }
 0x13b   : > { %1237 = vst.msk [vmem:[%s1868_s27 + $0x44] sm:$0xf] %vm1219_vm1, %v1436_v12  ;;  %v1107_v32 = vadd.f32 %v1856_v29, %v1078_v23  ;;  %v1079_v2 = vmax.f32 %v1035_v22, %v1057_v27 }
 0x13c   : > { %1235 = vst.msk [vmem:[%s1868_s27 + $0x3c] sm:$0xf] %vm1219_vm1, %v1434_v24  ;;  %v1105_v18 = vadd.f32 %v1856_v29, %v1076_v13  ;;  %v1077_v35 = vmax.f32 %v1033_v14, %v1055_v15 }
 0x13d   : > { %v1129_v26 = vmax.f32 %v1107_v32, 0.0  ;;  %v1108_v56 = vadd.f32 %v1856_v29, %v1079_v2 }
 0x13e   : > { %v1127_v1 = vmax.f32 %v1105_v18, 0.0  ;;  %v1106_v3 = vadd.f32 %v1856_v29, %v1077_v35 }
 0x13f   : > { %v1439_v19 = vpack.c.bf16 %v1129_v26, %v1129_v26  ;;  %v1130_v54 = vmax.f32 %v1108_v56, 0.0 }
 0x140   : > { %v1437_v28 = vpack.c.bf16 %v1127_v1, %v1127_v1  ;;  %v1128_v30 = vmax.f32 %v1106_v3, 0.0 }
 0x141   : > { %1240 = vst.msk [vmem:[%s1868_s27 + $0x50] sm:$0xf] %vm1219_vm1, %v1439_v19  ;;  %v1440_v31 = vpack.c.bf16 %v1130_v54, %v1130_v54 }
 0x142   : > { %1238 = vst.msk [vmem:[%s1868_s27 + $0x48] sm:$0xf] %vm1219_vm1, %v1437_v28  ;;  %v1438_v55 = vpack.c.bf16 %v1128_v30, %v1128_v30 }
 0x143   : > { %1241 = vst.msk [vmem:[%s1868_s27 + $0x54] sm:$0xf] %vm1219_vm1, %v1440_v31 }
 0x144   : > { %1239 = vst.msk [vmem:[%s1868_s27 + $0x4c] sm:$0xf] %vm1219_vm1, %v1438_v55 }
 0x145 PF: > { %s13_s12 = sadd.s32 1, %s1645_s12  }
 0x146   : > { %p10_p4 = scmp.ge.s32.totalorder %s13_s12, 4  }
 0x148   :  { %12 = sbr.rel (!%p10_p4) target bundleno = 1 (0x1), region = 62 }

// kernel: cnn_classify_forward.3
= control target key start
LH: loop header
LB: loop body
LE: loop exit
PB: predicated region body
PF: predicated region fallthrough
CT: control target
= control target key end

     0   :  { %v1463_v28 = vlaneseq  ;;  %v10598_v36 = vmov 1966171168   ;;  %s12966_s0 = inlined_call_operand.vmem [shape: bf16[2,11264], index: 0, kind: input, shape index: {}]   ;;  %s12967_s1 = inlined_call_operand.vmem [shape: bf16[11264,32], index: 1, kind: input, shape index: {}]   ;;  %s12968_s2 = inlined_call_operand.vmem [shape: f32[1,32], index: 2, kind: input, shape index: {}]   ;;  %s12969_s3 = inlined_call_operand.vmem [shape: bf16[32,10], index: 3, kind: input, shape index: {}]   ;;  %s12970_s4 = inlined_call_operand.vmem [shape: f32[1,10], index: 4, kind: input, shape index: {}]   ;;  %s12971_s5 = inlined_call_operand.hbm [shape: f32[2,10], index: 5, kind: output, shape index: {}]  }
   0x1   :  { %v9853_v0 = vld [vmem:[%s12967_s1 + $0x40] sm:$0xff]   ;;  %v9857_v4 = vld [vmem:[%s12967_s1 + $0x48] sm:$0xff]   ;;  %v9861_v8 = vld [vmem:[%s12967_s1 + $0x50] sm:$0xff]   ;;  %v1461_v37 = vunpack.c.l.s4 %v10598_v36 }
   0x2   :  { %v9854_v1 = vld [vmem:[%s12967_s1 + $0xc0] sm:$0xff]   ;;  %8870 = vmatprep.subr.bf16.mxu0 %v9853_v0  ;;  %v9858_v5 = vld [vmem:[%s12967_s1 + $0xc8] sm:$0xff]   ;;  %v9862_v9 = vld [vmem:[%s12967_s1 + $0xd0] sm:$0xff]   ;;  %v1464_v33 = vshrl.u32 %v1463_v28, 7 }
   0x3   :  { %v9855_v2 = vld [vmem:[%s12967_s1] sm:$0xff]   ;;  %8892 = vmatprep.subr.bf16.mxu1 %v9854_v1  ;;  %v9859_v6 = vld [vmem:[%s12967_s1 + $0x8] sm:$0xff]   ;;  %v9863_v10 = vld [vmem:[%s12967_s1 + $0x10] sm:$0xff]   ;;  %v1462_v40 = vunpack.c.0.s8 %v1461_v37 }
   0x4   :  { %v9856_v3 = vld [vmem:[%s12967_s1 + $0x80] sm:$0xff]   ;;  %8871 = vmatpush3.bf16.msra.mxu0 %v9855_v2  ;;  %v9860_v7 = vld [vmem:[%s12967_s1 + $0x88] sm:$0xff]   ;;  %v9864_v11 = vld [vmem:[%s12967_s1 + $0x90] sm:$0xff]  }
   0x5   :  { %8893 = vmatpush3.bf16.msra.mxu1 %v9856_v3  ;;  %8872 = vmatprep.subr.bf16.mxu0 %v9857_v4  ;;  %v9865_v12 = vld [vmem:[%s12967_s1 + $0x58] sm:$0xff]   ;;  %v9869_v16 = vld [vmem:[%s12967_s1 + $0x60] sm:$0xff]   ;;  %v9873_v20 = vld [vmem:[%s12967_s1 + $0x68] sm:$0xff]   ;;  %v10737_v41 = vsub.s32 %v1462_v40, %v1464_v33 }
   0x6   :  { %8894 = vmatprep.subr.bf16.mxu1 %v9858_v5  ;;  %v9866_v13 = vld [vmem:[%s12967_s1 + $0xd8] sm:$0xff]   ;;  %v9870_v17 = vld [vmem:[%s12967_s1 + $0xe0] sm:$0xff]   ;;  %v9874_v21 = vld [vmem:[%s12967_s1 + $0xe8] sm:$0xff]  }
   0x7   :  { %v9867_v14 = vld [vmem:[%s12967_s1 + $0x18] sm:$0xff]   ;;  %v9871_v18 = vld [vmem:[%s12967_s1 + $0x20] sm:$0xff]   ;;  %v9875_v22 = vld [vmem:[%s12967_s1 + $0x28] sm:$0xff]  }
   0x8   :  { %8873 = vmatpush3.bf16.msra.mxu0 %v9859_v6  ;;  %v9868_v15 = vld [vmem:[%s12967_s1 + $0x98] sm:$0xff]   ;;  %v9872_v19 = vld [vmem:[%s12967_s1 + $0xa0] sm:$0xff]   ;;  %v9876_v23 = vld [vmem:[%s12967_s1 + $0xa8] sm:$0xff]  }
   0x9   :  { %8895 = vmatpush3.bf16.msra.mxu1 %v9860_v7  ;;  %8874 = vmatprep.subr.bf16.mxu0 %v9861_v8  ;;  %v9877_v24 = vld [vmem:[%s12967_s1 + $0x70] sm:$0xff]   ;;  %v9881_v29 = vld [vmem:[%s12967_s1 + $0x78] sm:$0xff]   ;;  %v22_v34 = vld [vmem:[%s12966_s0] sm:$0xff] }
   0xa   :  { %8896 = vmatprep.subr.bf16.mxu1 %v9862_v9  ;;  %v9878_v25 = vld [vmem:[%s12967_s1 + $0xf0] sm:$0xff]   ;;  %v9882_v30 = vld [vmem:[%s12967_s1 + $0xf8] sm:$0xff]   ;;  %v9886_v35 = vld [vmem:[%s12967_s1 + $0x140] sm:$0xff]   ;;  %v1459_v39 = vcombine.high %v22_v34, %v22_v34  ;;  %v1466_v42 = vrot.slane %v22_v34, %v10737_v41 }
   0xb   :  { %v9879_v26 = vld [vmem:[%s12967_s1 + $0x30] sm:$0xff]   ;;  %v9883_v31 = vld [vmem:[%s12967_s1 + $0x38] sm:$0xff]   ;;  %v9887_v38 = vld [vmem:[%s12967_s1 + $0x1c0] sm:$0xff]  }
   0xc   :  { %8875 = vmatpush3.bf16.msra.mxu0 %v9863_v10  ;;  %v9880_v27 = vld [vmem:[%s12967_s1 + $0xb0] sm:$0xff]   ;;  %v9884_v32 = vld [vmem:[%s12967_s1 + $0xb8] sm:$0xff]   ;;  %v10741_v43 = vrot.slane %v1459_v39, %v10737_v41  ;;  %v1474_v44 = vcombine.high %v1466_v42, %v1466_v42  ;;  %v1482_v45 = vrot.slane %v1466_v42, %v10737_v41  ;;  %v9888_v47 = vld [vmem:[%s12967_s1 + $0x100] sm:$0xff]  }
   0xd   :  { %8897 = vmatpush3.bf16.msra.mxu1 %v9864_v11  ;;  %8876 = vmatprep.subr.bf16.mxu0 %v9865_v12  ;;  %v9889_v49 = vld [vmem:[%s12967_s1 + $0x180] sm:$0xff]   ;;  %v9890_v52 = vld [vmem:[%s12967_s1 + $0x148] sm:$0xff]   ;;  %v9894_v58 = vld [vmem:[%s12967_s1 + $0x150] sm:$0xff]  }
   0xe   :  { %8898 = vmatprep.subr.bf16.mxu1 %v9866_v13  ;;  %v1475_v46 = vcombine.high %v10741_v43, %v10741_v43  ;;  %v1496_v48 = vrot.slane %v1474_v44, %v10737_v41  ;;  %v1504_v51 = vcombine.high %v1482_v45, %v1482_v45  ;;  %v9891_v54 = vld [vmem:[%s12967_s1 + $0x1c8] sm:$0xff]   ;;  %v9895_v59 = vld [vmem:[%s12967_s1 + $0x1d0] sm:$0xff]   ;;  %v9898_v62 = vld [vmem:[%s12967_s1 + $0x158] sm:$0xff]  }
   0xf   :  { %v9892_v55 = vld [vmem:[%s12967_s1 + $0x108] sm:$0xff]   ;;  %v9896_v60 = vld [vmem:[%s12967_s1 + $0x110] sm:$0xff]   ;;  %v9899_v63 = vld [vmem:[%s12967_s1 + $0x1d8] sm:$0xff]  }
  0x10   :  { %8877 = vmatpush3.bf16.msra.mxu0 %v9867_v14  ;;  %v1503_v50 = vrot.slane %v1475_v46, %v10737_v41  ;;  %6342 = vmatprep.mubr.bf16.mxu0 %v1496_v48  ;;  %v1506_v53 = vcombine.high %v1496_v48, %v1496_v48  ;;  %v9893_v57 = vld [vmem:[%s12967_s1 + $0x188] sm:$0xff]   ;;  %v9897_v61 = vld [vmem:[%s12967_s1 + $0x190] sm:$0xff]   ;;  %v9900_v0 = vld [vmem:[%s12967_s1 + $0x118] sm:$0xff]  }
  0x11   :  { %8899 = vmatpush3.bf16.msra.mxu1 %v9868_v15  ;;  %8878 = vmatprep.subr.bf16.mxu0 %v9869_v16  ;;  %v9901_v1 = vld [vmem:[%s12967_s1 + $0x198] sm:$0xff]   ;;  %v9902_v2 = vld [vmem:[%s12967_s1 + $0x160] sm:$0xff]   ;;  %v9906_v6 = vld [vmem:[%s12967_s1 + $0x168] sm:$0xff]  }
  0x12   :  { %8900 = vmatprep.subr.bf16.mxu1 %v9870_v17  ;;  %v1507_v56 = vcombine.high %v1503_v50, %v1503_v50  ;;  %6382 = vmatprep.mubr.bf16.mxu1 %v1506_v53  ;;  %v9903_v3 = vld [vmem:[%s12967_s1 + $0x1e0] sm:$0xff]   ;;  %v9907_v7 = vld [vmem:[%s12967_s1 + $0x1e8] sm:$0xff]   ;;  %v9910_v10 = vld [vmem:[%s12967_s1 + $0x170] sm:$0xff]  }
  0x13   :  { %v9904_v4 = vld [vmem:[%s12967_s1 + $0x120] sm:$0xff]   ;;  %v9908_v8 = vld [vmem:[%s12967_s1 + $0x128] sm:$0xff]   ;;  %v9911_v11 = vld [vmem:[%s12967_s1 + $0x1f0] sm:$0xff]  }
  0x14   :  { %8879 = vmatpush3.bf16.msra.mxu0 %v9871_v18  ;;  %v9905_v5 = vld [vmem:[%s12967_s1 + $0x1a0] sm:$0xff]   ;;  %v9909_v9 = vld [vmem:[%s12967_s1 + $0x1a8] sm:$0xff]   ;;  %v9912_v12 = vld [vmem:[%s12967_s1 + $0x130] sm:$0xff]   ;;  %v1489_v18 = vrot.slane %v10741_v43, %v10737_v41 }
  0x15   :  { %8901 = vmatpush3.bf16.msra.mxu1 %v9872_v19  ;;  %8880 = vmatprep.subr.bf16.mxu0 %v9873_v20  ;;  %v9913_v13 = vld [vmem:[%s12967_s1 + $0x1b0] sm:$0xff]   ;;  %v9914_v14 = vld [vmem:[%s12967_s1 + $0x178] sm:$0xff]   ;;  %v9918_v19 = vld [vmem:[%s12967_s1 + $0x240] sm:$0xff]  }
  0x16   :  { %8902 = vmatprep.subr.bf16.mxu1 %v9874_v21  ;;  %v9915_v15 = vld [vmem:[%s12967_s1 + $0x1f8] sm:$0xff]   ;;  %v9919_v20 = vld [vmem:[%s12967_s1 + $0x2c0] sm:$0xff]   ;;  %v9926_v28 = vld [vmem:[%s12967_s1 + $0x250] sm:$0xff]  }
  0x17   :  { %v9916_v16 = vld [vmem:[%s12967_s1 + $0x138] sm:$0xff]   ;;  %v9920_v21 = vld [vmem:[%s12967_s1 + $0x200] sm:$0xff]   ;;  %v9938_v40 = vld [vmem:[%s12967_s1 + $0x268] sm:$0xff]  }
  0x18   :  { %8881 = vmatpush3.bf16.msra.mxu0 %v9875_v22  ;;  %v9917_v17 = vld [vmem:[%s12967_s1 + $0x1b8] sm:$0xff]   ;;  %v9921_v22 = vld [vmem:[%s12967_s1 + $0x280] sm:$0xff]   ;;  %v9939_v42 = vld [vmem:[%s12967_s1 + $0x2e8] sm:$0xff]  }
  0x19   :  { %8903 = vmatpush3.bf16.msra.mxu1 %v9876_v23  ;;  %8882 = vmatprep.subr.bf16.mxu0 %v9877_v24  ;;  %v1505_v23 = vcombine.high %v1489_v18, %v1489_v18  ;;  %v9922_v24 = vld [vmem:[%s12967_s1 + $0x248] sm:$0xff]   ;;  %v9931_v33 = vld [vmem:[%s12967_s1 + $0x2d8] sm:$0xff]   ;;  %v9934_v36 = vld [vmem:[%s12967_s1 + $0x260] sm:$0xff]  }
  0x1a   :  { %8904 = vmatprep.subr.bf16.mxu1 %v9878_v25  ;;  %v9923_v25 = vld [vmem:[%s12967_s1 + $0x2c8] sm:$0xff]   ;;  %v9932_v34 = vld [vmem:[%s12967_s1 + $0x218] sm:$0xff]   ;;  %v9935_v37 = vld [vmem:[%s12967_s1 + $0x2e0] sm:$0xff]  }
  0x1b   :  { %v9937_v39 = vld [vmem:[%s12967_s1 + $0x2a0] sm:$0xff]   ;;  %v9940_v43 = vld [vmem:[%s12967_s1 + $0x228] sm:$0xff]  }
  0x1c   :  { %8883 = vmatpush3.bf16.msra.mxu0 %v9879_v26  ;;  %v9924_v26 = vld [vmem:[%s12967_s1 + $0x208] sm:$0xff]  }
  0x1d   :  { %8905 = vmatpush3.bf16.msra.mxu1 %v9880_v27  ;;  %8884 = vmatprep.subr.bf16.mxu0 %v9881_v29  ;;  %v9925_v27 = vld [vmem:[%s12967_s1 + $0x288] sm:$0xff]   ;;  %v9927_v29 = vld [vmem:[%s12967_s1 + $0x2d0] sm:$0xff]  }
  0x1e   :  { %8906 = vmatprep.subr.bf16.mxu1 %v9882_v30  ;;  %v9928_v30 = vld [vmem:[%s12967_s1 + $0x210] sm:$0xff]   ;;  %v9941_v44 = vld [vmem:[%s12967_s1 + $0x2a8] sm:$0xff]  }
  0x1f   :  { %v23_v46 = vld [vmem:[%s12966_s0 + $0x8] sm:$0xff] }
  0x20   :  { %8885 = vmatpush3.bf16.msra.mxu0 %v9883_v31  ;;  %v9929_v31 = vld [vmem:[%s12967_s1 + $0x290] sm:$0xff]   ;;  %v1515_v48 = vrot.slane %v23_v46, %v10737_v41 }
  0x21   :  { %8907 = vmatpush3.bf16.msra.mxu1 %v9884_v32  ;;  %8914 = vmatprep.subr.bf16.mxu0 %v9886_v35  ;;  %v9930_v32 = vld [vmem:[%s12967_s1 + $0x258] sm:$0xff]  }
  0x22   :  { %8936 = vmatprep.subr.bf16.mxu1 %v9887_v38  ;;  %v9933_v35 = vld [vmem:[%s12967_s1 + $0x298] sm:$0xff]   ;;  %v9936_v38 = vld [vmem:[%s12967_s1 + $0x220] sm:$0xff]  }
  0x23   :  { %6343 = vmatmul.mubr.bf16.vlgmr.msra.gmra.mrb[0].mxu0 %v1482_v45  ;;  %v9942_v45 = vld [vmem:[%s12967_s1 + $0x270] sm:$0xff]  }
  0x24   :  { %8915 = vmatpush3.bf16.msra.mxu0 %v9888_v47  ;;  %6383 = vmatmul.mubr.bf16.vlgmr.msra.gmra.mrb[0].mxu1 %v1504_v51  ;;  %v9943_v47 = vld [vmem:[%s12967_s1 + $0x2f0] sm:$0xff]  }
  0x25   :  { %8916 = vmatprep.subr.bf16.mxu0 %v9890_v52  ;;  %8937 = vmatpush3.bf16.msra.mxu1 %v9889_v49  ;;  %v1508_v49 = vcombine.high %v23_v46, %v23_v46  ;;  %v9945_v51 = vld [vmem:[%s12967_s1 + $0x2b0] sm:$0xff]   ;;  %v1523_v52 = vcombine.high %v1515_v48, %v1515_v48 }
  0x26   :  { %6422 = vmatprep.mubr.bf16.mxu0 %v1503_v50  ;;  %8938 = vmatprep.subr.bf16.mxu1 %v9891_v54  ;;  %v9944_v50 = vld [vmem:[%s12967_s1 + $0x230] sm:$0xff]   ;;  %v9946_v54 = vld [vmem:[%s12967_s1 + $0x278] sm:$0xff]  }
  0x27   :  { %6462 = vmatprep.mubr.bf16.mxu1 %v1507_v56  ;;  %v10929_v53 = vrot.slane %v1508_v49, %v10737_v41  ;;  %v1545_v56 = vrot.slane %v1523_v52, %v10737_v41  ;;  %v9993_v46 = vld [vmem:[%s12967_s1 + $0x410] sm:$0xff]   ;;  %v9996_v49 = vld [vmem:[%s12967_s1 + $0x4d8] sm:$0xff]   ;;  %v9999_v52 = vld [vmem:[%s12967_s1 + $0x460] sm:$0xff]  }
  0x28   :  { %8917 = vmatpush3.bf16.msra.mxu0 %v9892_v55  ;;  %v9947_v55 = vld [vmem:[%s12967_s1 + $0x2f8] sm:$0xff]  }
  0x29   :  { %8918 = vmatprep.subr.bf16.mxu0 %v9894_v58  ;;  %8939 = vmatpush3.bf16.msra.mxu1 %v9893_v57  ;;  %v1524_v57 = vcombine.high %v10929_v53, %v10929_v53  ;;  %v9948_v58 = vld [vmem:[%s12967_s1 + $0x238] sm:$0xff]  }
  0x2a   :  { %8940 = vmatprep.subr.bf16.mxu1 %v9895_v59  ;;  %v9949_v59 = vld [vmem:[%s12967_s1 + $0x2b8] sm:$0xff]  }
  0x2c   :  { %8919 = vmatpush3.bf16.msra.mxu0 %v9896_v60  ;;  %v1555_v60 = vcombine.high %v1545_v56, %v1545_v56 }
  0x2d   :  { %8920 = vmatprep.subr.bf16.mxu0 %v9898_v62  ;;  %8941 = vmatpush3.bf16.msra.mxu1 %v9897_v61  ;;  %v1531_v61 = vrot.slane %v1515_v48, %v10737_v41  ;;  %v9950_v62 = vld [vmem:[%s12967_s1 + $0x340] sm:$0xff]   ;;  %v9995_v48 = vld [vmem:[%s12967_s1 + $0x458] sm:$0xff]  }
  0x2e   :  { %8942 = vmatprep.subr.bf16.mxu1 %v9899_v63  ;;  %v9951_v63 = vld [vmem:[%s12967_s1 + $0x3c0] sm:$0xff]  }
  0x30   :  { %8921 = vmatpush3.bf16.msra.mxu0 %v9900_v0  ;;  %v1552_v0 = vrot.slane %v1524_v57, %v10737_v41  ;;  %v10004_v57 = vld [vmem:[%s12967_s1 + $0x4e8] sm:$0xff]  }
  0x31   :  { %8922 = vmatprep.subr.bf16.mxu0 %v9902_v2  ;;  %8943 = vmatpush3.bf16.msra.mxu1 %v9901_v1  ;;  %v9952_v1 = vld [vmem:[%s12967_s1 + $0x300] sm:$0xff]  }
  0x32   :  { %8944 = vmatprep.subr.bf16.mxu1 %v9903_v3  ;;  %v9953_v2 = vld [vmem:[%s12967_s1 + $0x380] sm:$0xff]   ;;  %v1553_v3 = vcombine.high %v1531_v61, %v1531_v61 }
  0x34   :  { %8923 = vmatpush3.bf16.msra.mxu0 %v9904_v4  ;;  %v9954_v4 = vld [vmem:[%s12967_s1 + $0x348] sm:$0xff]  }
  0x35   :  { %8924 = vmatprep.subr.bf16.mxu0 %v9906_v6  ;;  %8945 = vmatpush3.bf16.msra.mxu1 %v9905_v5  ;;  %v9955_v5 = vld [vmem:[%s12967_s1 + $0x3c8] sm:$0xff]   ;;  %v1556_v6 = vcombine.high %v1552_v0, %v1552_v0 }
  0x36   :  { %8946 = vmatprep.subr.bf16.mxu1 %v9907_v7  ;;  %v9956_v7 = vld [vmem:[%s12967_s1 + $0x308] sm:$0xff]  }
  0x38   :  { %8925 = vmatpush3.bf16.msra.mxu0 %v9908_v8  ;;  %v9957_v8 = vld [vmem:[%s12967_s1 + $0x388] sm:$0xff]  }
  0x39   :  { %8926 = vmatprep.subr.bf16.mxu0 %v9910_v10  ;;  %8947 = vmatpush3.bf16.msra.mxu1 %v9909_v9  ;;  %v9958_v9 = vld [vmem:[%s12967_s1 + $0x350] sm:$0xff]  }
  0x3a   :  { %8948 = vmatprep.subr.bf16.mxu1 %v9911_v11  ;;  %v9959_v10 = vld [vmem:[%s12967_s1 + $0x3d0] sm:$0xff]  }
  0x3b   :  { %v9960_v11 = vld [vmem:[%s12967_s1 + $0x310] sm:$0xff]  }
  0x3c   :  { %8927 = vmatpush3.bf16.msra.mxu0 %v9912_v12  ;;  %v9961_v12 = vld [vmem:[%s12967_s1 + $0x390] sm:$0xff]  }
  0x3d   :  { %8928 = vmatprep.subr.bf16.mxu0 %v9914_v14  ;;  %8949 = vmatpush3.bf16.msra.mxu1 %v9913_v13  ;;  %v9962_v13 = vld [vmem:[%s12967_s1 + $0x358] sm:$0xff]  }
  0x3e   :  { %8950 = vmatprep.subr.bf16.mxu1 %v9915_v15  ;;  %v9963_v14 = vld [vmem:[%s12967_s1 + $0x3d8] sm:$0xff]  }
  0x3f   :  { %v9964_v15 = vld [vmem:[%s12967_s1 + $0x318] sm:$0xff]  }
  0x40   :  { %8929 = vmatpush3.bf16.msra.mxu0 %v9916_v16  ;;  %v9965_v16 = vld [vmem:[%s12967_s1 + $0x398] sm:$0xff]  }
  0x41   :  { %8958 = vmatprep.subr.bf16.mxu0 %v9918_v19  ;;  %8951 = vmatpush3.bf16.msra.mxu1 %v9917_v17  ;;  %v9966_v17 = vld [vmem:[%s12967_s1 + $0x360] sm:$0xff]  }
  0x42   :  { %8980 = vmatprep.subr.bf16.mxu1 %v9919_v20  ;;  %v9968_v19 = vld [vmem:[%s12967_s1 + $0x320] sm:$0xff]  }
  0x43   :  { %6423 = vmatmul.mubr.bf16.vlgmr.msra.gmra.mrb[4].mxu0 %v1489_v18  ;;  %v9967_v18 = vld [vmem:[%s12967_s1 + $0x3e0] sm:$0xff]  }
  0x44   :  { %8959 = vmatpush3.bf16.msra.mxu0 %v9920_v21  ;;  %6463 = vmatmul.mubr.bf16.vlgmr.msra.gmra.mrb[4].mxu1 %v1505_v23  ;;  %v9969_v20 = vld [vmem:[%s12967_s1 + $0x3a0] sm:$0xff]   ;;  %v9970_v21 = vld [vmem:[%s12967_s1 + $0x368] sm:$0xff]  }
  0x45   :  { %8960 = vmatprep.subr.bf16.mxu0 %v9922_v24  ;;  %8981 = vmatpush3.bf16.msra.mxu1 %v9921_v22  ;;  %v9971_v22 = vld [vmem:[%s12967_s1 + $0x3e8] sm:$0xff]  }
  0x46   :  { %8982 = vmatprep.subr.bf16.mxu1 %v9923_v25  ;;  %6502 = vmatprep.mubr.bf16.mxu0 %v1545_v56  ;;  %v9972_v23 = vld [vmem:[%s12967_s1 + $0x328] sm:$0xff]   ;;  %v9974_v25 = vld [vmem:[%s12967_s1 + $0x370] sm:$0xff]  }
  0x47   :  { %6542 = vmatprep.mubr.bf16.mxu1 %v1555_v60  ;;  %v9973_v24 = vld [vmem:[%s12967_s1 + $0x3a8] sm:$0xff]   ;;  %v10007_v60 = vld [vmem:[%s12967_s1 + $0x470] sm:$0xff]  }
  0x48   :  { %8961 = vmatpush3.bf16.msra.mxu0 %v9924_v26  ;;  %v9975_v26 = vld [vmem:[%s12967_s1 + $0x3f0] sm:$0xff]   ;;  %v10003_v56 = vld [vmem:[%s12967_s1 + $0x468] sm:$0xff]  }
  0x49   :  { %8962 = vmatprep.subr.bf16.mxu0 %v9926_v28  ;;  %8983 = vmatpush3.bf16.msra.mxu1 %v9925_v27  ;;  %v9976_v27 = vld [vmem:[%s12967_s1 + $0x330] sm:$0xff]  }
  0x4a   :  { %8984 = vmatprep.subr.bf16.mxu1 %v9927_v29  ;;  %v9977_v28 = vld [vmem:[%s12967_s1 + $0x3b0] sm:$0xff]   ;;  %v9978_v29 = vld [vmem:[%s12967_s1 + $0x378] sm:$0xff]  }
  0x4c   :  { %8963 = vmatpush3.bf16.msra.mxu0 %v9928_v30  ;;  %v9979_v30 = vld [vmem:[%s12967_s1 + $0x3f8] sm:$0xff]  }
  0x4d   :  { %8964 = vmatprep.subr.bf16.mxu0 %v9930_v32  ;;  %8985 = vmatpush3.bf16.msra.mxu1 %v9929_v31  ;;  %v9980_v31 = vld [vmem:[%s12967_s1 + $0x338] sm:$0xff]  }
  0x4e   :  { %8986 = vmatprep.subr.bf16.mxu1 %v9931_v33  ;;  %v9981_v32 = vld [vmem:[%s12967_s1 + $0x3b8] sm:$0xff]   ;;  %v1538_v33 = vrot.slane %v10929_v53, %v10737_v41  ;;  %v10000_v53 = vld [vmem:[%s12967_s1 + $0x4e0] sm:$0xff]  }
  0x50   :  { %8965 = vmatpush3.bf16.msra.mxu0 %v9932_v34  ;;  %v9983_v34 = vld [vmem:[%s12967_s1 + $0x440] sm:$0xff]  }
  0x51   :  { %8966 = vmatprep.subr.bf16.mxu0 %v9934_v36  ;;  %8987 = vmatpush3.bf16.msra.mxu1 %v9933_v35  ;;  %v9984_v35 = vld [vmem:[%s12967_s1 + $0x4c0] sm:$0xff]  }
  0x52   :  { %8988 = vmatprep.subr.bf16.mxu1 %v9935_v37  ;;  %v9985_v36 = vld [vmem:[%s12967_s1 + $0x400] sm:$0xff]  }
  0x53   :  { %v9986_v37 = vld [vmem:[%s12967_s1 + $0x480] sm:$0xff]  }
  0x54   :  { %8967 = vmatpush3.bf16.msra.mxu0 %v9936_v38  ;;  %v1554_v38 = vcombine.high %v1538_v33, %v1538_v33 }
  0x55   :  { %8968 = vmatprep.subr.bf16.mxu0 %v9938_v40  ;;  %8989 = vmatpush3.bf16.msra.mxu1 %v9937_v39  ;;  %v9987_v39 = vld [vmem:[%s12967_s1 + $0x448] sm:$0xff]  }
  0x56   :  { %8990 = vmatprep.subr.bf16.mxu1 %v9939_v42  ;;  %v9988_v40 = vld [vmem:[%s12967_s1 + $0x4c8] sm:$0xff]  }
  0x57   :  { %v9989_v42 = vld [vmem:[%s12967_s1 + $0x408] sm:$0xff]  }
  0x58   :  { %8969 = vmatpush3.bf16.msra.mxu0 %v9940_v43  ;;  %v9990_v43 = vld [vmem:[%s12967_s1 + $0x488] sm:$0xff]  }
  0x59   :  { %8970 = vmatprep.subr.bf16.mxu0 %v9942_v45  ;;  %8991 = vmatpush3.bf16.msra.mxu1 %v9941_v44  ;;  %v9991_v44 = vld [vmem:[%s12967_s1 + $0x450] sm:$0xff]  }
  0x5a   :  { %8992 = vmatprep.subr.bf16.mxu1 %v9943_v47  ;;  %v9992_v45 = vld [vmem:[%s12967_s1 + $0x4d0] sm:$0xff]  }
  0x5b   :  { %v9994_v47 = vld [vmem:[%s12967_s1 + $0x490] sm:$0xff]  }
  0x5c   :  { %8971 = vmatpush3.bf16.msra.mxu0 %v9944_v50  ;;  %v9997_v50 = vld [vmem:[%s12967_s1 + $0x418] sm:$0xff]  }
  0x5d   :  { %8972 = vmatprep.subr.bf16.mxu0 %v9946_v54  ;;  %8993 = vmatpush3.bf16.msra.mxu1 %v9945_v51  ;;  %v9998_v51 = vld [vmem:[%s12967_s1 + $0x498] sm:$0xff]   ;;  %v10001_v54 = vld [vmem:[%s12967_s1 + $0x420] sm:$0xff]  }
  0x5e   :  { %8994 = vmatprep.subr.bf16.mxu1 %v9947_v55  ;;  %v10002_v55 = vld [vmem:[%s12967_s1 + $0x4a0] sm:$0xff]  }
  0x60   :  { %8973 = vmatpush3.bf16.msra.mxu0 %v9948_v58  ;;  %v10005_v58 = vld [vmem:[%s12967_s1 + $0x428] sm:$0xff]  }
  0x61   :  { %9002 = vmatprep.subr.bf16.mxu0 %v9950_v62  ;;  %8995 = vmatpush3.bf16.msra.mxu1 %v9949_v59  ;;  %v10006_v59 = vld [vmem:[%s12967_s1 + $0x4a8] sm:$0xff]   ;;  %v10008_v62 = vld [vmem:[%s12967_s1 + $0x4f0] sm:$0xff]  }
  0x62   :  { %9024 = vmatprep.subr.bf16.mxu1 %v9951_v63 }
  0x63   :  { %6503 = vmatmul.mubr.bf16.vlgmr.msra.gmra.mrb[8].mxu0 %v1531_v61  ;;  %v24_v61 = vld [vmem:[%s12966_s0 + $0x10] sm:$0xff] }
  0x64   :  { %9003 = vmatpush3.bf16.msra.mxu0 %v9952_v1  ;;  %6582 = vmatprep.mubr.bf16.mxu0 %v1552_v0  ;;  %v1564_v63 = vrot.slane %v24_v61, %v10737_v41  ;;  %v1557_v0 = vcombine.high %v24_v61, %v24_v61  ;;  %v10009_v1 = vld [vmem:[%s12967_s1 + $0x430] sm:$0xff]  }
  0x65   :  { %6543 = vmatmul.mubr.bf16.vlgmr.msra.gmra.mrb[8].mxu1 %v1553_v3  ;;  %9004 = vmatprep.subr.bf16.mxu0 %v9954_v4  ;;  %v10058_v61 = vld [vmem:[%s12967_s1 + $0x610] sm:$0xff]  }
  0x66   :  { %9025 = vmatpush3.bf16.msra.mxu1 %v9953_v2  ;;  %6622 = vmatprep.mubr.bf16.mxu1 %v1556_v6  ;;  %v10010_v2 = vld [vmem:[%s12967_s1 + $0x4b0] sm:$0xff]   ;;  %v1572_v3 = vcombine.high %v1564_v63, %v1564_v63  ;;  %v11135_v4 = vrot.slane %v1557_v0, %v10737_v41  ;;  %v10012_v6 = vld [vmem:[%s12967_s1 + $0x4f8] sm:$0xff]  }
  0x67   :  { %9026 = vmatprep.subr.bf16.mxu1 %v9955_v5  ;;  %v10011_v5 = vld [vmem:[%s12967_s1 + $0x478] sm:$0xff]  }
  0x68   :  { %9005 = vmatpush3.bf16.msra.mxu0 %v9956_v7  ;;  %v1594_v7 = vrot.slane %v1572_v3, %v10737_v41  ;;  %v10061_v0 = vld [vmem:[%s12967_s1 + $0x6d8] sm:$0xff]   ;;  %v10064_v3 = vld [vmem:[%s12967_s1 + $0x660] sm:$0xff]  }
  0x69   :  { %9006 = vmatprep.subr.bf16.mxu0 %v9958_v9  ;;  %v10013_v9 = vld [vmem:[%s12967_s1 + $0x438] sm:$0xff]  }
  0x6a   :  { %9027 = vmatpush3.bf16.msra.mxu1 %v9957_v8  ;;  %v1573_v8 = vcombine.high %v11135_v4, %v11135_v4 }
  0x6b   :  { %9028 = vmatprep.subr.bf16.mxu1 %v9959_v10  ;;  %v10014_v10 = vld [vmem:[%s12967_s1 + $0x4b8] sm:$0xff]  }
  0x6c   :  { %9007 = vmatpush3.bf16.msra.mxu0 %v9960_v11  ;;  %v1604_v11 = vcombine.high %v1594_v7, %v1594_v7 }
  0x6d   :  { %9008 = vmatprep.subr.bf16.mxu0 %v9962_v13  ;;  %v10015_v13 = vld [vmem:[%s12967_s1 + $0x540] sm:$0xff]  }
  0x6e   :  { %9029 = vmatpush3.bf16.msra.mxu1 %v9961_v12  ;;  %v1580_v12 = vrot.slane %v1564_v63, %v10737_v41  ;;  %v10060_v63 = vld [vmem:[%s12967_s1 + $0x658] sm:$0xff]  }
  0x6f   :  { %9030 = vmatprep.subr.bf16.mxu1 %v9963_v14  ;;  %v10016_v14 = vld [vmem:[%s12967_s1 + $0x5c0] sm:$0xff]  }
  0x70   :  { %9009 = vmatpush3.bf16.msra.mxu0 %v9964_v15  ;;  %v1601_v15 = vrot.slane %v1573_v8, %v10737_v41  ;;  %v10069_v8 = vld [vmem:[%s12967_s1 + $0x6e8] sm:$0xff]  }
  0x71   :  { %9010 = vmatprep.subr.bf16.mxu0 %v9966_v17  ;;  %v10018_v17 = vld [vmem:[%s12967_s1 + $0x580] sm:$0xff]  }
  0x72   :  { %9031 = vmatpush3.bf16.msra.mxu1 %v9965_v16  ;;  %v10017_v16 = vld [vmem:[%s12967_s1 + $0x500] sm:$0xff]  }
  0x73   :  { %9032 = vmatprep.subr.bf16.mxu1 %v9967_v18  ;;  %v1602_v18 = vcombine.high %v1580_v12, %v1580_v12 }
  0x74   :  { %9011 = vmatpush3.bf16.msra.mxu0 %v9968_v19  ;;  %v10019_v19 = vld [vmem:[%s12967_s1 + $0x548] sm:$0xff]  }
  0x75   :  { %9012 = vmatprep.subr.bf16.mxu0 %v9970_v21  ;;  %v1605_v21 = vcombine.high %v1601_v15, %v1601_v15 }
  0x76   :  { %9033 = vmatpush3.bf16.msra.mxu1 %v9969_v20  ;;  %v10020_v20 = vld [vmem:[%s12967_s1 + $0x5c8] sm:$0xff]  }
  0x77   :  { %9034 = vmatprep.subr.bf16.mxu1 %v9971_v22  ;;  %v10021_v22 = vld [vmem:[%s12967_s1 + $0x508] sm:$0xff]  }
  0x78   :  { %9013 = vmatpush3.bf16.msra.mxu0 %v9972_v23  ;;  %v10022_v23 = vld [vmem:[%s12967_s1 + $0x588] sm:$0xff]  }
  0x79   :  { %9014 = vmatprep.subr.bf16.mxu0 %v9974_v25  ;;  %v10024_v25 = vld [vmem:[%s12967_s1 + $0x5d0] sm:$0xff]  }
  0x7a   :  { %9035 = vmatpush3.bf16.msra.mxu1 %v9973_v24  ;;  %v10023_v24 = vld [vmem:[%s12967_s1 + $0x550] sm:$0xff]  }
  0x7b   :  { %9036 = vmatprep.subr.bf16.mxu1 %v9975_v26  ;;  %v10025_v26 = vld [vmem:[%s12967_s1 + $0x510] sm:$0xff]  }
  0x7c   :  { %9015 = vmatpush3.bf16.msra.mxu0 %v9976_v27  ;;  %v10026_v27 = vld [vmem:[%s12967_s1 + $0x590] sm:$0xff]  }
  0x7d   :  { %9016 = vmatprep.subr.bf16.mxu0 %v9978_v29  ;;  %v10028_v29 = vld [vmem:[%s12967_s1 + $0x5d8] sm:$0xff]  }
  0x7e   :  { %9037 = vmatpush3.bf16.msra.mxu1 %v9977_v28  ;;  %v10027_v28 = vld [vmem:[%s12967_s1 + $0x558] sm:$0xff]  }
  0x7f   :  { %9038 = vmatprep.subr.bf16.mxu1 %v9979_v30  ;;  %v10029_v30 = vld [vmem:[%s12967_s1 + $0x518] sm:$0xff]  }
  0x80   :  { %9017 = vmatpush3.bf16.msra.mxu0 %v9980_v31  ;;  %v10030_v31 = vld [vmem:[%s12967_s1 + $0x598] sm:$0xff]  }
  0x81   :  { %9046 = vmatprep.subr.bf16.mxu0 %v9983_v34  ;;  %v10033_v34 = vld [vmem:[%s12967_s1 + $0x520] sm:$0xff]  }
  0x82   :  { %9039 = vmatpush3.bf16.msra.mxu1 %v9981_v32  ;;  %v10031_v32 = vld [vmem:[%s12967_s1 + $0x560] sm:$0xff]  }
  0x83   :  { %6583 = vmatmul.mubr.bf16.vlgmr.msra.gmra.mrb[12].mxu0 %v1538_v33  ;;  %9068 = vmatprep.subr.bf16.mxu1 %v9984_v35  ;;  %v10032_v33 = vld [vmem:[%s12967_s1 + $0x5e0] sm:$0xff]  }
  0x84   :  { %9047 = vmatpush3.bf16.msra.mxu0 %v9985_v36  ;;  %6662 = vmatprep.mubr.bf16.mxu0 %v1594_v7  ;;  %v10034_v35 = vld [vmem:[%s12967_s1 + $0x5a0] sm:$0xff]   ;;  %v10035_v36 = vld [vmem:[%s12967_s1 + $0x568] sm:$0xff]  }
  0x85   :  { %6623 = vmatmul.mubr.bf16.vlgmr.msra.gmra.mrb[12].mxu1 %v1554_v38  ;;  %9048 = vmatprep.subr.bf16.mxu0 %v9987_v39  ;;  %v10037_v38 = vld [vmem:[%s12967_s1 + $0x528] sm:$0xff]  }
  0x86   :  { %9069 = vmatpush3.bf16.msra.mxu1 %v9986_v37  ;;  %6702 = vmatprep.mubr.bf16.mxu1 %v1604_v11  ;;  %v10036_v37 = vld [vmem:[%s12967_s1 + $0x5e8] sm:$0xff]   ;;  %v10072_v11 = vld [vmem:[%s12967_s1 + $0x670] sm:$0xff]  }
  0x87   :  { %9070 = vmatprep.subr.bf16.mxu1 %v9988_v40  ;;  %v10038_v39 = vld [vmem:[%s12967_s1 + $0x5a8] sm:$0xff]   ;;  %v10039_v40 = vld [vmem:[%s12967_s1 + $0x570] sm:$0xff]  }
  0x88   :  { %9049 = vmatpush3.bf16.msra.mxu0 %v9989_v42  ;;  %v10040_v42 = vld [vmem:[%s12967_s1 + $0x5f0] sm:$0xff]   ;;  %v10068_v7 = vld [vmem:[%s12967_s1 + $0x668] sm:$0xff]  }
  0x89   :  { %9050 = vmatprep.subr.bf16.mxu0 %v9991_v44  ;;  %v10042_v44 = vld [vmem:[%s12967_s1 + $0x5b0] sm:$0xff]  }
  0x8a   :  { %9071 = vmatpush3.bf16.msra.mxu1 %v9990_v43  ;;  %v10041_v43 = vld [vmem:[%s12967_s1 + $0x530] sm:$0xff]  }
  0x8b   :  { %9072 = vmatprep.subr.bf16.mxu1 %v9992_v45  ;;  %v10043_v45 = vld [vmem:[%s12967_s1 + $0x578] sm:$0xff]  }
  0x8c   :  { %9051 = vmatpush3.bf16.msra.mxu0 %v9993_v46  ;;  %v10044_v46 = vld [vmem:[%s12967_s1 + $0x5f8] sm:$0xff]  }
  0x8d   :  { %9052 = vmatprep.subr.bf16.mxu0 %v9995_v48  ;;  %v10046_v48 = vld [vmem:[%s12967_s1 + $0x5b8] sm:$0xff]  }
  0x8e   :  { %9073 = vmatpush3.bf16.msra.mxu1 %v9994_v47  ;;  %v10045_v47 = vld [vmem:[%s12967_s1 + $0x538] sm:$0xff]  }
  0x8f   :  { %9074 = vmatprep.subr.bf16.mxu1 %v9996_v49  ;;  %v1587_v49 = vrot.slane %v11135_v4, %v10737_v41  ;;  %v10065_v4 = vld [vmem:[%s12967_s1 + $0x6e0] sm:$0xff]  }
  0x90   :  { %9053 = vmatpush3.bf16.msra.mxu0 %v9997_v50  ;;  %v10048_v50 = vld [vmem:[%s12967_s1 + $0x640] sm:$0xff]  }
  0x91   :  { %9054 = vmatprep.subr.bf16.mxu0 %v9999_v52  ;;  %v10050_v52 = vld [vmem:[%s12967_s1 + $0x600] sm:$0xff]  }
  0x92   :  { %9075 = vmatpush3.bf16.msra.mxu1 %v9998_v51  ;;  %v10049_v51 = vld [vmem:[%s12967_s1 + $0x6c0] sm:$0xff]  }
  0x93   :  { %9076 = vmatprep.subr.bf16.mxu1 %v10000_v53  ;;  %v10051_v53 = vld [vmem:[%s12967_s1 + $0x680] sm:$0xff]  }
  0x94   :  { %9055 = vmatpush3.bf16.msra.mxu0 %v10001_v54  ;;  %v1603_v54 = vcombine.high %v1587_v49, %v1587_v49 }
  0x95   :  { %9056 = vmatprep.subr.bf16.mxu0 %v10003_v56  ;;  %v10053_v56 = vld [vmem:[%s12967_s1 + $0x6c8] sm:$0xff]  }
  0x96   :  { %9077 = vmatpush3.bf16.msra.mxu1 %v10002_v55  ;;  %v10052_v55 = vld [vmem:[%s12967_s1 + $0x648] sm:$0xff]  }
  0x97   :  { %9078 = vmatprep.subr.bf16.mxu1 %v10004_v57  ;;  %v10054_v57 = vld [vmem:[%s12967_s1 + $0x608] sm:$0xff]  }
  0x98   :  { %9057 = vmatpush3.bf16.msra.mxu0 %v10005_v58  ;;  %v10055_v58 = vld [vmem:[%s12967_s1 + $0x688] sm:$0xff]  }
  0x99   :  { %9058 = vmatprep.subr.bf16.mxu0 %v10007_v60  ;;  %v10057_v60 = vld [vmem:[%s12967_s1 + $0x6d0] sm:$0xff]  }
  0x9a   :  { %9079 = vmatpush3.bf16.msra.mxu1 %v10006_v59  ;;  %v10056_v59 = vld [vmem:[%s12967_s1 + $0x650] sm:$0xff]  }
  0x9b   :  { %9080 = vmatprep.subr.bf16.mxu1 %v10008_v62  ;;  %v10059_v62 = vld [vmem:[%s12967_s1 + $0x690] sm:$0xff]  }
  0x9c   :  { %9059 = vmatpush3.bf16.msra.mxu0 %v10009_v1  ;;  %v10062_v1 = vld [vmem:[%s12967_s1 + $0x618] sm:$0xff]  }
  0x9d   :  { %9060 = vmatprep.subr.bf16.mxu0 %v10011_v5  ;;  %v10066_v5 = vld [vmem:[%s12967_s1 + $0x620] sm:$0xff]  }
  0x9e   :  { %9081 = vmatpush3.bf16.msra.mxu1 %v10010_v2  ;;  %v10063_v2 = vld [vmem:[%s12967_s1 + $0x698] sm:$0xff]  }
  0x9f   :  { %9082 = vmatprep.subr.bf16.mxu1 %v10012_v6  ;;  %v10067_v6 = vld [vmem:[%s12967_s1 + $0x6a0] sm:$0xff]  }
  0xa0   :  { %9061 = vmatpush3.bf16.msra.mxu0 %v10013_v9  ;;  %v10070_v9 = vld [vmem:[%s12967_s1 + $0x628] sm:$0xff]  }
  0xa1   :  { %9090 = vmatprep.subr.bf16.mxu0 %v10015_v13  ;;  %v10073_v13 = vld [vmem:[%s12967_s1 + $0x6f0] sm:$0xff]  }
  0xa2   :  { %9083 = vmatpush3.bf16.msra.mxu1 %v10014_v10  ;;  %v10071_v10 = vld [vmem:[%s12967_s1 + $0x6a8] sm:$0xff]  }
  0xa3   :  { %6663 = vmatmul.mubr.bf16.vlgmr.msra.gmra.mrb[16].mxu0 %v1580_v12  ;;  %9112 = vmatprep.subr.bf16.mxu1 %v10016_v14  ;;  %v25_v12 = vld [vmem:[%s12966_s0 + $0x18] sm:$0xff] }
  0xa4   :  { %9091 = vmatpush3.bf16.msra.mxu0 %v10017_v16  ;;  %6742 = vmatprep.mubr.bf16.mxu0 %v1601_v15  ;;  %v1613_v14 = vrot.slane %v25_v12, %v10737_v41  ;;  %v1606_v15 = vcombine.high %v25_v12, %v25_v12  ;;  %v10074_v16 = vld [vmem:[%s12967_s1 + $0x630] sm:$0xff]   ;;  %v10111_v12 = vld [vmem:[%s12967_s1 + $0x7b8] sm:$0xff]  }
  0xa5   :  { %6703 = vmatmul.mubr.bf16.vlgmr.msra.gmra.mrb[16].mxu1 %v1602_v18  ;;  %9092 = vmatprep.subr.bf16.mxu0 %v10019_v19 }
  0xa6   :  { %9113 = vmatpush3.bf16.msra.mxu1 %v10018_v17  ;;  %6782 = vmatprep.mubr.bf16.mxu1 %v1605_v21  ;;  %v10076_v17 = vld [vmem:[%s12967_s1 + $0x678] sm:$0xff]   ;;  %v1621_v18 = vcombine.high %v1613_v14, %v1613_v14  ;;  %v11341_v19 = vrot.slane %v1606_v15, %v10737_v41  ;;  %v10114_v15 = vld [vmem:[%s12967_s1 + $0x8c0] sm:$0xff]  }
  0xa7   :  { %9114 = vmatprep.subr.bf16.mxu1 %v10020_v20  ;;  %v10075_v20 = vld [vmem:[%s12967_s1 + $0x6b0] sm:$0xff]   ;;  %v10077_v21 = vld [vmem:[%s12967_s1 + $0x6f8] sm:$0xff]  }
  0xa8   :  { %9093 = vmatpush3.bf16.msra.mxu0 %v10021_v22  ;;  %v1643_v22 = vrot.slane %v1621_v18, %v10737_v41 }
  0xa9   :  { %9094 = vmatprep.subr.bf16.mxu0 %v10023_v24  ;;  %v10078_v24 = vld [vmem:[%s12967_s1 + $0x638] sm:$0xff]  }
  0xaa   :  { %9115 = vmatpush3.bf16.msra.mxu1 %v10022_v23  ;;  %v1622_v23 = vcombine.high %v11341_v19, %v11341_v19 }
  0xab   :  { %9116 = vmatprep.subr.bf16.mxu1 %v10024_v25  ;;  %v1653_v25 = vcombine.high %v1643_v22, %v1643_v22 }
  0xac   :  { %9095 = vmatpush3.bf16.msra.mxu0 %v10025_v26  ;;  %v1629_v26 = vrot.slane %v1613_v14, %v10737_v41  ;;  %v10113_v14 = vld [vmem:[%s12967_s1 + $0x840] sm:$0xff]  }
  0xad   :  { %9096 = vmatprep.subr.bf16.mxu0 %v10027_v28  ;;  %v10079_v28 = vld [vmem:[%s12967_s1 + $0x6b8] sm:$0xff]  }
  0xae   :  { %9117 = vmatpush3.bf16.msra.mxu1 %v10026_v27  ;;  %v10080_v27 = vld [vmem:[%s12967_s1 + $0x740] sm:$0xff]  }
  0xaf   :  { %9118 = vmatprep.subr.bf16.mxu1 %v10028_v29  ;;  %v1650_v29 = vrot.slane %v1622_v23, %v10737_v41  ;;  %v10121_v23 = vld [vmem:[%s12967_s1 + $0x850] sm:$0xff]  }
  0xb0   :  { %9097 = vmatpush3.bf16.msra.mxu0 %v10029_v30  ;;  %v10081_v30 = vld [vmem:[%s12967_s1 + $0x7c0] sm:$0xff]  }
  0xb1   :  { %9098 = vmatprep.subr.bf16.mxu0 %v10031_v32  ;;  %v1651_v32 = vcombine.high %v1629_v26, %v1629_v26 }
  0xb2   :  { %9119 = vmatpush3.bf16.msra.mxu1 %v10030_v31  ;;  %v10082_v31 = vld [vmem:[%s12967_s1 + $0x700] sm:$0xff]  }
  0xb3   :  { %9120 = vmatprep.subr.bf16.mxu1 %v10032_v33  ;;  %v10084_v33 = vld [vmem:[%s12967_s1 + $0x748] sm:$0xff]  }
  0xb4   :  { %9099 = vmatpush3.bf16.msra.mxu0 %v10033_v34  ;;  %v10083_v34 = vld [vmem:[%s12967_s1 + $0x780] sm:$0xff]  }
  0xb5   :  { %9100 = vmatprep.subr.bf16.mxu0 %v10035_v36  ;;  %v10085_v36 = vld [vmem:[%s12967_s1 + $0x7c8] sm:$0xff]  }
  0xb6   :  { %9121 = vmatpush3.bf16.msra.mxu1 %v10034_v35  ;;  %v1654_v35 = vcombine.high %v1650_v29, %v1650_v29 }
  0xb7   :  { %9122 = vmatprep.subr.bf16.mxu1 %v10036_v37  ;;  %v10086_v37 = vld [vmem:[%s12967_s1 + $0x708] sm:$0xff]  }
  0xb8   :  { %9101 = vmatpush3.bf16.msra.mxu0 %v10037_v38  ;;  %v10088_v38 = vld [vmem:[%s12967_s1 + $0x750] sm:$0xff]  }
  0xb9   :  { %9102 = vmatprep.subr.bf16.mxu0 %v10039_v40  ;;  %v10089_v40 = vld [vmem:[%s12967_s1 + $0x7d0] sm:$0xff]  }
  0xba   :  { %9123 = vmatpush3.bf16.msra.mxu1 %v10038_v39  ;;  %v10087_v39 = vld [vmem:[%s12967_s1 + $0x788] sm:$0xff]  }
  0xbb   :  { %9124 = vmatprep.subr.bf16.mxu1 %v10040_v42  ;;  %v10090_v42 = vld [vmem:[%s12967_s1 + $0x710] sm:$0xff]  }
  0xbc   :  { %9103 = vmatpush3.bf16.msra.mxu0 %v10041_v43  ;;  %v10092_v43 = vld [vmem:[%s12967_s1 + $0x758] sm:$0xff]  }
  0xbd   :  { %9104 = vmatprep.subr.bf16.mxu0 %v10043_v45  ;;  %v10093_v45 = vld [vmem:[%s12967_s1 + $0x7d8] sm:$0xff]  }
  0xbe   :  { %9125 = vmatpush3.bf16.msra.mxu1 %v10042_v44  ;;  %v10091_v44 = vld [vmem:[%s12967_s1 + $0x790] sm:$0xff]  }
  0xbf   :  { %9126 = vmatprep.subr.bf16.mxu1 %v10044_v46  ;;  %v10094_v46 = vld [vmem:[%s12967_s1 + $0x718] sm:$0xff]  }
  0xc0   :  { %9105 = vmatpush3.bf16.msra.mxu0 %v10045_v47  ;;  %v10095_v47 = vld [vmem:[%s12967_s1 + $0x798] sm:$0xff]  }
  0xc1   :  { %9134 = vmatprep.subr.bf16.mxu0 %v10048_v50  ;;  %v10098_v50 = vld [vmem:[%s12967_s1 + $0x720] sm:$0xff]  }
  0xc2   :  { %9127 = vmatpush3.bf16.msra.mxu1 %v10046_v48  ;;  %v10096_v48 = vld [vmem:[%s12967_s1 + $0x760] sm:$0xff]  }
  0xc3   :  { %6743 = vmatmul.mubr.bf16.vlgmr.msra.gmra.mrb[20].mxu0 %v1587_v49  ;;  %9156 = vmatprep.subr.bf16.mxu1 %v10049_v51  ;;  %v10097_v49 = vld [vmem:[%s12967_s1 + $0x7e0] sm:$0xff]  }
  0xc4   :  { %9135 = vmatpush3.bf16.msra.mxu0 %v10050_v52  ;;  %6822 = vmatprep.mubr.bf16.mxu0 %v1643_v22  ;;  %v10099_v51 = vld [vmem:[%s12967_s1 + $0x7a0] sm:$0xff]   ;;  %v10100_v52 = vld [vmem:[%s12967_s1 + $0x768] sm:$0xff]  }
  0xc5   :  { %6783 = vmatmul.mubr.bf16.vlgmr.msra.gmra.mrb[20].mxu1 %v1603_v54  ;;  %9136 = vmatprep.subr.bf16.mxu0 %v10052_v55  ;;  %v10102_v54 = vld [vmem:[%s12967_s1 + $0x728] sm:$0xff]  }
  0xc6   :  { %9157 = vmatpush3.bf16.msra.mxu1 %v10051_v53  ;;  %6862 = vmatprep.mubr.bf16.mxu1 %v1653_v25  ;;  %v10101_v53 = vld [vmem:[%s12967_s1 + $0x7e8] sm:$0xff]   ;;  %v10123_v25 = vld [vmem:[%s12967_s1 + $0x810] sm:$0xff]  }
  0xc7   :  { %9158 = vmatprep.subr.bf16.mxu1 %v10053_v56  ;;  %v10103_v55 = vld [vmem:[%s12967_s1 + $0x7a8] sm:$0xff]   ;;  %v8161_v56 = vld [vmem:[%s12968_s2] ss:$0 sm:$0xff] }
  0xc8   :  { %9137 = vmatpush3.bf16.msra.mxu0 %v10054_v57  ;;  %v10104_v57 = vld [vmem:[%s12967_s1 + $0x770] sm:$0xff]   ;;  %v10120_v22 = vld [vmem:[%s12967_s1 + $0x888] sm:$0xff]  }
  0xc9   :  { %9138 = vmatprep.subr.bf16.mxu0 %v10056_v59  ;;  %v10105_v59 = vld [vmem:[%s12967_s1 + $0x7f0] sm:$0xff]  }
  0xca   :  { %9159 = vmatpush3.bf16.msra.mxu1 %v10055_v58 }
  0xcb   :  { %9160 = vmatprep.subr.bf16.mxu1 %v10057_v60 }
  0xcc   :  { %9139 = vmatpush3.bf16.msra.mxu0 %v10058_v61  ;;  %v10106_v61 = vld [vmem:[%s12967_s1 + $0x730] sm:$0xff]  }
  0xcd   :  { %9140 = vmatprep.subr.bf16.mxu0 %v10060_v63 }
  0xce   :  { %9161 = vmatpush3.bf16.msra.mxu1 %v10059_v62 }
  0xcf   :  { %9162 = vmatprep.subr.bf16.mxu1 %v10061_v0 }
  0xd0   :  { %9141 = vmatpush3.bf16.msra.mxu0 %v10062_v1  ;;  %v10107_v1 = vld [vmem:[%s12967_s1 + $0x7b0] sm:$0xff]  }
  0xd1   :  { %9142 = vmatprep.subr.bf16.mxu0 %v10064_v3 }
  0xd2   :  { %9163 = vmatpush3.bf16.msra.mxu1 %v10063_v2  ;;  %v10108_v2 = vld [vmem:[%s12967_s1 + $0x778] sm:$0xff]  }
  0xd3   :  { %9164 = vmatprep.subr.bf16.mxu1 %v10065_v4 }
  0xd4   :  { %9143 = vmatpush3.bf16.msra.mxu0 %v10066_v5 }
  0xd5   :  { %9144 = vmatprep.subr.bf16.mxu0 %v10068_v7 }
  0xd6   :  { %9165 = vmatpush3.bf16.msra.mxu1 %v10067_v6 }
  0xd7   :  { %9166 = vmatprep.subr.bf16.mxu1 %v10069_v8  ;;  %v10109_v8 = vld [vmem:[%s12967_s1 + $0x7f8] sm:$0xff]  }
  0xd8   :  { %9145 = vmatpush3.bf16.msra.mxu0 %v10070_v9 }
  0xd9   :  { %9146 = vmatprep.subr.bf16.mxu0 %v10072_v11 }
  0xda   :  { %9167 = vmatpush3.bf16.msra.mxu1 %v10071_v10  ;;  %v10110_v10 = vld [vmem:[%s12967_s1 + $0x738] sm:$0xff]  }
  0xdb   :  { %9168 = vmatprep.subr.bf16.mxu1 %v10073_v13  ;;  %v1636_v13 = vrot.slane %v11341_v19, %v10737_v41  ;;  %v10117_v19 = vld [vmem:[%s12967_s1 + $0x848] sm:$0xff]  }
  0xdc   :  { %9147 = vmatpush3.bf16.msra.mxu0 %v10074_v16  ;;  %v10115_v16 = vld [vmem:[%s12967_s1 + $0x800] sm:$0xff]  }
  0xdd   :  { %9148 = vmatprep.subr.bf16.mxu0 %v10076_v17  ;;  %v10116_v17 = vld [vmem:[%s12967_s1 + $0x880] sm:$0xff]   ;;  %v1652_v18 = vcombine.high %v1636_v13, %v1636_v13 }
  0xde   :  { %9169 = vmatpush3.bf16.msra.mxu1 %v10075_v20  ;;  %v10118_v20 = vld [vmem:[%s12967_s1 + $0x8c8] sm:$0xff]  }
  0xdf   :  { %9170 = vmatprep.subr.bf16.mxu1 %v10077_v21  ;;  %v10119_v21 = vld [vmem:[%s12967_s1 + $0x808] sm:$0xff]  }
  0xe0   :  { %9149 = vmatpush3.bf16.msra.mxu0 %v10078_v24  ;;  %v10122_v24 = vld [vmem:[%s12967_s1 + $0x8d0] sm:$0xff]  }
  0xe1   :  { %9178 = vmatprep.subr.bf16.mxu0 %v10080_v27  ;;  %v10125_v27 = vld [vmem:[%s12967_s1 + $0x858] sm:$0xff]  }
  0xe2   :  { %9171 = vmatpush3.bf16.msra.mxu1 %v10079_v28  ;;  %v10126_v28 = vld [vmem:[%s12967_s1 + $0x8d8] sm:$0xff]  }
  0xe3   :  { %6823 = vmatmul.mubr.bf16.vlgmr.msra.gmra.mrb[24].mxu0 %v1629_v26  ;;  %9200 = vmatprep.subr.bf16.mxu1 %v10081_v30  ;;  %v10124_v26 = vld [vmem:[%s12967_s1 + $0x890] sm:$0xff]   ;;  %v10128_v30 = vld [vmem:[%s12967_s1 + $0x898] sm:$0xff]  }
  0xe4   :  { %9179 = vmatpush3.bf16.msra.mxu0 %v10082_v31  ;;  %6902 = vmatprep.mubr.bf16.mxu0 %v1650_v29  ;;  %v10127_v29 = vld [vmem:[%s12967_s1 + $0x818] sm:$0xff]   ;;  %v10129_v31 = vld [vmem:[%s12967_s1 + $0x860] sm:$0xff]  }
  0xe5   :  { %6863 = vmatmul.mubr.bf16.vlgmr.msra.gmra.mrb[24].mxu1 %v1651_v32  ;;  %9180 = vmatprep.subr.bf16.mxu0 %v10084_v33  ;;  %v10130_v32 = vld [vmem:[%s12967_s1 + $0x8e0] sm:$0xff]  }
  0xe6   :  { %9201 = vmatpush3.bf16.msra.mxu1 %v10083_v34  ;;  %6942 = vmatprep.mubr.bf16.mxu1 %v1654_v35  ;;  %v10131_v33 = vld [vmem:[%s12967_s1 + $0x820] sm:$0xff]   ;;  %v10133_v35 = vld [vmem:[%s12967_s1 + $0x868] sm:$0xff]  }
  0xe7   :  { %9202 = vmatprep.subr.bf16.mxu1 %v10085_v36  ;;  %v10132_v34 = vld [vmem:[%s12967_s1 + $0x8a0] sm:$0xff]   ;;  %v10134_v36 = vld [vmem:[%s12967_s1 + $0x8e8] sm:$0xff]  }
  0xe8   :  { %9181 = vmatpush3.bf16.msra.mxu0 %v10086_v37  ;;  %v10135_v37 = vld [vmem:[%s12967_s1 + $0x828] sm:$0xff]  }
  0xe9   :  { %9182 = vmatprep.subr.bf16.mxu0 %v10088_v38  ;;  %v10136_v38 = vld [vmem:[%s12967_s1 + $0x8a8] sm:$0xff]  }
  0xea   :  { %9203 = vmatpush3.bf16.msra.mxu1 %v10087_v39  ;;  %v10137_v39 = vld [vmem:[%s12967_s1 + $0x870] sm:$0xff]  }
  0xeb   :  { %9204 = vmatprep.subr.bf16.mxu1 %v10089_v40  ;;  %v10138_v40 = vld [vmem:[%s12967_s1 + $0x8f0] sm:$0xff]  }
  0xec   :  { %9183 = vmatpush3.bf16.msra.mxu0 %v10090_v42 }
  0xed   :  { %9184 = vmatprep.subr.bf16.mxu0 %v10092_v43  ;;  %v10139_v43 = vld [vmem:[%s12967_s1 + $0x830] sm:$0xff]  }
  0xee   :  { %9205 = vmatpush3.bf16.msra.mxu1 %v10091_v44 }
  0xef   :  { %9206 = vmatprep.subr.bf16.mxu1 %v10093_v45  ;;  %v26_v45 = vld [vmem:[%s12966_s0 + $0x20] sm:$0xff] }
  0xf0   :  { %9185 = vmatpush3.bf16.msra.mxu0 %v10094_v46 }
  0xf1   :  { %9186 = vmatprep.subr.bf16.mxu0 %v10096_v48 }
  0xf2   :  { %9207 = vmatpush3.bf16.msra.mxu1 %v10095_v47 }
  0xf3   :  { %9208 = vmatprep.subr.bf16.mxu1 %v10097_v49  ;;  %v10140_v49 = vld [vmem:[%s12967_s1 + $0x8b0] sm:$0xff]  }
  0xf4   :  { %9187 = vmatpush3.bf16.msra.mxu0 %v10098_v50  ;;  %v10141_v50 = vld [vmem:[%s12967_s1 + $0x878] sm:$0xff]  }
  0xf5   :  { %9188 = vmatprep.subr.bf16.mxu0 %v10100_v52  ;;  %v1655_v52 = vcombine.high %v26_v45, %v26_v45 }
  0xf6   :  { %9209 = vmatpush3.bf16.msra.mxu1 %v10099_v51  ;;  %v8886_v58 = vpop.f32.mrb[0].mxu0  ;;  %v1662_v51 = vrot.slane %v26_v45, %v10737_v41 }
  0xf7   :  { %v8887_v60 = vpop.f32.mrb[1].mxu0  ;;  %9210 = vmatprep.subr.bf16.mxu1 %v10101_v53  ;;  %v8908_v62 = vpop.f32.mrb[0].mxu1 }
  0xf8   :  { %v8888_v63 = vadd.f32 %v8887_v60, %v8886_v58  ;;  %v8889_v0 = vpop.f32.mrb[2].mxu0  ;;  %9189 = vmatpush3.bf16.msra.mxu0 %v10102_v54  ;;  %v8909_v3 = vpop.f32.mrb[1].mxu1  ;;  %v10142_v58 = vld [vmem:[%s12967_s1 + $0x8f8] sm:$0xff]  }
  0xf9   :  { %v8890_v4 = vpop.f32.mrb[3].mxu0  ;;  %9190 = vmatprep.subr.bf16.mxu0 %v10104_v57  ;;  %v8910_v6 = vadd.f32 %v8909_v3, %v8908_v62  ;;  %v8911_v7 = vpop.f32.mrb[2].mxu1  ;;  %v11562_v62 = vrot.slane %v1655_v52, %v10737_v41  ;;  %v10144_v0 = vld [vmem:[%s12967_s1 + $0x8b8] sm:$0xff]   ;;  %v10145_v3 = vld [vmem:[%s12967_s1 + $0x940] sm:$0xff]  }
  0xfa   :  { %v6345_v5 = vadd.f32 %v8888_v63, %v8161_v56  ;;  %9211 = vmatpush3.bf16.msra.mxu1 %v10103_v55  ;;  %v8912_v9 = vpop.f32.mrb[3].mxu1  ;;  %v10147_v7 = vld [vmem:[%s12967_s1 + $0x900] sm:$0xff]   ;;  %v10176_v52 = vld [vmem:[%s12967_s1 + $0x9b8] sm:$0xff]  }
  0xfb   :  { %9212 = vmatprep.subr.bf16.mxu1 %v10105_v59  ;;  %v1670_v59 = vcombine.high %v1662_v51, %v1662_v51  ;;  %v1671_v4 = vcombine.high %v11562_v62, %v11562_v62  ;;  %v10148_v9 = vld [vmem:[%s12967_s1 + $0x980] sm:$0xff]  }
  0xfc   :  { %v11456_v11 = vadd.f32 %v8910_v6, %v6345_v5  ;;  %9191 = vmatpush3.bf16.msra.mxu0 %v10106_v61  ;;  %v10143_v61 = vld [vmem:[%s12967_s1 + $0x838] sm:$0xff]   ;;  %v10146_v6 = vld [vmem:[%s12967_s1 + $0x9c0] sm:$0xff]  }
  0xfd   :  { %9192 = vmatprep.subr.bf16.mxu0 %v10108_v2  ;;  %v1678_v2 = vrot.slane %v1662_v51, %v10737_v41 }
  0xfe   :  { %9213 = vmatpush3.bf16.msra.mxu1 %v10107_v1  ;;  %v1692_v1 = vrot.slane %v1670_v59, %v10737_v41  ;;  %v10182_v59 = vld [vmem:[%s12967_s1 + $0xa48] sm:$0xff]  }
  0xff   :  { %9214 = vmatprep.subr.bf16.mxu1 %v10109_v8  ;;  %v1699_v8 = vrot.slane %v1671_v4, %v10737_v41  ;;  %v10191_v4 = vld [vmem:[%s12967_s1 + $0xad8] sm:$0xff]  }
 0x100   :  { %9193 = vmatpush3.bf16.msra.mxu0 %v10110_v10  ;;  %v1702_v5 = vcombine.high %v1692_v1, %v1692_v1  ;;  %v1700_v10 = vcombine.high %v1678_v2, %v1678_v2 }
 0x101   :  { %9222 = vmatprep.subr.bf16.mxu0 %v10113_v14  ;;  %v10151_v14 = vld [vmem:[%s12967_s1 + $0x908] sm:$0xff]  }
 0x102   :  { %9215 = vmatpush3.bf16.msra.mxu1 %v10111_v12  ;;  %v10150_v12 = vld [vmem:[%s12967_s1 + $0x9c8] sm:$0xff]  }
 0x103   :  { %6903 = vmatmul.mubr.bf16.vlgmr.msra.gmra.mrb[28].mxu0 %v1636_v13  ;;  %9244 = vmatprep.subr.bf16.mxu1 %v10114_v15  ;;  %v1703_v13 = vcombine.high %v1699_v8, %v1699_v8  ;;  %v10152_v15 = vld [vmem:[%s12967_s1 + $0x988] sm:$0xff]  }
 0x104   :  { %9223 = vmatpush3.bf16.msra.mxu0 %v10115_v16  ;;  %6982 = vmatprep.mubr.bf16.mxu0 %v1692_v1  ;;  %v10153_v16 = vld [vmem:[%s12967_s1 + $0x950] sm:$0xff]  }
 0x105   :  { %6943 = vmatmul.mubr.bf16.vlgmr.msra.gmra.mrb[28].mxu1 %v1652_v18  ;;  %9224 = vmatprep.subr.bf16.mxu0 %v10117_v19  ;;  %v10155_v18 = vld [vmem:[%s12967_s1 + $0x910] sm:$0xff]  }
 0x106   :  { %9245 = vmatpush3.bf16.msra.mxu1 %v10116_v17  ;;  %7022 = vmatprep.mubr.bf16.mxu1 %v1702_v5  ;;  %v10154_v17 = vld [vmem:[%s12967_s1 + $0x9d0] sm:$0xff]   ;;  %v10192_v5 = vld [vmem:[%s12967_s1 + $0xa18] sm:$0xff]  }
 0x107   :  { %9246 = vmatprep.subr.bf16.mxu1 %v10118_v20  ;;  %v10156_v19 = vld [vmem:[%s12967_s1 + $0x990] sm:$0xff]   ;;  %v10157_v20 = vld [vmem:[%s12967_s1 + $0x958] sm:$0xff]  }
 0x108   :  { %9225 = vmatpush3.bf16.msra.mxu0 %v10119_v21  ;;  %v10158_v21 = vld [vmem:[%s12967_s1 + $0x9d8] sm:$0xff]   ;;  %v10188_v1 = vld [vmem:[%s12967_s1 + $0xa10] sm:$0xff]  }
 0x109   :  { %9226 = vmatprep.subr.bf16.mxu0 %v10121_v23  ;;  %v10160_v23 = vld [vmem:[%s12967_s1 + $0x998] sm:$0xff]  }
 0x10a   :  { %9247 = vmatpush3.bf16.msra.mxu1 %v10120_v22  ;;  %v10159_v22 = vld [vmem:[%s12967_s1 + $0x918] sm:$0xff]  }
 0x10b   :  { %9248 = vmatprep.subr.bf16.mxu1 %v10122_v24  ;;  %v10161_v24 = vld [vmem:[%s12967_s1 + $0x960] sm:$0xff]  }
 0x10c   :  { %9227 = vmatpush3.bf16.msra.mxu0 %v10123_v25  ;;  %v10162_v25 = vld [vmem:[%s12967_s1 + $0x9e0] sm:$0xff]  }
 0x10d   :  { %9228 = vmatprep.subr.bf16.mxu0 %v10125_v27  ;;  %v10164_v27 = vld [vmem:[%s12967_s1 + $0x9a0] sm:$0xff]  }
 0x10e   :  { %9249 = vmatpush3.bf16.msra.mxu1 %v10124_v26  ;;  %v10163_v26 = vld [vmem:[%s12967_s1 + $0x920] sm:$0xff]  }
 0x10f   :  { %9250 = vmatprep.subr.bf16.mxu1 %v10126_v28  ;;  %v10165_v28 = vld [vmem:[%s12967_s1 + $0x968] sm:$0xff]  }
 0x110   :  { %9229 = vmatpush3.bf16.msra.mxu0 %v10127_v29  ;;  %v10166_v29 = vld [vmem:[%s12967_s1 + $0x9e8] sm:$0xff]  }
 0x111   :  { %9230 = vmatprep.subr.bf16.mxu0 %v10129_v31  ;;  %v10168_v31 = vld [vmem:[%s12967_s1 + $0x9a8] sm:$0xff]  }
 0x112   :  { %9251 = vmatpush3.bf16.msra.mxu1 %v10128_v30  ;;  %v10167_v30 = vld [vmem:[%s12967_s1 + $0x928] sm:$0xff]  }
 0x113   :  { %9252 = vmatprep.subr.bf16.mxu1 %v10130_v32  ;;  %v10169_v32 = vld [vmem:[%s12967_s1 + $0x970] sm:$0xff]  }
 0x114   :  { %9231 = vmatpush3.bf16.msra.mxu0 %v10131_v33 }
 0x115   :  { %9232 = vmatprep.subr.bf16.mxu0 %v10133_v35 }
 0x116   :  { %9253 = vmatpush3.bf16.msra.mxu1 %v10132_v34  ;;  %v8930_v42 = vpop.f32.mrb[4].mxu0  ;;  %v10170_v34 = vld [vmem:[%s12967_s1 + $0x9f0] sm:$0xff]  }
 0x117   :  { %v8931_v44 = vpop.f32.mrb[5].mxu0  ;;  %9254 = vmatprep.subr.bf16.mxu1 %v10134_v36  ;;  %v8952_v46 = vpop.f32.mrb[4].mxu1  ;;  %v10171_v36 = vld [vmem:[%s12967_s1 + $0x930] sm:$0xff]  }
 0x118   :  { %v8932_v47 = vadd.f32 %v8931_v44, %v8930_v42  ;;  %v8933_v48 = vpop.f32.mrb[6].mxu0  ;;  %9233 = vmatpush3.bf16.msra.mxu0 %v10135_v37  ;;  %v8953_v53 = vpop.f32.mrb[5].mxu1  ;;  %v10173_v42 = vld [vmem:[%s12967_s1 + $0x978] sm:$0xff]  }
 0x119   :  { %v8934_v54 = vpop.f32.mrb[7].mxu0  ;;  %9234 = vmatprep.subr.bf16.mxu0 %v10137_v39  ;;  %v8954_v56 = vadd.f32 %v8953_v53, %v8952_v46  ;;  %v8955_v57 = vpop.f32.mrb[6].mxu1  ;;  %v10174_v48 = vld [vmem:[%s12967_s1 + $0x9f8] sm:$0xff]   ;;  %v1685_v53 = vrot.slane %v11562_v62, %v10737_v41  ;;  %v10185_v62 = vld [vmem:[%s12967_s1 + $0xa88] sm:$0xff]  }
 0x11a   :  { %v6425_v55 = vadd.f32 %v8932_v47, %v11456_v11  ;;  %9255 = vmatpush3.bf16.msra.mxu1 %v10136_v38  ;;  %v8956_v60 = vpop.f32.mrb[7].mxu1  ;;  %v10149_v11 = vld [vmem:[%s12967_s1 + $0x948] sm:$0xff]   ;;  %v10178_v54 = vld [vmem:[%s12967_s1 + $0xa40] sm:$0xff]  }
 0x11b   :  { %9256 = vmatprep.subr.bf16.mxu1 %v10138_v40  ;;  %v10172_v40 = vld [vmem:[%s12967_s1 + $0x9b0] sm:$0xff]   ;;  %v10181_v57 = vld [vmem:[%s12967_s1 + $0xa80] sm:$0xff]   ;;  %v10183_v60 = vld [vmem:[%s12967_s1 + $0xac8] sm:$0xff]  }
 0x11c   :  { %v11564_v63 = vadd.f32 %v8954_v56, %v6425_v55  ;;  %9235 = vmatpush3.bf16.msra.mxu0 %v10139_v43  ;;  %v10179_v55 = vld [vmem:[%s12967_s1 + $0xac0] sm:$0xff]  }
 0x11d   :  { %9236 = vmatprep.subr.bf16.mxu0 %v10141_v50  ;;  %v10175_v50 = vld [vmem:[%s12967_s1 + $0x938] sm:$0xff]   ;;  %v10180_v56 = vld [vmem:[%s12967_s1 + $0xa00] sm:$0xff]  }
 0x11e   :  { %9257 = vmatpush3.bf16.msra.mxu1 %v10140_v49 }
 0x11f   :  { %9258 = vmatprep.subr.bf16.mxu1 %v10142_v58  ;;  %v1701_v58 = vcombine.high %v1685_v53, %v1685_v53 }
 0x120   :  { %9237 = vmatpush3.bf16.msra.mxu0 %v10143_v61  ;;  %v10184_v61 = vld [vmem:[%s12967_s1 + $0xa08] sm:$0xff]  }
 0x121   :  { %9266 = vmatprep.subr.bf16.mxu0 %v10145_v3  ;;  %v10190_v3 = vld [vmem:[%s12967_s1 + $0xa58] sm:$0xff]  }
 0x122   :  { %9259 = vmatpush3.bf16.msra.mxu1 %v10144_v0  ;;  %v10187_v0 = vld [vmem:[%s12967_s1 + $0xad0] sm:$0xff]  }
 0x123   :  { %6983 = vmatmul.mubr.bf16.vlgmr.msra.gmra.mrb[32].mxu0 %v1678_v2  ;;  %9288 = vmatprep.subr.bf16.mxu1 %v10146_v6  ;;  %v10189_v2 = vld [vmem:[%s12967_s1 + $0xa90] sm:$0xff]   ;;  %v10193_v6 = vld [vmem:[%s12967_s1 + $0xa98] sm:$0xff]  }
 0x124   :  { %9267 = vmatpush3.bf16.msra.mxu0 %v10147_v7  ;;  %7062 = vmatprep.mubr.bf16.mxu0 %v1699_v8  ;;  %v10194_v7 = vld [vmem:[%s12967_s1 + $0xa60] sm:$0xff]  }
 0x125   :  { %7023 = vmatmul.mubr.bf16.vlgmr.msra.gmra.mrb[32].mxu1 %v1700_v10  ;;  %9268 = vmatprep.subr.bf16.mxu0 %v10149_v11  ;;  %v10195_v8 = vld [vmem:[%s12967_s1 + $0xae0] sm:$0xff]   ;;  %v10198_v11 = vld [vmem:[%s12967_s1 + $0xa68] sm:$0xff]  }
 0x126   :  { %9289 = vmatpush3.bf16.msra.mxu1 %v10148_v9  ;;  %7102 = vmatprep.mubr.bf16.mxu1 %v1703_v13  ;;  %v10196_v9 = vld [vmem:[%s12967_s1 + $0xa20] sm:$0xff]   ;;  %v10200_v13 = vld [vmem:[%s12967_s1 + $0xa28] sm:$0xff]  }
 0x127   :  { %9290 = vmatprep.subr.bf16.mxu1 %v10150_v12  ;;  %v10197_v10 = vld [vmem:[%s12967_s1 + $0xaa0] sm:$0xff]   ;;  %v10199_v12 = vld [vmem:[%s12967_s1 + $0xae8] sm:$0xff]  }
 0x128   :  { %9269 = vmatpush3.bf16.msra.mxu0 %v10151_v14  ;;  %v10201_v14 = vld [vmem:[%s12967_s1 + $0xaa8] sm:$0xff]  }
 0x129   :  { %9270 = vmatprep.subr.bf16.mxu0 %v10153_v16 }
 0x12a   :  { %9291 = vmatpush3.bf16.msra.mxu1 %v10152_v15  ;;  %v10202_v15 = vld [vmem:[%s12967_s1 + $0xa70] sm:$0xff]  }
 0x12b   :  { %9292 = vmatprep.subr.bf16.mxu1 %v10154_v17  ;;  %v10203_v17 = vld [vmem:[%s12967_s1 + $0xaf0] sm:$0xff]  }
 0x12c   :  { %9271 = vmatpush3.bf16.msra.mxu0 %v10155_v18 }
 0x12d   :  { %9272 = vmatprep.subr.bf16.mxu0 %v10157_v20 }
 0x12e   :  { %9293 = vmatpush3.bf16.msra.mxu1 %v10156_v19  ;;  %v10204_v19 = vld [vmem:[%s12967_s1 + $0xa30] sm:$0xff]  }
 0x12f   :  { %9294 = vmatprep.subr.bf16.mxu1 %v10158_v21 }
 0x130   :  { %9273 = vmatpush3.bf16.msra.mxu0 %v10159_v22 }
 0x131   :  { %9274 = vmatprep.subr.bf16.mxu0 %v10161_v24  ;;  %v10206_v24 = vld [vmem:[%s12967_s1 + $0xa78] sm:$0xff]  }
 0x132   :  { %9295 = vmatpush3.bf16.msra.mxu1 %v10160_v23  ;;  %v10205_v23 = vld [vmem:[%s12967_s1 + $0xab0] sm:$0xff]  }
 0x133   :  { %9296 = vmatprep.subr.bf16.mxu1 %v10162_v25  ;;  %v27_v25 = vld [vmem:[%s12966_s0 + $0x28] sm:$0xff] }
 0x134   :  { %9275 = vmatpush3.bf16.msra.mxu0 %v10163_v26 }
 0x135   :  { %9276 = vmatprep.subr.bf16.mxu0 %v10165_v28  ;;  %v1711_v28 = vrot.slane %v27_v25, %v10737_v41 }
 0x136   :  { %9297 = vmatpush3.bf16.msra.mxu1 %v10164_v27  ;;  %v8974_v33 = vpop.f32.mrb[8].mxu0 }
 0x137   :  { %v8975_v35 = vpop.f32.mrb[9].mxu0  ;;  %9298 = vmatprep.subr.bf16.mxu1 %v10166_v29  ;;  %v1704_v29 = vcombine.high %v27_v25, %v27_v25  ;;  %v10240_v25 = vld [vmem:[%s12967_s1 + $0xb38] sm:$0xff]  }
 0x138   :  { %v8996_v37 = vpop.f32.mrb[8].mxu1  ;;  %v8976_v38 = vadd.f32 %v8975_v35, %v8974_v33  ;;  %v8977_v39 = vpop.f32.mrb[10].mxu0  ;;  %9277 = vmatpush3.bf16.msra.mxu0 %v10167_v30  ;;  %v10207_v33 = vld [vmem:[%s12967_s1 + $0xaf8] sm:$0xff]  }
 0x139   :  { %v8997_v43 = vpop.f32.mrb[9].mxu1  ;;  %v8978_v44 = vpop.f32.mrb[11].mxu0  ;;  %9278 = vmatprep.subr.bf16.mxu0 %v10169_v32  ;;  %v10208_v35 = vld [vmem:[%s12967_s1 + $0xa38] sm:$0xff]  }
 0x13a   :  { %v6505_v45 = vadd.f32 %v8976_v38, %v11564_v63  ;;  %v8998_v46 = vadd.f32 %v8997_v43, %v8996_v37  ;;  %v8999_v47 = vpop.f32.mrb[10].mxu1  ;;  %9299 = vmatpush3.bf16.msra.mxu1 %v10168_v31  ;;  %v10186_v63 = vld [vmem:[%s12967_s1 + $0xa50] sm:$0xff]   ;;  %v11774_v37 = vrot.slane %v1704_v29, %v10737_v41  ;;  %v10209_v39 = vld [vmem:[%s12967_s1 + $0xab8] sm:$0xff]   ;;  %v10210_v43 = vld [vmem:[%s12967_s1 + $0xb40] sm:$0xff]  }
 0x13b   :  { %v9000_v49 = vpop.f32.mrb[11].mxu1  ;;  %9300 = vmatprep.subr.bf16.mxu1 %v10170_v34  ;;  %v10212_v47 = vld [vmem:[%s12967_s1 + $0xb00] sm:$0xff]  }
 0x13c   :  { %v11668_v51 = vadd.f32 %v8998_v46, %v6505_v45  ;;  %9279 = vmatpush3.bf16.msra.mxu0 %v10171_v36  ;;  %v1719_v36 = vcombine.high %v1711_v28, %v1711_v28  ;;  %v1720_v44 = vcombine.high %v11774_v37, %v11774_v37  ;;  %v10211_v45 = vld [vmem:[%s12967_s1 + $0xbc0] sm:$0xff]  }
 0x13d   :  { %9280 = vmatprep.subr.bf16.mxu0 %v10173_v42  ;;  %v1727_v42 = vrot.slane %v1711_v28, %v10737_v41  ;;  %v10213_v49 = vld [vmem:[%s12967_s1 + $0xb80] sm:$0xff]   ;;  %v1734_v28 = vrot.slane %v11774_v37, %v10737_v41  ;;  %v10250_v37 = vld [vmem:[%s12967_s1 + $0xc88] sm:$0xff]  }
 0x13e   :  { %9301 = vmatpush3.bf16.msra.mxu1 %v10172_v40  ;;  %v1741_v40 = vrot.slane %v1719_v36, %v10737_v41  ;;  %v10243_v29 = vld [vmem:[%s12967_s1 + $0xc40] sm:$0xff]   ;;  %v10249_v36 = vld [vmem:[%s12967_s1 + $0xc08] sm:$0xff]  }
 0x13f   :  { %9302 = vmatprep.subr.bf16.mxu1 %v10174_v48  ;;  %v1748_v48 = vrot.slane %v1720_v44, %v10737_v41  ;;  %v10256_v44 = vld [vmem:[%s12967_s1 + $0xcd8] sm:$0xff]  }
 0x140   :  { %9281 = vmatpush3.bf16.msra.mxu0 %v10175_v50  ;;  %v1751_v46 = vcombine.high %v1741_v40, %v1741_v40  ;;  %v1749_v50 = vcombine.high %v1727_v42, %v1727_v42 }
 0x141   :  { %9310 = vmatprep.subr.bf16.mxu0 %v10178_v54  ;;  %v10216_v54 = vld [vmem:[%s12967_s1 + $0xb08] sm:$0xff]  }
 0x142   :  { %9303 = vmatpush3.bf16.msra.mxu1 %v10176_v52  ;;  %v10215_v52 = vld [vmem:[%s12967_s1 + $0xbc8] sm:$0xff]  }
 0x143   :  { %7063 = vmatmul.mubr.bf16.vlgmr.msra.gmra.mrb[36].mxu0 %v1685_v53  ;;  %9332 = vmatprep.subr.bf16.mxu1 %v10179_v55  ;;  %v1752_v53 = vcombine.high %v1748_v48, %v1748_v48  ;;  %v10217_v55 = vld [vmem:[%s12967_s1 + $0xb88] sm:$0xff]  }
 0x144   :  { %9311 = vmatpush3.bf16.msra.mxu0 %v10180_v56  ;;  %7142 = vmatprep.mubr.bf16.mxu0 %v1741_v40  ;;  %v10218_v56 = vld [vmem:[%s12967_s1 + $0xb50] sm:$0xff]  }
 0x145   :  { %7103 = vmatmul.mubr.bf16.vlgmr.msra.gmra.mrb[36].mxu1 %v1701_v58  ;;  %9312 = vmatprep.subr.bf16.mxu0 %v10182_v59  ;;  %v10220_v58 = vld [vmem:[%s12967_s1 + $0xb10] sm:$0xff]  }
 0x146   :  { %9333 = vmatpush3.bf16.msra.mxu1 %v10181_v57  ;;  %7182 = vmatprep.mubr.bf16.mxu1 %v1751_v46  ;;  %v10219_v57 = vld [vmem:[%s12967_s1 + $0xbd0] sm:$0xff]   ;;  %v10258_v46 = vld [vmem:[%s12967_s1 + $0xc98] sm:$0xff]  }
 0x147   :  { %9334 = vmatprep.subr.bf16.mxu1 %v10183_v60  ;;  %v10221_v59 = vld [vmem:[%s12967_s1 + $0xb90] sm:$0xff]   ;;  %v10222_v60 = vld [vmem:[%s12967_s1 + $0xb58] sm:$0xff]  }
 0x148   :  { %9313 = vmatpush3.bf16.msra.mxu0 %v10184_v61  ;;  %v10223_v61 = vld [vmem:[%s12967_s1 + $0xbd8] sm:$0xff]   ;;  %v10253_v40 = vld [vmem:[%s12967_s1 + $0xc10] sm:$0xff]  }
 0x149   :  { %9314 = vmatprep.subr.bf16.mxu0 %v10186_v63  ;;  %v10225_v63 = vld [vmem:[%s12967_s1 + $0xb98] sm:$0xff]  }
 0x14a   :  { %9335 = vmatpush3.bf16.msra.mxu1 %v10185_v62  ;;  %v10224_v62 = vld [vmem:[%s12967_s1 + $0xb18] sm:$0xff]  }
 0x14b   :  { %9336 = vmatprep.subr.bf16.mxu1 %v10187_v0  ;;  %v10226_v0 = vld [vmem:[%s12967_s1 + $0xb60] sm:$0xff]  }
 0x14c   :  { %9315 = vmatpush3.bf16.msra.mxu0 %v10188_v1  ;;  %v10227_v1 = vld [vmem:[%s12967_s1 + $0xbe0] sm:$0xff]  }
 0x14d   :  { %9316 = vmatprep.subr.bf16.mxu0 %v10190_v3  ;;  %v10229_v3 = vld [vmem:[%s12967_s1 + $0xba0] sm:$0xff]  }
 0x14e   :  { %9337 = vmatpush3.bf16.msra.mxu1 %v10189_v2  ;;  %v10228_v2 = vld [vmem:[%s12967_s1 + $0xb20] sm:$0xff]  }
 0x14f   :  { %9338 = vmatprep.subr.bf16.mxu1 %v10191_v4  ;;  %v10230_v4 = vld [vmem:[%s12967_s1 + $0xb68] sm:$0xff]  }
 0x150   :  { %9317 = vmatpush3.bf16.msra.mxu0 %v10192_v5  ;;  %v10231_v5 = vld [vmem:[%s12967_s1 + $0xbe8] sm:$0xff]  }
 0x151   :  { %9318 = vmatprep.subr.bf16.mxu0 %v10194_v7  ;;  %v10233_v7 = vld [vmem:[%s12967_s1 + $0xba8] sm:$0xff]  }
 0x152   :  { %9339 = vmatpush3.bf16.msra.mxu1 %v10193_v6  ;;  %v10232_v6 = vld [vmem:[%s12967_s1 + $0xb28] sm:$0xff]  }
 0x153   :  { %9340 = vmatprep.subr.bf16.mxu1 %v10195_v8  ;;  %v10234_v8 = vld [vmem:[%s12967_s1 + $0xb70] sm:$0xff]  }
 0x154   :  { %9319 = vmatpush3.bf16.msra.mxu0 %v10196_v9 }
 0x155   :  { %9320 = vmatprep.subr.bf16.mxu0 %v10198_v11 }
 0x156   :  { %9341 = vmatpush3.bf16.msra.mxu1 %v10197_v10  ;;  %v9018_v16 = vpop.f32.mrb[12].mxu0  ;;  %v10235_v10 = vld [vmem:[%s12967_s1 + $0xbf0] sm:$0xff]  }
 0x157   :  { %v9019_v18 = vpop.f32.mrb[13].mxu0  ;;  %9342 = vmatprep.subr.bf16.mxu1 %v10199_v12  ;;  %v10236_v12 = vld [vmem:[%s12967_s1 + $0xb30] sm:$0xff]  }
 0x158   :  { %v9040_v20 = vpop.f32.mrb[12].mxu1  ;;  %v9020_v21 = vadd.f32 %v9019_v18, %v9018_v16  ;;  %v9021_v22 = vpop.f32.mrb[14].mxu0  ;;  %9321 = vmatpush3.bf16.msra.mxu0 %v10200_v13  ;;  %v10237_v16 = vld [vmem:[%s12967_s1 + $0xbb0] sm:$0xff]  }
 0x159   :  { %v9041_v26 = vpop.f32.mrb[13].mxu1  ;;  %v9022_v27 = vpop.f32.mrb[15].mxu0  ;;  %9322 = vmatprep.subr.bf16.mxu0 %v10202_v15 }
 0x15a   :  { %v6585_v30 = vadd.f32 %v9020_v21, %v11668_v51  ;;  %v9042_v31 = vadd.f32 %v9041_v26, %v9040_v20  ;;  %v9043_v32 = vpop.f32.mrb[14].mxu1  ;;  %9343 = vmatpush3.bf16.msra.mxu1 %v10201_v14  ;;  %v10214_v51 = vld [vmem:[%s12967_s1 + $0xb48] sm:$0xff]   ;;  %v10241_v27 = vld [vmem:[%s12967_s1 + $0xbb8] sm:$0xff]  }
 0x15b   :  { %v9044_v34 = vpop.f32.mrb[15].mxu1  ;;  %9344 = vmatprep.subr.bf16.mxu1 %v10203_v17  ;;  %v10238_v17 = vld [vmem:[%s12967_s1 + $0xb78] sm:$0xff]   ;;  %v10246_v32 = vld [vmem:[%s12967_s1 + $0xc80] sm:$0xff]  }
 0x15c   :  { %v11776_v38 = vadd.f32 %v9042_v31, %v6585_v30  ;;  %9323 = vmatpush3.bf16.msra.mxu0 %v10204_v19  ;;  %v10244_v30 = vld [vmem:[%s12967_s1 + $0xcc0] sm:$0xff]   ;;  %v10247_v34 = vld [vmem:[%s12967_s1 + $0xc48] sm:$0xff]  }
 0x15d   :  { %9324 = vmatprep.subr.bf16.mxu0 %v10206_v24  ;;  %v10245_v31 = vld [vmem:[%s12967_s1 + $0xc00] sm:$0xff]  }
 0x15e   :  { %9345 = vmatpush3.bf16.msra.mxu1 %v10205_v23  ;;  %v10239_v23 = vld [vmem:[%s12967_s1 + $0xbf8] sm:$0xff]  }
 0x15f   :  { %9346 = vmatprep.subr.bf16.mxu1 %v10207_v33  ;;  %v1750_v33 = vcombine.high %v1734_v28, %v1734_v28 }
 0x160   :  { %9325 = vmatpush3.bf16.msra.mxu0 %v10208_v35  ;;  %v10248_v35 = vld [vmem:[%s12967_s1 + $0xcc8] sm:$0xff]  }
 0x161   :  { %9354 = vmatprep.subr.bf16.mxu0 %v10210_v43  ;;  %v10255_v43 = vld [vmem:[%s12967_s1 + $0xc58] sm:$0xff]  }
 0x162   :  { %9347 = vmatpush3.bf16.msra.mxu1 %v10209_v39  ;;  %v10252_v39 = vld [vmem:[%s12967_s1 + $0xcd0] sm:$0xff]  }
 0x163   :  { %7143 = vmatmul.mubr.bf16.vlgmr.msra.gmra.mrb[40].mxu0 %v1727_v42  ;;  %9376 = vmatprep.subr.bf16.mxu1 %v10211_v45  ;;  %v10254_v42 = vld [vmem:[%s12967_s1 + $0xc90] sm:$0xff]   ;;  %v10257_v45 = vld [vmem:[%s12967_s1 + $0xc18] sm:$0xff]  }
 0x164   :  { %9355 = vmatpush3.bf16.msra.mxu0 %v10212_v47  ;;  %7222 = vmatprep.mubr.bf16.mxu0 %v1748_v48  ;;  %v10259_v47 = vld [vmem:[%s12967_s1 + $0xc60] sm:$0xff]  }
 0x165   :  { %7183 = vmatmul.mubr.bf16.vlgmr.msra.gmra.mrb[40].mxu1 %v1749_v50  ;;  %9356 = vmatprep.subr.bf16.mxu0 %v10214_v51  ;;  %v10260_v48 = vld [vmem:[%s12967_s1 + $0xce0] sm:$0xff]   ;;  %v10263_v51 = vld [vmem:[%s12967_s1 + $0xc68] sm:$0xff]  }
 0x166   :  { %9377 = vmatpush3.bf16.msra.mxu1 %v10213_v49  ;;  %7262 = vmatprep.mubr.bf16.mxu1 %v1752_v53  ;;  %v10261_v49 = vld [vmem:[%s12967_s1 + $0xc20] sm:$0xff]   ;;  %v10265_v53 = vld [vmem:[%s12967_s1 + $0xc28] sm:$0xff]  }
 0x167   :  { %9378 = vmatprep.subr.bf16.mxu1 %v10215_v52  ;;  %v10262_v50 = vld [vmem:[%s12967_s1 + $0xca0] sm:$0xff]   ;;  %v10264_v52 = vld [vmem:[%s12967_s1 + $0xce8] sm:$0xff]  }
 0x168   :  { %9357 = vmatpush3.bf16.msra.mxu0 %v10216_v54  ;;  %v10266_v54 = vld [vmem:[%s12967_s1 + $0xca8] sm:$0xff]  }
 0x169   :  { %9358 = vmatprep.subr.bf16.mxu0 %v10218_v56 }
 0x16a   :  { %9379 = vmatpush3.bf16.msra.mxu1 %v10217_v55  ;;  %v10267_v55 = vld [vmem:[%s12967_s1 + $0xc70] sm:$0xff]  }
 0x16b   :  { %9380 = vmatprep.subr.bf16.mxu1 %v10219_v57  ;;  %v10268_v57 = vld [vmem:[%s12967_s1 + $0xcf0] sm:$0xff]  }
 0x16c   :  { %9359 = vmatpush3.bf16.msra.mxu0 %v10220_v58 }
 0x16d   :  { %9360 = vmatprep.subr.bf16.mxu0 %v10222_v60 }
 0x16e   :  { %9381 = vmatpush3.bf16.msra.mxu1 %v10221_v59  ;;  %v10269_v59 = vld [vmem:[%s12967_s1 + $0xc30] sm:$0xff]  }
 0x16f   :  { %9382 = vmatprep.subr.bf16.mxu1 %v10223_v61 }
 0x170   :  { %9361 = vmatpush3.bf16.msra.mxu0 %v10224_v62 }
 0x171   :  { %9362 = vmatprep.subr.bf16.mxu0 %v10226_v0 }
 0x172   :  { %9383 = vmatpush3.bf16.msra.mxu1 %v10225_v63  ;;  %v10270_v63 = vld [vmem:[%s12967_s1 + $0xcb0] sm:$0xff]  }
 0x173   :  { %9384 = vmatprep.subr.bf16.mxu1 %v10227_v1 }
 0x174   :  { %9363 = vmatpush3.bf16.msra.mxu0 %v10228_v2  ;;  %v10271_v2 = vld [vmem:[%s12967_s1 + $0xc78] sm:$0xff]  }
 0x175   :  { %9364 = vmatprep.subr.bf16.mxu0 %v10230_v4 }
 0x176   :  { %9385 = vmatpush3.bf16.msra.mxu1 %v10229_v3  ;;  %v9062_v9 = vpop.f32.mrb[16].mxu0  ;;  %v28_v3 = vld [vmem:[%s12966_s0 + $0x30] sm:$0xff] }
 0x177   :  { %v9063_v11 = vpop.f32.mrb[17].mxu0  ;;  %9386 = vmatprep.subr.bf16.mxu1 %v10231_v5 }
 0x178   :  { %v9084_v13 = vpop.f32.mrb[16].mxu1  ;;  %v9064_v14 = vadd.f32 %v9063_v11, %v9062_v9  ;;  %v9065_v15 = vpop.f32.mrb[18].mxu0  ;;  %9365 = vmatpush3.bf16.msra.mxu0 %v10232_v6  ;;  %v1753_v9 = vcombine.high %v28_v3, %v28_v3  ;;  %v10273_v11 = vld [vmem:[%s12967_s1 + $0xc38] sm:$0xff]  }
 0x179   :  { %v9085_v18 = vpop.f32.mrb[17].mxu1  ;;  %v9066_v19 = vpop.f32.mrb[19].mxu0  ;;  %9366 = vmatprep.subr.bf16.mxu0 %v10234_v8  ;;  %v1760_v8 = vrot.slane %v28_v3, %v10737_v41  ;;  %v10306_v3 = vld [vmem:[%s12967_s1 + $0xdb8] sm:$0xff]  }
 0x17a   :  { %v6665_v20 = vadd.f32 %v9064_v14, %v11776_v38  ;;  %v9086_v21 = vadd.f32 %v9085_v18, %v9084_v13  ;;  %v9087_v22 = vpop.f32.mrb[18].mxu1  ;;  %9387 = vmatpush3.bf16.msra.mxu1 %v10233_v7  ;;  %v10251_v38 = vld [vmem:[%s12967_s1 + $0xc50] sm:$0xff]   ;;  %v10272_v7 = vld [vmem:[%s12967_s1 + $0xcf8] sm:$0xff]   ;;  %v11991_v15 = vrot.slane %v1753_v9, %v10737_v41  ;;  %v10276_v19 = vld [vmem:[%s12967_s1 + $0xdc0] sm:$0xff]  }
 0x17b   :  { %v9088_v24 = vpop.f32.mrb[19].mxu1  ;;  %9388 = vmatprep.subr.bf16.mxu1 %v10235_v10  ;;  %v10274_v13 = vld [vmem:[%s12967_s1 + $0xcb8] sm:$0xff]   ;;  %v1768_v14 = vcombine.high %v1760_v8, %v1760_v8 }
 0x17c   :  { %v11880_v26 = vadd.f32 %v9086_v21, %v6665_v20  ;;  %9367 = vmatpush3.bf16.msra.mxu0 %v10236_v12  ;;  %v1769_v20 = vcombine.high %v11991_v15, %v11991_v15  ;;  %v10277_v21 = vld [vmem:[%s12967_s1 + $0xd00] sm:$0xff]  }
 0x17d   :  { %9368 = vmatprep.subr.bf16.mxu0 %v10238_v17  ;;  %v10275_v17 = vld [vmem:[%s12967_s1 + $0xd40] sm:$0xff]   ;;  %v1790_v18 = vrot.slane %v1768_v14, %v10737_v41  ;;  %v10316_v14 = vld [vmem:[%s12967_s1 + $0xe50] sm:$0xff]  }
 0x17e   :  { %9389 = vmatpush3.bf16.msra.mxu1 %v10237_v16  ;;  %v1776_v16 = vrot.slane %v1760_v8, %v10737_v41  ;;  %v1797_v24 = vrot.slane %v1769_v20, %v10737_v41  ;;  %v10311_v8 = vld [vmem:[%s12967_s1 + $0xe80] sm:$0xff]   ;;  %v10322_v20 = vld [vmem:[%s12967_s1 + $0xe18] sm:$0xff]  }
 0x17f   :  { %9390 = vmatprep.subr.bf16.mxu1 %v10239_v23  ;;  %v1800_v22 = vcombine.high %v1790_v18, %v1790_v18  ;;  %v10278_v23 = vld [vmem:[%s12967_s1 + $0xd80] sm:$0xff]  }
 0x180   :  { %9369 = vmatpush3.bf16.msra.mxu0 %v10240_v25  ;;  %v1798_v25 = vcombine.high %v1776_v16, %v1776_v16 }
 0x181   :  { %9398 = vmatprep.subr.bf16.mxu0 %v10243_v29  ;;  %v10281_v29 = vld [vmem:[%s12967_s1 + $0xd08] sm:$0xff]  }
 0x182   :  { %9391 = vmatpush3.bf16.msra.mxu1 %v10241_v27  ;;  %v10280_v27 = vld [vmem:[%s12967_s1 + $0xdc8] sm:$0xff]  }
 0x183   :  { %7223 = vmatmul.mubr.bf16.vlgmr.msra.gmra.mrb[44].mxu0 %v1734_v28  ;;  %9420 = vmatprep.subr.bf16.mxu1 %v10244_v30  ;;  %v1801_v28 = vcombine.high %v1797_v24, %v1797_v24  ;;  %v10282_v30 = vld [vmem:[%s12967_s1 + $0xd88] sm:$0xff]  }
 0x184   :  { %9399 = vmatpush3.bf16.msra.mxu0 %v10245_v31  ;;  %7302 = vmatprep.mubr.bf16.mxu0 %v1790_v18  ;;  %v10283_v31 = vld [vmem:[%s12967_s1 + $0xd50] sm:$0xff]   ;;  %v10320_v18 = vld [vmem:[%s12967_s1 + $0xe58] sm:$0xff]  }
 0x185   :  { %7263 = vmatmul.mubr.bf16.vlgmr.msra.gmra.mrb[44].mxu1 %v1750_v33  ;;  %9400 = vmatprep.subr.bf16.mxu0 %v10247_v34  ;;  %v10285_v33 = vld [vmem:[%s12967_s1 + $0xd10] sm:$0xff]  }
 0x186   :  { %9421 = vmatpush3.bf16.msra.mxu1 %v10246_v32  ;;  %7342 = vmatprep.mubr.bf16.mxu1 %v1800_v22  ;;  %v10284_v32 = vld [vmem:[%s12967_s1 + $0xdd0] sm:$0xff]   ;;  %v10324_v22 = vld [vmem:[%s12967_s1 + $0xe60] sm:$0xff]  }
 0x187   :  { %9422 = vmatprep.subr.bf16.mxu1 %v10248_v35  ;;  %v10286_v34 = vld [vmem:[%s12967_s1 + $0xd90] sm:$0xff]   ;;  %v10287_v35 = vld [vmem:[%s12967_s1 + $0xd58] sm:$0xff]  }
 0x188   :  { %9401 = vmatpush3.bf16.msra.mxu0 %v10249_v36  ;;  %v10288_v36 = vld [vmem:[%s12967_s1 + $0xdd8] sm:$0xff]  }
 0x189   :  { %9402 = vmatprep.subr.bf16.mxu0 %v10251_v38  ;;  %v10290_v38 = vld [vmem:[%s12967_s1 + $0xd98] sm:$0xff]  }
 0x18a   :  { %9423 = vmatpush3.bf16.msra.mxu1 %v10250_v37  ;;  %v10289_v37 = vld [vmem:[%s12967_s1 + $0xd18] sm:$0xff]  }
 0x18b   :  { %9424 = vmatprep.subr.bf16.mxu1 %v10252_v39  ;;  %v10291_v39 = vld [vmem:[%s12967_s1 + $0xd60] sm:$0xff]  }
 0x18c   :  { %9403 = vmatpush3.bf16.msra.mxu0 %v10253_v40  ;;  %v10292_v40 = vld [vmem:[%s12967_s1 + $0xde0] sm:$0xff]  }
 0x18d   :  { %9404 = vmatprep.subr.bf16.mxu0 %v10255_v43  ;;  %v10294_v43 = vld [vmem:[%s12967_s1 + $0xda0] sm:$0xff]  }
 0x18e   :  { %9425 = vmatpush3.bf16.msra.mxu1 %v10254_v42  ;;  %v10293_v42 = vld [vmem:[%s12967_s1 + $0xd20] sm:$0xff]  }
 0x18f   :  { %9426 = vmatprep.subr.bf16.mxu1 %v10256_v44  ;;  %v10295_v44 = vld [vmem:[%s12967_s1 + $0xd68] sm:$0xff]  }
 0x190   :  { %9405 = vmatpush3.bf16.msra.mxu0 %v10257_v45  ;;  %v10296_v45 = vld [vmem:[%s12967_s1 + $0xde8] sm:$0xff]  }
 0x191   :  { %9406 = vmatprep.subr.bf16.mxu0 %v10259_v47  ;;  %v10298_v47 = vld [vmem:[%s12967_s1 + $0xda8] sm:$0xff]  }
 0x192   :  { %9427 = vmatpush3.bf16.msra.mxu1 %v10258_v46  ;;  %v10297_v46 = vld [vmem:[%s12967_s1 + $0xd28] sm:$0xff]  }
 0x193   :  { %9428 = vmatprep.subr.bf16.mxu1 %v10260_v48  ;;  %v10299_v48 = vld [vmem:[%s12967_s1 + $0xd70] sm:$0xff]  }
 0x194   :  { %9407 = vmatpush3.bf16.msra.mxu0 %v10261_v49 }
 0x195   :  { %9408 = vmatprep.subr.bf16.mxu0 %v10263_v51 }
 0x196   :  { %9429 = vmatpush3.bf16.msra.mxu1 %v10262_v50  ;;  %v9106_v56 = vpop.f32.mrb[20].mxu0  ;;  %v10300_v50 = vld [vmem:[%s12967_s1 + $0xdf0] sm:$0xff]  }
 0x197   :  { %v9107_v58 = vpop.f32.mrb[21].mxu0  ;;  %9430 = vmatprep.subr.bf16.mxu1 %v10264_v52  ;;  %v10301_v52 = vld [vmem:[%s12967_s1 + $0xd30] sm:$0xff]  }
 0x198   :  { %v9128_v60 = vpop.f32.mrb[20].mxu1  ;;  %v9108_v61 = vadd.f32 %v9107_v58, %v9106_v56  ;;  %v9109_v62 = vpop.f32.mrb[22].mxu0  ;;  %9409 = vmatpush3.bf16.msra.mxu0 %v10265_v53  ;;  %v10302_v56 = vld [vmem:[%s12967_s1 + $0xdb0] sm:$0xff]  }
 0x199   :  { %v9129_v0 = vpop.f32.mrb[21].mxu1  ;;  %v9110_v1 = vpop.f32.mrb[23].mxu0  ;;  %9410 = vmatprep.subr.bf16.mxu0 %v10267_v55 }
 0x19a   :  { %v6745_v4 = vadd.f32 %v9108_v61, %v11880_v26  ;;  %v9130_v5 = vadd.f32 %v9129_v0, %v9128_v60  ;;  %v9131_v6 = vpop.f32.mrb[22].mxu1  ;;  %9431 = vmatpush3.bf16.msra.mxu1 %v10266_v54  ;;  %v10279_v26 = vld [vmem:[%s12967_s1 + $0xd48] sm:$0xff]   ;;  %v10305_v1 = vld [vmem:[%s12967_s1 + $0xd38] sm:$0xff]  }
 0x19b   :  { %v9132_v10 = vpop.f32.mrb[23].mxu1  ;;  %9432 = vmatprep.subr.bf16.mxu1 %v10268_v57  ;;  %v10303_v57 = vld [vmem:[%s12967_s1 + $0xd78] sm:$0xff]   ;;  %v10309_v6 = vld [vmem:[%s12967_s1 + $0xec0] sm:$0xff]  }
 0x19c   :  { %v11985_v12 = vadd.f32 %v9130_v5, %v6745_v4  ;;  %9411 = vmatpush3.bf16.msra.mxu0 %v10269_v59  ;;  %v1783_v4 = vrot.slane %v11991_v15, %v10737_v41  ;;  %v10308_v5 = vld [vmem:[%s12967_s1 + $0xe40] sm:$0xff]   ;;  %v10312_v10 = vld [vmem:[%s12967_s1 + $0xe48] sm:$0xff]   ;;  %v10317_v15 = vld [vmem:[%s12967_s1 + $0xed0] sm:$0xff]  }
 0x19d   :  { %9412 = vmatprep.subr.bf16.mxu0 %v10271_v2 }
 0x19e   :  { %9433 = vmatpush3.bf16.msra.mxu1 %v10270_v63  ;;  %v10304_v63 = vld [vmem:[%s12967_s1 + $0xdf8] sm:$0xff]   ;;  %v1799_v9 = vcombine.high %v1783_v4, %v1783_v4 }
 0x19f   :  { %9434 = vmatprep.subr.bf16.mxu1 %v10272_v7  ;;  %v10310_v7 = vld [vmem:[%s12967_s1 + $0xe00] sm:$0xff]  }
 0x1a0   :  { %9413 = vmatpush3.bf16.msra.mxu0 %v10273_v11  ;;  %v10313_v11 = vld [vmem:[%s12967_s1 + $0xec8] sm:$0xff]  }
 0x1a1   :  { %9442 = vmatprep.subr.bf16.mxu0 %v10275_v17  ;;  %v10319_v17 = vld [vmem:[%s12967_s1 + $0xe90] sm:$0xff]  }
 0x1a2   :  { %9435 = vmatpush3.bf16.msra.mxu1 %v10274_v13  ;;  %v10315_v13 = vld [vmem:[%s12967_s1 + $0xe88] sm:$0xff]  }
 0x1a3   :  { %7303 = vmatmul.mubr.bf16.vlgmr.msra.gmra.mrb[48].mxu0 %v1776_v16  ;;  %9464 = vmatprep.subr.bf16.mxu1 %v10276_v19  ;;  %v10318_v16 = vld [vmem:[%s12967_s1 + $0xe10] sm:$0xff]   ;;  %v10321_v19 = vld [vmem:[%s12967_s1 + $0xed8] sm:$0xff]  }
 0x1a4   :  { %9443 = vmatpush3.bf16.msra.mxu0 %v10277_v21  ;;  %7382 = vmatprep.mubr.bf16.mxu0 %v1797_v24  ;;  %v10323_v21 = vld [vmem:[%s12967_s1 + $0xe98] sm:$0xff]   ;;  %v10326_v24 = vld [vmem:[%s12967_s1 + $0xe20] sm:$0xff]  }
 0x1a5   :  { %7343 = vmatmul.mubr.bf16.vlgmr.msra.gmra.mrb[48].mxu1 %v1798_v25  ;;  %9444 = vmatprep.subr.bf16.mxu0 %v10279_v26  ;;  %v10327_v25 = vld [vmem:[%s12967_s1 + $0xea0] sm:$0xff]   ;;  %v10328_v26 = vld [vmem:[%s12967_s1 + $0xe68] sm:$0xff]  }
 0x1a6   :  { %9465 = vmatpush3.bf16.msra.mxu1 %v10278_v23  ;;  %7422 = vmatprep.mubr.bf16.mxu1 %v1801_v28  ;;  %v10325_v23 = vld [vmem:[%s12967_s1 + $0xee0] sm:$0xff]   ;;  %v10330_v28 = vld [vmem:[%s12967_s1 + $0xe28] sm:$0xff]  }
 0x1a7   :  { %9466 = vmatprep.subr.bf16.mxu1 %v10280_v27  ;;  %v10329_v27 = vld [vmem:[%s12967_s1 + $0xee8] sm:$0xff]  }
 0x1a8   :  { %9445 = vmatpush3.bf16.msra.mxu0 %v10281_v29  ;;  %v10331_v29 = vld [vmem:[%s12967_s1 + $0xea8] sm:$0xff]  }
 0x1a9   :  { %9446 = vmatprep.subr.bf16.mxu0 %v10283_v31 }
 0x1aa   :  { %9467 = vmatpush3.bf16.msra.mxu1 %v10282_v30  ;;  %v10332_v30 = vld [vmem:[%s12967_s1 + $0xe70] sm:$0xff]  }
 0x1ab   :  { %9468 = vmatprep.subr.bf16.mxu1 %v10284_v32  ;;  %v10333_v32 = vld [vmem:[%s12967_s1 + $0xef0] sm:$0xff]  }
 0x1ac   :  { %9447 = vmatpush3.bf16.msra.mxu0 %v10285_v33 }
 0x1ad   :  { %9448 = vmatprep.subr.bf16.mxu0 %v10287_v35 }
 0x1ae   :  { %9469 = vmatpush3.bf16.msra.mxu1 %v10286_v34  ;;  %v10334_v34 = vld [vmem:[%s12967_s1 + $0xe30] sm:$0xff]  }
 0x1af   :  { %9470 = vmatprep.subr.bf16.mxu1 %v10288_v36 }
 0x1b0   :  { %9449 = vmatpush3.bf16.msra.mxu0 %v10289_v37 }
 0x1b1   :  { %9450 = vmatprep.subr.bf16.mxu0 %v10291_v39 }
 0x1b2   :  { %9471 = vmatpush3.bf16.msra.mxu1 %v10290_v38  ;;  %v10335_v38 = vld [vmem:[%s12967_s1 + $0xeb0] sm:$0xff]  }
 0x1b3   :  { %9472 = vmatprep.subr.bf16.mxu1 %v10292_v40 }
 0x1b4   :  { %9451 = vmatpush3.bf16.msra.mxu0 %v10293_v42  ;;  %v10336_v42 = vld [vmem:[%s12967_s1 + $0xe78] sm:$0xff]  }
 0x1b5   :  { %9452 = vmatprep.subr.bf16.mxu0 %v10295_v44 }
 0x1b6   :  { %9473 = vmatpush3.bf16.msra.mxu1 %v10294_v43  ;;  %v9150_v49 = vpop.f32.mrb[24].mxu0  ;;  %v10337_v43 = vld [vmem:[%s12967_s1 + $0xef8] sm:$0xff]  }
 0x1b7   :  { %v9151_v51 = vpop.f32.mrb[25].mxu0  ;;  %9474 = vmatprep.subr.bf16.mxu1 %v10296_v45 }
 0x1b8   :  { %v9172_v53 = vpop.f32.mrb[24].mxu1  ;;  %v9152_v54 = vadd.f32 %v9151_v51, %v9150_v49  ;;  %v9153_v55 = vpop.f32.mrb[26].mxu0  ;;  %9453 = vmatpush3.bf16.msra.mxu0 %v10297_v46  ;;  %v10338_v49 = vld [vmem:[%s12967_s1 + $0xe38] sm:$0xff]  }
 0x1b9   :  { %v9173_v58 = vpop.f32.mrb[25].mxu1  ;;  %v9154_v59 = vpop.f32.mrb[27].mxu0  ;;  %9454 = vmatprep.subr.bf16.mxu0 %v10299_v48 }
 0x1ba   :  { %v6825_v60 = vadd.f32 %v9152_v54, %v11985_v12  ;;  %v9174_v61 = vadd.f32 %v9173_v58, %v9172_v53  ;;  %v9175_v62 = vpop.f32.mrb[26].mxu1  ;;  %9475 = vmatpush3.bf16.msra.mxu1 %v10298_v47  ;;  %v10314_v12 = vld [vmem:[%s12967_s1 + $0xe08] sm:$0xff]   ;;  %v29_v47 = vld [vmem:[%s12966_s0 + $0x38] sm:$0xff]  ;;  %v10341_v58 = vld [vmem:[%s12967_s1 + $0xfc0] sm:$0xff]  }
 0x1bb   :  { %v9176_v0 = vpop.f32.mrb[27].mxu1  ;;  %9476 = vmatprep.subr.bf16.mxu1 %v10300_v50  ;;  %v1809_v50 = vrot.slane %v29_v47, %v10737_v41  ;;  %v1802_v51 = vcombine.high %v29_v47, %v29_v47  ;;  %v10339_v53 = vld [vmem:[%s12967_s1 + $0xeb8] sm:$0xff]   ;;  %v10343_v62 = vld [vmem:[%s12967_s1 + $0xf80] sm:$0xff]  }
 0x1bc   :  { %v12092_v2 = vadd.f32 %v9174_v61, %v6825_v60  ;;  %9455 = vmatpush3.bf16.msra.mxu0 %v10301_v52  ;;  %v10342_v60 = vld [vmem:[%s12967_s1 + $0xf00] sm:$0xff]  }
 0x1bd   :  { %9456 = vmatprep.subr.bf16.mxu0 %v10303_v57  ;;  %v1817_v54 = vcombine.high %v1809_v50, %v1809_v50  ;;  %v1825_v55 = vrot.slane %v1809_v50, %v10737_v41  ;;  %v12207_v57 = vrot.slane %v1802_v51, %v10737_v41  ;;  %v10375_v47 = vld [vmem:[%s12967_s1 + $0x1000] sm:$0xff]   ;;  %v10377_v50 = vld [vmem:[%s12967_s1 + $0x1048] sm:$0xff]  }
 0x1be   :  { %9477 = vmatpush3.bf16.msra.mxu1 %v10302_v56  ;;  %v10340_v56 = vld [vmem:[%s12967_s1 + $0xf40] sm:$0xff]   ;;  %v10378_v51 = vld [vmem:[%s12967_s1 + $0x10c8] sm:$0xff]  }
 0x1bf   :  { %9478 = vmatprep.subr.bf16.mxu1 %v10304_v63  ;;  %v1839_v59 = vrot.slane %v1817_v54, %v10737_v41  ;;  %v1818_v61 = vcombine.high %v12207_v57, %v12207_v57  ;;  %v1847_v0 = vcombine.high %v1825_v55, %v1825_v55  ;;  %v10381_v54 = vld [vmem:[%s12967_s1 + $0x1050] sm:$0xff]  }
 0x1c0   :  { %9457 = vmatpush3.bf16.msra.mxu0 %v10305_v1  ;;  %v10344_v1 = vld [vmem:[%s12967_s1 + $0xf48] sm:$0xff]  }
 0x1c1   :  { %9486 = vmatprep.subr.bf16.mxu0 %v10308_v5  ;;  %v1849_v63 = vcombine.high %v1839_v59, %v1839_v59 }
 0x1c2   :  { %9479 = vmatpush3.bf16.msra.mxu1 %v10306_v3  ;;  %v10345_v3 = vld [vmem:[%s12967_s1 + $0xfc8] sm:$0xff]  }
 0x1c3   :  { %7383 = vmatmul.mubr.bf16.vlgmr.msra.gmra.mrb[52].mxu0 %v1783_v4  ;;  %9508 = vmatprep.subr.bf16.mxu1 %v10309_v6  ;;  %v10346_v4 = vld [vmem:[%s12967_s1 + $0xf08] sm:$0xff]  }
 0x1c4   :  { %9487 = vmatpush3.bf16.msra.mxu0 %v10310_v7  ;;  %7462 = vmatprep.mubr.bf16.mxu0 %v1839_v59  ;;  %v10347_v6 = vld [vmem:[%s12967_s1 + $0xf88] sm:$0xff]   ;;  %v10348_v7 = vld [vmem:[%s12967_s1 + $0xf50] sm:$0xff]   ;;  %v10386_v59 = vld [vmem:[%s12967_s1 + $0x10d8] sm:$0xff]  }
 0x1c5   :  { %7423 = vmatmul.mubr.bf16.vlgmr.msra.gmra.mrb[52].mxu1 %v1799_v9  ;;  %9488 = vmatprep.subr.bf16.mxu0 %v10312_v10  ;;  %v10350_v9 = vld [vmem:[%s12967_s1 + $0xf10] sm:$0xff]  }
 0x1c6   :  { %9509 = vmatpush3.bf16.msra.mxu1 %v10311_v8  ;;  %7502 = vmatprep.mubr.bf16.mxu1 %v1849_v63  ;;  %v10349_v8 = vld [vmem:[%s12967_s1 + $0xfd0] sm:$0xff]   ;;  %v10390_v63 = vld [vmem:[%s12967_s1 + $0x10e0] sm:$0xff]  }
 0x1c7   :  { %9510 = vmatprep.subr.bf16.mxu1 %v10313_v11  ;;  %v10351_v10 = vld [vmem:[%s12967_s1 + $0xf90] sm:$0xff]   ;;  %v10352_v11 = vld [vmem:[%s12967_s1 + $0xf58] sm:$0xff]  }
 0x1c8   :  { %9489 = vmatpush3.bf16.msra.mxu0 %v10314_v12  ;;  %v10353_v12 = vld [vmem:[%s12967_s1 + $0xfd8] sm:$0xff]  }
 0x1c9   :  { %9490 = vmatprep.subr.bf16.mxu0 %v10316_v14  ;;  %v10355_v14 = vld [vmem:[%s12967_s1 + $0xf98] sm:$0xff]  }
 0x1ca   :  { %9511 = vmatpush3.bf16.msra.mxu1 %v10315_v13  ;;  %v10354_v13 = vld [vmem:[%s12967_s1 + $0xf18] sm:$0xff]  }
 0x1cb   :  { %9512 = vmatprep.subr.bf16.mxu1 %v10317_v15  ;;  %v10356_v15 = vld [vmem:[%s12967_s1 + $0xf60] sm:$0xff]  }
 0x1cc   :  { %9491 = vmatpush3.bf16.msra.mxu0 %v10318_v16  ;;  %v10357_v16 = vld [vmem:[%s12967_s1 + $0xfe0] sm:$0xff]  }
 0x1cd   :  { %9492 = vmatprep.subr.bf16.mxu0 %v10320_v18  ;;  %v10359_v18 = vld [vmem:[%s12967_s1 + $0xfa0] sm:$0xff]  }
 0x1ce   :  { %9513 = vmatpush3.bf16.msra.mxu1 %v10319_v17  ;;  %v10358_v17 = vld [vmem:[%s12967_s1 + $0xf20] sm:$0xff]  }
 0x1cf   :  { %9514 = vmatprep.subr.bf16.mxu1 %v10321_v19  ;;  %v10360_v19 = vld [vmem:[%s12967_s1 + $0xf68] sm:$0xff]  }
 0x1d0   :  { %9493 = vmatpush3.bf16.msra.mxu0 %v10322_v20  ;;  %v10361_v20 = vld [vmem:[%s12967_s1 + $0xfe8] sm:$0xff]  }
 0x1d1   :  { %9494 = vmatprep.subr.bf16.mxu0 %v10324_v22  ;;  %v10363_v22 = vld [vmem:[%s12967_s1 + $0xfa8] sm:$0xff]  }
 0x1d2   :  { %9515 = vmatpush3.bf16.msra.mxu1 %v10323_v21  ;;  %v10362_v21 = vld [vmem:[%s12967_s1 + $0xf28] sm:$0xff]  }
 0x1d3   :  { %9516 = vmatprep.subr.bf16.mxu1 %v10325_v23  ;;  %v10364_v23 = vld [vmem:[%s12967_s1 + $0xf70] sm:$0xff]  }
 0x1d4   :  { %9495 = vmatpush3.bf16.msra.mxu0 %v10326_v24 }
 0x1d5   :  { %9496 = vmatprep.subr.bf16.mxu0 %v10328_v26 }
 0x1d6   :  { %9517 = vmatpush3.bf16.msra.mxu1 %v10327_v25  ;;  %v9194_v31 = vpop.f32.mrb[28].mxu0  ;;  %v10365_v25 = vld [vmem:[%s12967_s1 + $0xff0] sm:$0xff]  }
 0x1d7   :  { %v9195_v33 = vpop.f32.mrb[29].mxu0  ;;  %9518 = vmatprep.subr.bf16.mxu1 %v10329_v27  ;;  %v10366_v27 = vld [vmem:[%s12967_s1 + $0xf30] sm:$0xff]  }
 0x1d8   :  { %v9216_v35 = vpop.f32.mrb[28].mxu1  ;;  %v9196_v36 = vadd.f32 %v9195_v33, %v9194_v31  ;;  %v9197_v37 = vpop.f32.mrb[30].mxu0  ;;  %9497 = vmatpush3.bf16.msra.mxu0 %v10330_v28  ;;  %v10367_v31 = vld [vmem:[%s12967_s1 + $0xfb0] sm:$0xff]  }
 0x1d9   :  { %v9217_v39 = vpop.f32.mrb[29].mxu1  ;;  %v9198_v40 = vpop.f32.mrb[31].mxu0  ;;  %9498 = vmatprep.subr.bf16.mxu0 %v10332_v30 }
 0x1da   :  { %v6905_v44 = vadd.f32 %v9196_v36, %v12092_v2  ;;  %v9218_v45 = vadd.f32 %v9217_v39, %v9216_v35  ;;  %v9219_v46 = vpop.f32.mrb[30].mxu1  ;;  %9519 = vmatpush3.bf16.msra.mxu1 %v10331_v29  ;;  %v1846_v2 = vrot.slane %v1818_v61, %v10737_v41  ;;  %v10370_v40 = vld [vmem:[%s12967_s1 + $0xf38] sm:$0xff]  }
 0x1db   :  { %v9220_v48 = vpop.f32.mrb[31].mxu1  ;;  %9520 = vmatprep.subr.bf16.mxu1 %v10333_v32  ;;  %v10368_v32 = vld [vmem:[%s12967_s1 + $0xf78] sm:$0xff]   ;;  %v10374_v46 = vld [vmem:[%s12967_s1 + $0x10c0] sm:$0xff]  }
 0x1dc   :  { %v12197_v52 = vadd.f32 %v9218_v45, %v6905_v44  ;;  %9499 = vmatpush3.bf16.msra.mxu0 %v10334_v34  ;;  %v1850_v5 = vcombine.high %v1846_v2, %v1846_v2  ;;  %v1832_v44 = vrot.slane %v12207_v57, %v10737_v41  ;;  %v10373_v45 = vld [vmem:[%s12967_s1 + $0x1040] sm:$0xff]   ;;  %v10384_v57 = vld [vmem:[%s12967_s1 + $0x1090] sm:$0xff]   ;;  %v10388_v61 = vld [vmem:[%s12967_s1 + $0x1098] sm:$0xff]  }
 0x1dd   :  { %9500 = vmatprep.subr.bf16.mxu0 %v10336_v42  ;;  %v10376_v48 = vld [vmem:[%s12967_s1 + $0x1080] sm:$0xff]  }
 0x1de   :  { %9521 = vmatpush3.bf16.msra.mxu1 %v10335_v38  ;;  %v10369_v38 = vld [vmem:[%s12967_s1 + $0xff8] sm:$0xff]  }
 0x1df   :  { %9522 = vmatprep.subr.bf16.mxu1 %v10337_v43  ;;  %v10371_v43 = vld [vmem:[%s12967_s1 + $0xfb8] sm:$0xff]  }
 0x1e0   :  { %9501 = vmatpush3.bf16.msra.mxu0 %v10338_v49  ;;  %v1848_v49 = vcombine.high %v1832_v44, %v1832_v44 }
 0x1e1   :  { %9530 = vmatprep.subr.bf16.mxu0 %v10340_v56  ;;  %v10383_v56 = vld [vmem:[%s12967_s1 + $0x1010] sm:$0xff]  }
 0x1e2   :  { %9523 = vmatpush3.bf16.msra.mxu1 %v10339_v53  ;;  %v10380_v53 = vld [vmem:[%s12967_s1 + $0x1088] sm:$0xff]  }
 0x1e3   :  { %7463 = vmatmul.mubr.bf16.vlgmr.msra.gmra.mrb[56].mxu0 %v1825_v55  ;;  %9552 = vmatprep.subr.bf16.mxu1 %v10341_v58  ;;  %v10382_v55 = vld [vmem:[%s12967_s1 + $0x10d0] sm:$0xff]   ;;  %v10385_v58 = vld [vmem:[%s12967_s1 + $0x1058] sm:$0xff]  }
 0x1e4   :  { %9531 = vmatpush3.bf16.msra.mxu0 %v10342_v60  ;;  %7542 = vmatprep.mubr.bf16.mxu0 %v1846_v2  ;;  %v10387_v60 = vld [vmem:[%s12967_s1 + $0x1018] sm:$0xff]   ;;  %v10393_v2 = vld [vmem:[%s12967_s1 + $0x1068] sm:$0xff]  }
 0x1e5   :  { %7503 = vmatmul.mubr.bf16.vlgmr.msra.gmra.mrb[56].mxu1 %v1847_v0  ;;  %9532 = vmatprep.subr.bf16.mxu0 %v10344_v1  ;;  %v10391_v0 = vld [vmem:[%s12967_s1 + $0x1020] sm:$0xff]  }
 0x1e6   :  { %9553 = vmatpush3.bf16.msra.mxu1 %v10343_v62  ;;  %7582 = vmatprep.mubr.bf16.mxu1 %v1850_v5  ;;  %v10389_v62 = vld [vmem:[%s12967_s1 + $0x1060] sm:$0xff]   ;;  %v10396_v5 = vld [vmem:[%s12967_s1 + $0x10a8] sm:$0xff]  }
 0x1e7   :  { %9554 = vmatprep.subr.bf16.mxu1 %v10345_v3  ;;  %v10392_v1 = vld [vmem:[%s12967_s1 + $0x10a0] sm:$0xff]   ;;  %v10394_v3 = vld [vmem:[%s12967_s1 + $0x10e8] sm:$0xff]  }
 0x1e8   :  { %9533 = vmatpush3.bf16.msra.mxu0 %v10346_v4  ;;  %v10395_v4 = vld [vmem:[%s12967_s1 + $0x1028] sm:$0xff]  }
 0x1e9   :  { %9534 = vmatprep.subr.bf16.mxu0 %v10348_v7 }
 0x1ea   :  { %9555 = vmatpush3.bf16.msra.mxu1 %v10347_v6  ;;  %v10397_v6 = vld [vmem:[%s12967_s1 + $0x1070] sm:$0xff]  }
 0x1eb   :  { %9556 = vmatprep.subr.bf16.mxu1 %v10349_v8  ;;  %v10398_v8 = vld [vmem:[%s12967_s1 + $0x10f0] sm:$0xff]  }
 0x1ec   :  { %9535 = vmatpush3.bf16.msra.mxu0 %v10350_v9 }
 0x1ed   :  { %9536 = vmatprep.subr.bf16.mxu0 %v10352_v11 }
 0x1ee   :  { %9557 = vmatpush3.bf16.msra.mxu1 %v10351_v10  ;;  %v10399_v10 = vld [vmem:[%s12967_s1 + $0x1030] sm:$0xff]  }
 0x1ef   :  { %9558 = vmatprep.subr.bf16.mxu1 %v10353_v12 }
 0x1f0   :  { %9537 = vmatpush3.bf16.msra.mxu0 %v10354_v13 }
 0x1f1   :  { %9538 = vmatprep.subr.bf16.mxu0 %v10356_v15 }
 0x1f2   :  { %9559 = vmatpush3.bf16.msra.mxu1 %v10355_v14  ;;  %v10400_v14 = vld [vmem:[%s12967_s1 + $0x10b0] sm:$0xff]  }
 0x1f3   :  { %9560 = vmatprep.subr.bf16.mxu1 %v10357_v16 }
 0x1f4   :  { %9539 = vmatpush3.bf16.msra.mxu0 %v10358_v17  ;;  %v10401_v17 = vld [vmem:[%s12967_s1 + $0x1078] sm:$0xff]  }
 0x1f5   :  { %9540 = vmatprep.subr.bf16.mxu0 %v10360_v19 }
 0x1f6   :  { %9561 = vmatpush3.bf16.msra.mxu1 %v10359_v18  ;;  %v9238_v24 = vpop.f32.mrb[32].mxu0  ;;  %v10402_v18 = vld [vmem:[%s12967_s1 + $0x10f8] sm:$0xff]  }
 0x1f7   :  { %v9239_v26 = vpop.f32.mrb[33].mxu0  ;;  %9562 = vmatprep.subr.bf16.mxu1 %v10361_v20 }
 0x1f8   :  { %v9260_v28 = vpop.f32.mrb[32].mxu1  ;;  %v9240_v29 = vadd.f32 %v9239_v26, %v9238_v24  ;;  %v9241_v30 = vpop.f32.mrb[34].mxu0  ;;  %9541 = vmatpush3.bf16.msra.mxu0 %v10362_v21  ;;  %v30_v24 = vld [vmem:[%s12966_s0 + $0x40] sm:$0xff]  ;;  %v10404_v26 = vld [vmem:[%s12967_s1 + $0x10b8] sm:$0xff]  }
 0x1f9   :  { %v9261_v33 = vpop.f32.mrb[33].mxu1  ;;  %v9242_v34 = vpop.f32.mrb[35].mxu0  ;;  %9542 = vmatprep.subr.bf16.mxu0 %v10364_v23 }
 0x1fa   :  { %v6985_v35 = vadd.f32 %v9240_v29, %v12197_v52  ;;  %v9262_v36 = vadd.f32 %v9261_v33, %v9260_v28  ;;  %v9263_v37 = vpop.f32.mrb[34].mxu1  ;;  %9563 = vmatpush3.bf16.msra.mxu1 %v10363_v22  ;;  %v10379_v52 = vld [vmem:[%s12967_s1 + $0x1008] sm:$0xff]   ;;  %v10403_v22 = vld [vmem:[%s12967_s1 + $0x1038] sm:$0xff]   ;;  %v1851_v28 = vcombine.high %v30_v24, %v30_v24  ;;  %v10405_v29 = vld [vmem:[%s12967_s1 + $0x1140] sm:$0xff]  }
 0x1fb   :  { %v9264_v39 = vpop.f32.mrb[35].mxu1  ;;  %9564 = vmatprep.subr.bf16.mxu1 %v10365_v25  ;;  %v10407_v34 = vld [vmem:[%s12967_s1 + $0x1100] sm:$0xff]  }
 0x1fc   :  { %v12304_v42 = vadd.f32 %v9262_v36, %v6985_v35  ;;  %9543 = vmatpush3.bf16.msra.mxu0 %v10366_v27  ;;  %v1858_v27 = vrot.slane %v30_v24, %v10737_v41  ;;  %v12422_v33 = vrot.slane %v1851_v28, %v10737_v41  ;;  %v10408_v36 = vld [vmem:[%s12967_s1 + $0x1180] sm:$0xff]   ;;  %v10409_v39 = vld [vmem:[%s12967_s1 + $0x1148] sm:$0xff]  }
 0x1fd   :  { %9544 = vmatprep.subr.bf16.mxu0 %v10368_v32  ;;  %v10406_v32 = vld [vmem:[%s12967_s1 + $0x11c0] sm:$0xff]   ;;  %v10445_v28 = vld [vmem:[%s12967_s1 + $0x1288] sm:$0xff]  }
 0x1fe   :  { %9565 = vmatpush3.bf16.msra.mxu1 %v10367_v31  ;;  %v1866_v30 = vcombine.high %v1858_v27, %v1858_v27  ;;  %v1874_v31 = vrot.slane %v1858_v27, %v10737_v41  ;;  %v1867_v37 = vcombine.high %v12422_v33, %v12422_v33  ;;  %v10444_v27 = vld [vmem:[%s12967_s1 + $0x1208] sm:$0xff]  }
 0x1ff   :  { %9566 = vmatprep.subr.bf16.mxu1 %v10369_v38 }
 0x200   :  { %9545 = vmatpush3.bf16.msra.mxu0 %v10370_v40  ;;  %v1888_v35 = vrot.slane %v1866_v30, %v10737_v41  ;;  %v1896_v38 = vcombine.high %v1874_v31, %v1874_v31  ;;  %v10447_v30 = vld [vmem:[%s12967_s1 + $0x12d0] sm:$0xff]  }
 0x201   :  { %9574 = vmatprep.subr.bf16.mxu0 %v10373_v45  ;;  %v10412_v45 = vld [vmem:[%s12967_s1 + $0x1188] sm:$0xff]  }
 0x202   :  { %9567 = vmatpush3.bf16.msra.mxu1 %v10371_v43  ;;  %v1898_v40 = vcombine.high %v1888_v35, %v1888_v35  ;;  %v1895_v43 = vrot.slane %v1867_v37, %v10737_v41  ;;  %v10454_v37 = vld [vmem:[%s12967_s1 + $0x1260] sm:$0xff]  }
 0x203   :  { %7543 = vmatmul.mubr.bf16.vlgmr.msra.gmra.mrb[60].mxu0 %v1832_v44  ;;  %9596 = vmatprep.subr.bf16.mxu1 %v10374_v46  ;;  %v10411_v44 = vld [vmem:[%s12967_s1 + $0x1108] sm:$0xff]  }
 0x204   :  { %9575 = vmatpush3.bf16.msra.mxu0 %v10375_v47  ;;  %7622 = vmatprep.mubr.bf16.mxu0 %v1888_v35  ;;  %v1899_v46 = vcombine.high %v1895_v43, %v1895_v43  ;;  %v10413_v47 = vld [vmem:[%s12967_s1 + $0x1150] sm:$0xff]   ;;  %v10452_v35 = vld [vmem:[%s12967_s1 + $0x1218] sm:$0xff]  }
 0x205   :  { %7583 = vmatmul.mubr.bf16.vlgmr.msra.gmra.mrb[60].mxu1 %v1848_v49  ;;  %9576 = vmatprep.subr.bf16.mxu0 %v10377_v50  ;;  %v10415_v49 = vld [vmem:[%s12967_s1 + $0x1110] sm:$0xff]  }
 0x206   :  { %9597 = vmatpush3.bf16.msra.mxu1 %v10376_v48  ;;  %7662 = vmatprep.mubr.bf16.mxu1 %v1898_v40  ;;  %v10414_v48 = vld [vmem:[%s12967_s1 + $0x11d0] sm:$0xff]   ;;  %v10457_v40 = vld [vmem:[%s12967_s1 + $0x12a0] sm:$0xff]  }
 0x207   :  { %9598 = vmatprep.subr.bf16.mxu1 %v10378_v51  ;;  %v10416_v50 = vld [vmem:[%s12967_s1 + $0x1190] sm:$0xff]   ;;  %v10417_v51 = vld [vmem:[%s12967_s1 + $0x1158] sm:$0xff]  }
 0x208   :  { %9577 = vmatpush3.bf16.msra.mxu0 %v10379_v52  ;;  %v10418_v52 = vld [vmem:[%s12967_s1 + $0x11d8] sm:$0xff]  }
 0x209   :  { %9578 = vmatprep.subr.bf16.mxu0 %v10381_v54  ;;  %v10420_v54 = vld [vmem:[%s12967_s1 + $0x1198] sm:$0xff]  }
 0x20a   :  { %9599 = vmatpush3.bf16.msra.mxu1 %v10380_v53  ;;  %v10419_v53 = vld [vmem:[%s12967_s1 + $0x1118] sm:$0xff]  }
 0x20b   :  { %9600 = vmatprep.subr.bf16.mxu1 %v10382_v55  ;;  %v10421_v55 = vld [vmem:[%s12967_s1 + $0x1160] sm:$0xff]  }
 0x20c   :  { %9579 = vmatpush3.bf16.msra.mxu0 %v10383_v56  ;;  %v10422_v56 = vld [vmem:[%s12967_s1 + $0x11e0] sm:$0xff]  }
 0x20d   :  { %9580 = vmatprep.subr.bf16.mxu0 %v10385_v58  ;;  %v10424_v58 = vld [vmem:[%s12967_s1 + $0x11a0] sm:$0xff]  }
 0x20e   :  { %9601 = vmatpush3.bf16.msra.mxu1 %v10384_v57  ;;  %v10423_v57 = vld [vmem:[%s12967_s1 + $0x1120] sm:$0xff]  }
 0x20f   :  { %9602 = vmatprep.subr.bf16.mxu1 %v10386_v59  ;;  %v10425_v59 = vld [vmem:[%s12967_s1 + $0x1168] sm:$0xff]  }
 0x210   :  { %9581 = vmatpush3.bf16.msra.mxu0 %v10387_v60  ;;  %v10426_v60 = vld [vmem:[%s12967_s1 + $0x11e8] sm:$0xff]  }
 0x211   :  { %9582 = vmatprep.subr.bf16.mxu0 %v10389_v62  ;;  %v10428_v62 = vld [vmem:[%s12967_s1 + $0x11a8] sm:$0xff]  }
 0x212   :  { %9603 = vmatpush3.bf16.msra.mxu1 %v10388_v61  ;;  %v10427_v61 = vld [vmem:[%s12967_s1 + $0x1128] sm:$0xff]  }
 0x213   :  { %9604 = vmatprep.subr.bf16.mxu1 %v10390_v63  ;;  %v10429_v63 = vld [vmem:[%s12967_s1 + $0x1170] sm:$0xff]  }
 0x214   :  { %9583 = vmatpush3.bf16.msra.mxu0 %v10391_v0 }
 0x215   :  { %9584 = vmatprep.subr.bf16.mxu0 %v10393_v2 }
 0x216   :  { %9605 = vmatpush3.bf16.msra.mxu1 %v10392_v1  ;;  %v9282_v7 = vpop.f32.mrb[36].mxu0  ;;  %v10430_v1 = vld [vmem:[%s12967_s1 + $0x11f0] sm:$0xff]  }
 0x217   :  { %v9283_v9 = vpop.f32.mrb[37].mxu0  ;;  %9606 = vmatprep.subr.bf16.mxu1 %v10394_v3  ;;  %v10431_v3 = vld [vmem:[%s12967_s1 + $0x1130] sm:$0xff]  }
 0x218   :  { %v9304_v11 = vpop.f32.mrb[36].mxu1  ;;  %v9284_v12 = vadd.f32 %v9283_v9, %v9282_v7  ;;  %v9285_v13 = vpop.f32.mrb[38].mxu0  ;;  %9585 = vmatpush3.bf16.msra.mxu0 %v10395_v4  ;;  %v10432_v7 = vld [vmem:[%s12967_s1 + $0x11b0] sm:$0xff]  }
 0x219   :  { %v9305_v15 = vpop.f32.mrb[37].mxu1  ;;  %v9286_v16 = vpop.f32.mrb[39].mxu0  ;;  %9586 = vmatprep.subr.bf16.mxu0 %v10397_v6 }
 0x21a   :  { %v7065_v19 = vadd.f32 %v9284_v12, %v12304_v42  ;;  %v9306_v20 = vadd.f32 %v9305_v15, %v9304_v11  ;;  %v9307_v21 = vpop.f32.mrb[38].mxu1  ;;  %9607 = vmatpush3.bf16.msra.mxu1 %v10396_v5  ;;  %v10410_v42 = vld [vmem:[%s12967_s1 + $0x11c8] sm:$0xff]   ;;  %v10435_v16 = vld [vmem:[%s12967_s1 + $0x1138] sm:$0xff]  }
 0x21b   :  { %v9308_v23 = vpop.f32.mrb[39].mxu1  ;;  %9608 = vmatprep.subr.bf16.mxu1 %v10398_v8  ;;  %v10433_v8 = vld [vmem:[%s12967_s1 + $0x1178] sm:$0xff]   ;;  %v10439_v21 = vld [vmem:[%s12967_s1 + $0x12c0] sm:$0xff]  }
 0x21c   :  { %v12408_v25 = vadd.f32 %v9306_v20, %v7065_v19  ;;  %9587 = vmatpush3.bf16.msra.mxu0 %v10399_v10  ;;  %v1881_v19 = vrot.slane %v12422_v33, %v10737_v41  ;;  %v10438_v20 = vld [vmem:[%s12967_s1 + $0x1240] sm:$0xff]   ;;  %v10450_v33 = vld [vmem:[%s12967_s1 + $0x1258] sm:$0xff]  }
 0x21d   :  { %9588 = vmatprep.subr.bf16.mxu0 %v10401_v17  ;;  %v10441_v23 = vld [vmem:[%s12967_s1 + $0x1280] sm:$0xff]  }
 0x21e   :  { %9609 = vmatpush3.bf16.msra.mxu1 %v10400_v14  ;;  %v10434_v14 = vld [vmem:[%s12967_s1 + $0x11f8] sm:$0xff]   ;;  %v1897_v24 = vcombine.high %v1881_v19, %v1881_v19 }
 0x21f   :  { %9610 = vmatprep.subr.bf16.mxu1 %v10402_v18  ;;  %v10436_v18 = vld [vmem:[%s12967_s1 + $0x11b8] sm:$0xff]  }
 0x220   :  { %9589 = vmatpush3.bf16.msra.mxu0 %v10403_v22  ;;  %v10440_v22 = vld [vmem:[%s12967_s1 + $0x1200] sm:$0xff]  }
 0x221   :  { %9618 = vmatprep.subr.bf16.mxu0 %v10405_v29  ;;  %v10446_v29 = vld [vmem:[%s12967_s1 + $0x1250] sm:$0xff]  }
 0x222   :  { %9611 = vmatpush3.bf16.msra.mxu1 %v10404_v26  ;;  %v10443_v26 = vld [vmem:[%s12967_s1 + $0x12c8] sm:$0xff]  }
 0x223   :  { %7623 = vmatmul.mubr.bf16.vlgmr.msra.gmra.mrb[64].mxu0 %v1874_v31  ;;  %9640 = vmatprep.subr.bf16.mxu1 %v10406_v32  ;;  %v10448_v31 = vld [vmem:[%s12967_s1 + $0x1210] sm:$0xff]  }
 0x224   :  { %9619 = vmatpush3.bf16.msra.mxu0 %v10407_v34  ;;  %7702 = vmatprep.mubr.bf16.mxu0 %v1895_v43  ;;  %v10449_v32 = vld [vmem:[%s12967_s1 + $0x1290] sm:$0xff]   ;;  %v10451_v34 = vld [vmem:[%s12967_s1 + $0x12d8] sm:$0xff]   ;;  %v10459_v43 = vld [vmem:[%s12967_s1 + $0x12e8] sm:$0xff]  }
 0x225   :  { %7663 = vmatmul.mubr.bf16.vlgmr.msra.gmra.mrb[64].mxu1 %v1896_v38  ;;  %9620 = vmatprep.subr.bf16.mxu0 %v10409_v39  ;;  %v10455_v38 = vld [vmem:[%s12967_s1 + $0x12e0] sm:$0xff]  }
 0x226   :  { %9641 = vmatpush3.bf16.msra.mxu1 %v10408_v36  ;;  %7742 = vmatprep.mubr.bf16.mxu1 %v1899_v46  ;;  %v10453_v36 = vld [vmem:[%s12967_s1 + $0x1298] sm:$0xff]   ;;  %v10456_v39 = vld [vmem:[%s12967_s1 + $0x1220] sm:$0xff]   ;;  %v10462_v46 = vld [vmem:[%s12967_s1 + $0x1270] sm:$0xff]  }
 0x227   :  { %9642 = vmatprep.subr.bf16.mxu1 %v10410_v42  ;;  %v10458_v42 = vld [vmem:[%s12967_s1 + $0x1268] sm:$0xff]  }
 0x228   :  { %9621 = vmatpush3.bf16.msra.mxu0 %v10411_v44  ;;  %v10460_v44 = vld [vmem:[%s12967_s1 + $0x1228] sm:$0xff]  }
 0x229   :  { %9622 = vmatprep.subr.bf16.mxu0 %v10413_v47 }
 0x22a   :  { %9643 = vmatpush3.bf16.msra.mxu1 %v10412_v45  ;;  %v10461_v45 = vld [vmem:[%s12967_s1 + $0x12a8] sm:$0xff]  }
 0x22b   :  { %9644 = vmatprep.subr.bf16.mxu1 %v10414_v48  ;;  %v10463_v48 = vld [vmem:[%s12967_s1 + $0x12f0] sm:$0xff]  }
 0x22c   :  { %9623 = vmatpush3.bf16.msra.mxu0 %v10415_v49 }
 0x22d   :  { %9624 = vmatprep.subr.bf16.mxu0 %v10417_v51 }
 0x22e   :  { %9645 = vmatpush3.bf16.msra.mxu1 %v10416_v50  ;;  %v10464_v50 = vld [vmem:[%s12967_s1 + $0x1230] sm:$0xff]  }
 0x22f   :  { %9646 = vmatprep.subr.bf16.mxu1 %v10418_v52 }
 0x230   :  { %9625 = vmatpush3.bf16.msra.mxu0 %v10419_v53 }
 0x231   :  { %9626 = vmatprep.subr.bf16.mxu0 %v10421_v55 }
 0x232   :  { %9647 = vmatpush3.bf16.msra.mxu1 %v10420_v54 }
 0x233   :  { %9648 = vmatprep.subr.bf16.mxu1 %v10422_v56  ;;  %v10465_v56 = vld [vmem:[%s12967_s1 + $0x12b0] sm:$0xff]  }
 0x234   :  { %9627 = vmatpush3.bf16.msra.mxu0 %v10423_v57  ;;  %v10466_v57 = vld [vmem:[%s12967_s1 + $0x1278] sm:$0xff]  }
 0x235   :  { %9628 = vmatprep.subr.bf16.mxu0 %v10425_v59 }
 0x236   :  { %9649 = vmatpush3.bf16.msra.mxu1 %v10424_v58  ;;  %v9326_v0 = vpop.f32.mrb[40].mxu0 }
 0x237   :  { %v9327_v2 = vpop.f32.mrb[41].mxu0  ;;  %9650 = vmatprep.subr.bf16.mxu1 %v10426_v60 }
 0x238   :  { %v9348_v4 = vpop.f32.mrb[40].mxu1  ;;  %v9328_v5 = vadd.f32 %v9327_v2, %v9326_v0  ;;  %v9329_v6 = vpop.f32.mrb[42].mxu0  ;;  %9629 = vmatpush3.bf16.msra.mxu0 %v10427_v61  ;;  %v10467_v61 = vld [vmem:[%s12967_s1 + $0x12f8] sm:$0xff]  }
 0x239   :  { %v9349_v9 = vpop.f32.mrb[41].mxu1  ;;  %v9330_v10 = vpop.f32.mrb[43].mxu0  ;;  %9630 = vmatprep.subr.bf16.mxu0 %v10429_v63  ;;  %v10468_v63 = vld [vmem:[%s12967_s1 + $0x1238] sm:$0xff]  }
 0x23a   :  { %v7145_v11 = vadd.f32 %v9328_v5, %v12408_v25  ;;  %v9350_v12 = vadd.f32 %v9349_v9, %v9348_v4  ;;  %v9351_v13 = vpop.f32.mrb[42].mxu1  ;;  %9651 = vmatpush3.bf16.msra.mxu1 %v10428_v62  ;;  %v10442_v25 = vld [vmem:[%s12967_s1 + $0x1248] sm:$0xff]   ;;  %v10469_v5 = vld [vmem:[%s12967_s1 + $0x12b8] sm:$0xff]  }
 0x23b   :  { %v9352_v15 = vpop.f32.mrb[43].mxu1  ;;  %9652 = vmatprep.subr.bf16.mxu1 %v10430_v1  ;;  %v31_v1 = vld [vmem:[%s12966_s0 + $0x48] sm:$0xff] }
 0x23c   :  { %v12516_v17 = vadd.f32 %v9350_v12, %v7145_v11  ;;  %9631 = vmatpush3.bf16.msra.mxu0 %v10431_v3  ;;  %v1907_v2 = vrot.slane %v31_v1, %v10737_v41  ;;  %v10470_v3 = vld [vmem:[%s12967_s1 + $0x1340] sm:$0xff]   ;;  %v1900_v4 = vcombine.high %v31_v1, %v31_v1  ;;  %v10507_v1 = vld [vmem:[%s12967_s1 + $0x1448] sm:$0xff]  }
 0x23d   :  { %9632 = vmatprep.subr.bf16.mxu0 %v10433_v8  ;;  %v10471_v8 = vld [vmem:[%s12967_s1 + $0x13c0] sm:$0xff]  }
 0x23e   :  { %9653 = vmatpush3.bf16.msra.mxu1 %v10432_v7  ;;  %v1915_v6 = vcombine.high %v1907_v2, %v1907_v2  ;;  %v1923_v7 = vrot.slane %v1907_v2, %v10737_v41  ;;  %v12634_v9 = vrot.slane %v1900_v4, %v10737_v41  ;;  %v10472_v11 = vld [vmem:[%s12967_s1 + $0x1300] sm:$0xff]   ;;  %v10508_v2 = vld [vmem:[%s12967_s1 + $0x14c8] sm:$0xff]  }
 0x23f   :  { %9654 = vmatprep.subr.bf16.mxu1 %v10434_v14  ;;  %v10474_v14 = vld [vmem:[%s12967_s1 + $0x1348] sm:$0xff]  }
 0x240   :  { %9633 = vmatpush3.bf16.msra.mxu0 %v10435_v16  ;;  %v1937_v10 = vrot.slane %v1915_v6, %v10737_v41  ;;  %v1916_v12 = vcombine.high %v12634_v9, %v12634_v9  ;;  %v1945_v13 = vcombine.high %v1923_v7, %v1923_v7  ;;  %v10473_v16 = vld [vmem:[%s12967_s1 + $0x1380] sm:$0xff]   ;;  %v10510_v4 = vld [vmem:[%s12967_s1 + $0x1488] sm:$0xff]   ;;  %v10512_v6 = vld [vmem:[%s12967_s1 + $0x14d0] sm:$0xff]  }
 0x241   :  { %9662 = vmatprep.subr.bf16.mxu0 %v10438_v20 }
 0x242   :  { %9655 = vmatpush3.bf16.msra.mxu1 %v10436_v18  ;;  %v1947_v15 = vcombine.high %v1937_v10, %v1937_v10  ;;  %v10475_v18 = vld [vmem:[%s12967_s1 + $0x13c8] sm:$0xff]  }
 0x243   :  { %7703 = vmatmul.mubr.bf16.vlgmr.msra.gmra.mrb[68].mxu0 %v1881_v19  ;;  %9684 = vmatprep.subr.bf16.mxu1 %v10439_v21  ;;  %v10476_v19 = vld [vmem:[%s12967_s1 + $0x1308] sm:$0xff]   ;;  %v10478_v21 = vld [vmem:[%s12967_s1 + $0x1350] sm:$0xff]  }
 0x244   :  { %9663 = vmatpush3.bf16.msra.mxu0 %v10440_v22  ;;  %7782 = vmatprep.mubr.bf16.mxu0 %v1937_v10  ;;  %v10477_v22 = vld [vmem:[%s12967_s1 + $0x1388] sm:$0xff]   ;;  %v10516_v10 = vld [vmem:[%s12967_s1 + $0x14d8] sm:$0xff]  }
 0x245   :  { %7743 = vmatmul.mubr.bf16.vlgmr.msra.gmra.mrb[68].mxu1 %v1897_v24  ;;  %9664 = vmatprep.subr.bf16.mxu0 %v10442_v25  ;;  %v10480_v24 = vld [vmem:[%s12967_s1 + $0x1310] sm:$0xff]   ;;  %v10482_v25 = vld [vmem:[%s12967_s1 + $0x1358] sm:$0xff]  }
 0x246   :  { %9685 = vmatpush3.bf16.msra.mxu1 %v10441_v23  ;;  %7822 = vmatprep.mubr.bf16.mxu1 %v1947_v15  ;;  %v10479_v23 = vld [vmem:[%s12967_s1 + $0x13d0] sm:$0xff]   ;;  %v10521_v15 = vld [vmem:[%s12967_s1 + $0x1420] sm:$0xff]  }
 0x247   :  { %9686 = vmatprep.subr.bf16.mxu1 %v10443_v26  ;;  %v10481_v26 = vld [vmem:[%s12967_s1 + $0x1390] sm:$0xff]  }
 0x248   :  { %9665 = vmatpush3.bf16.msra.mxu0 %v10444_v27  ;;  %v10483_v27 = vld [vmem:[%s12967_s1 + $0x13d8] sm:$0xff]  }
 0x249   :  { %9666 = vmatprep.subr.bf16.mxu0 %v10446_v29  ;;  %v10486_v29 = vld [vmem:[%s12967_s1 + $0x1360] sm:$0xff]  }
 0x24a   :  { %9687 = vmatpush3.bf16.msra.mxu1 %v10445_v28  ;;  %v10484_v28 = vld [vmem:[%s12967_s1 + $0x1318] sm:$0xff]  }
 0x24b   :  { %9688 = vmatprep.subr.bf16.mxu1 %v10447_v30  ;;  %v10485_v30 = vld [vmem:[%s12967_s1 + $0x1398] sm:$0xff]  }
 0x24c   :  { %9667 = vmatpush3.bf16.msra.mxu0 %v10448_v31  ;;  %v10487_v31 = vld [vmem:[%s12967_s1 + $0x13e0] sm:$0xff]  }
 0x24d   :  { %9668 = vmatprep.subr.bf16.mxu0 %v10450_v33  ;;  %v10490_v33 = vld [vmem:[%s12967_s1 + $0x1368] sm:$0xff]  }
 0x24e   :  { %9689 = vmatpush3.bf16.msra.mxu1 %v10449_v32  ;;  %v10488_v32 = vld [vmem:[%s12967_s1 + $0x1320] sm:$0xff]  }
 0x24f   :  { %9690 = vmatprep.subr.bf16.mxu1 %v10451_v34  ;;  %v10489_v34 = vld [vmem:[%s12967_s1 + $0x13a0] sm:$0xff]  }
 0x250   :  { %9669 = vmatpush3.bf16.msra.mxu0 %v10452_v35  ;;  %v10491_v35 = vld [vmem:[%s12967_s1 + $0x13e8] sm:$0xff]  }
 0x251   :  { %9670 = vmatprep.subr.bf16.mxu0 %v10454_v37 }
 0x252   :  { %9691 = vmatpush3.bf16.msra.mxu1 %v10453_v36  ;;  %v10492_v36 = vld [vmem:[%s12967_s1 + $0x1328] sm:$0xff]  }
 0x253   :  { %9692 = vmatprep.subr.bf16.mxu1 %v10455_v38  ;;  %v10494_v38 = vld [vmem:[%s12967_s1 + $0x1370] sm:$0xff]  }
 0x254   :  { %9671 = vmatpush3.bf16.msra.mxu0 %v10456_v39 }
 0x255   :  { %9672 = vmatprep.subr.bf16.mxu0 %v10458_v42 }
 0x256   :  { %9693 = vmatpush3.bf16.msra.mxu1 %v10457_v40  ;;  %v9370_v47 = vpop.f32.mrb[44].mxu0  ;;  %v10493_v40 = vld [vmem:[%s12967_s1 + $0x13a8] sm:$0xff]  }
 0x257   :  { %v9371_v49 = vpop.f32.mrb[45].mxu0  ;;  %9694 = vmatprep.subr.bf16.mxu1 %v10459_v43 }
 0x258   :  { %v9392_v51 = vpop.f32.mrb[44].mxu1  ;;  %v9372_v52 = vadd.f32 %v9371_v49, %v9370_v47  ;;  %v9373_v53 = vpop.f32.mrb[46].mxu0  ;;  %9673 = vmatpush3.bf16.msra.mxu0 %v10460_v44  ;;  %v10497_v49 = vld [vmem:[%s12967_s1 + $0x13b0] sm:$0xff]  }
 0x259   :  { %v9393_v54 = vpop.f32.mrb[45].mxu1  ;;  %v9374_v55 = vpop.f32.mrb[47].mxu0  ;;  %9674 = vmatprep.subr.bf16.mxu0 %v10462_v46  ;;  %v10496_v46 = vld [vmem:[%s12967_s1 + $0x1330] sm:$0xff]   ;;  %v10498_v53 = vld [vmem:[%s12967_s1 + $0x1378] sm:$0xff]  }
 0x25a   :  { %v7225_v58 = vadd.f32 %v9372_v52, %v12516_v17  ;;  %v9394_v59 = vadd.f32 %v9393_v54, %v9392_v51  ;;  %v9395_v60 = vpop.f32.mrb[46].mxu1  ;;  %9695 = vmatpush3.bf16.msra.mxu1 %v10461_v45  ;;  %v1944_v17 = vrot.slane %v1916_v12, %v10737_v41  ;;  %v10495_v45 = vld [vmem:[%s12967_s1 + $0x13f0] sm:$0xff]   ;;  %v10499_v55 = vld [vmem:[%s12967_s1 + $0x13f8] sm:$0xff]  }
 0x25b   :  { %v9396_v62 = vpop.f32.mrb[47].mxu1  ;;  %9696 = vmatprep.subr.bf16.mxu1 %v10463_v48  ;;  %v10503_v60 = vld [vmem:[%s12967_s1 + $0x1440] sm:$0xff]   ;;  %v10518_v12 = vld [vmem:[%s12967_s1 + $0x1498] sm:$0xff]  }
 0x25c   :  { %v12617_v0 = vadd.f32 %v9394_v59, %v7225_v58  ;;  %9675 = vmatpush3.bf16.msra.mxu0 %v10464_v50  ;;  %v1948_v20 = vcombine.high %v1944_v17, %v1944_v17  ;;  %v10501_v58 = vld [vmem:[%s12967_s1 + $0x13b8] sm:$0xff]   ;;  %v1930_v59 = vrot.slane %v12634_v9, %v10737_v41  ;;  %v10505_v62 = vld [vmem:[%s12967_s1 + $0x1400] sm:$0xff]  }
 0x25d   :  { %9676 = vmatprep.subr.bf16.mxu0 %v10466_v57  ;;  %v10500_v57 = vld [vmem:[%s12967_s1 + $0x1338] sm:$0xff]  }
 0x25e   :  { %9697 = vmatpush3.bf16.msra.mxu1 %v10465_v56  ;;  %v10515_v9 = vld [vmem:[%s12967_s1 + $0x1458] sm:$0xff]  }
 0x25f   :  { %9698 = vmatprep.subr.bf16.mxu1 %v10467_v61  ;;  %v10504_v61 = vld [vmem:[%s12967_s1 + $0x14c0] sm:$0xff]  }
 0x260   :  { %9677 = vmatpush3.bf16.msra.mxu0 %v10468_v63  ;;  %v10506_v63 = vld [vmem:[%s12967_s1 + $0x1480] sm:$0xff]  }
 0x261   :  { %9706 = vmatprep.subr.bf16.mxu0 %v10470_v3  ;;  %v10509_v3 = vld [vmem:[%s12967_s1 + $0x1408] sm:$0xff]  }
 0x262   :  { %9699 = vmatpush3.bf16.msra.mxu1 %v10469_v5  ;;  %v10511_v5 = vld [vmem:[%s12967_s1 + $0x1450] sm:$0xff]  }
 0x263   :  { %9728 = vmatprep.subr.bf16.mxu1 %v10471_v8  ;;  %7783 = vmatmul.mubr.bf16.vlgmr.msra.gmra.mrb[72].mxu0 %v1923_v7  ;;  %v10513_v7 = vld [vmem:[%s12967_s1 + $0x1410] sm:$0xff]  }
 0x264   :  { %9707 = vmatpush3.bf16.msra.mxu0 %v10472_v11  ;;  %7862 = vmatprep.mubr.bf16.mxu0 %v1944_v17  ;;  %v10514_v8 = vld [vmem:[%s12967_s1 + $0x1490] sm:$0xff]   ;;  %v10517_v11 = vld [vmem:[%s12967_s1 + $0x1418] sm:$0xff]   ;;  %v10523_v17 = vld [vmem:[%s12967_s1 + $0x1468] sm:$0xff]  }
 0x265   :  { %7823 = vmatmul.mubr.bf16.vlgmr.msra.gmra.mrb[72].mxu1 %v1945_v13  ;;  %9708 = vmatprep.subr.bf16.mxu0 %v10474_v14  ;;  %v10519_v13 = vld [vmem:[%s12967_s1 + $0x1460] sm:$0xff]  }
 0x266   :  { %9729 = vmatpush3.bf16.msra.mxu1 %v10473_v16  ;;  %7902 = vmatprep.mubr.bf16.mxu1 %v1948_v20  ;;  %v10520_v14 = vld [vmem:[%s12967_s1 + $0x14e0] sm:$0xff]   ;;  %v10526_v20 = vld [vmem:[%s12967_s1 + $0x14a8] sm:$0xff]  }
 0x267   :  { %9730 = vmatprep.subr.bf16.mxu1 %v10475_v18  ;;  %v10522_v16 = vld [vmem:[%s12967_s1 + $0x14a0] sm:$0xff]   ;;  %v10524_v18 = vld [vmem:[%s12967_s1 + $0x14e8] sm:$0xff]  }
 0x268   :  { %9709 = vmatpush3.bf16.msra.mxu0 %v10476_v19  ;;  %v10525_v19 = vld [vmem:[%s12967_s1 + $0x1428] sm:$0xff]  }
 0x269   :  { %9710 = vmatprep.subr.bf16.mxu0 %v10478_v21 }
 0x26a   :  { %9731 = vmatpush3.bf16.msra.mxu1 %v10477_v22  ;;  %v10527_v22 = vld [vmem:[%s12967_s1 + $0x1470] sm:$0xff]  }
 0x26b   :  { %9732 = vmatprep.subr.bf16.mxu1 %v10479_v23 }
 0x26c   :  { %9711 = vmatpush3.bf16.msra.mxu0 %v10480_v24  ;;  %v10528_v24 = vld [vmem:[%s12967_s1 + $0x14f0] sm:$0xff]  }
 0x26d   :  { %9712 = vmatprep.subr.bf16.mxu0 %v10482_v25 }
 0x26e   :  { %9733 = vmatpush3.bf16.msra.mxu1 %v10481_v26 }
 0x26f   :  { %9734 = vmatprep.subr.bf16.mxu1 %v10483_v27 }
 0x270   :  { %9713 = vmatpush3.bf16.msra.mxu0 %v10484_v28 }
 0x271   :  { %9714 = vmatprep.subr.bf16.mxu0 %v10486_v29 }
 0x272   :  { %9735 = vmatpush3.bf16.msra.mxu1 %v10485_v30  ;;  %v10529_v30 = vld [vmem:[%s12967_s1 + $0x1430] sm:$0xff]  }
 0x273   :  { %9736 = vmatprep.subr.bf16.mxu1 %v10487_v31  ;;  %v10530_v31 = vld [vmem:[%s12967_s1 + $0x14b0] sm:$0xff]  }
 0x274   :  { %9715 = vmatpush3.bf16.msra.mxu0 %v10488_v32 }
 0x275   :  { %9716 = vmatprep.subr.bf16.mxu0 %v10490_v33 }
 0x276   :  { %v9414_v37 = vpop.f32.mrb[48].mxu0  ;;  %9737 = vmatpush3.bf16.msra.mxu1 %v10489_v34 }
 0x277   :  { %v9415_v39 = vpop.f32.mrb[49].mxu0  ;;  %9738 = vmatprep.subr.bf16.mxu1 %v10491_v35  ;;  %v10531_v35 = vld [vmem:[%s12967_s1 + $0x1478] sm:$0xff]  }
 0x278   :  { %v9436_v42 = vpop.f32.mrb[48].mxu1  ;;  %v9416_v43 = vadd.f32 %v9415_v39, %v9414_v37  ;;  %v9417_v44 = vpop.f32.mrb[50].mxu0  ;;  %9717 = vmatpush3.bf16.msra.mxu0 %v10492_v36  ;;  %v10532_v37 = vld [vmem:[%s12967_s1 + $0x14f8] sm:$0xff]  }
 0x279   :  { %v9437_v47 = vpop.f32.mrb[49].mxu1  ;;  %v9418_v48 = vpop.f32.mrb[51].mxu0  ;;  %9718 = vmatprep.subr.bf16.mxu0 %v10494_v38  ;;  %v10533_v39 = vld [vmem:[%s12967_s1 + $0x1438] sm:$0xff]  }
 0x27a   :  { %v7305_v50 = vadd.f32 %v9416_v43, %v12617_v0  ;;  %v9438_v51 = vadd.f32 %v9437_v47, %v9436_v42  ;;  %v9439_v52 = vpop.f32.mrb[50].mxu1  ;;  %9739 = vmatpush3.bf16.msra.mxu1 %v10493_v40  ;;  %v1946_v0 = vcombine.high %v1930_v59, %v1930_v59  ;;  %v32_v40 = vld [vmem:[%s12966_s0 + $0x50] sm:$0xff]  ;;  %v10535_v43 = vld [vmem:[%s12967_s1 + $0x1540] sm:$0xff]  }
 0x27b   :  { %v9440_v54 = vpop.f32.mrb[51].mxu1  ;;  %9740 = vmatprep.subr.bf16.mxu1 %v10495_v45  ;;  %v1956_v42 = vrot.slane %v32_v40, %v10737_v41  ;;  %v1949_v44 = vcombine.high %v32_v40, %v32_v40  ;;  %v10534_v45 = vld [vmem:[%s12967_s1 + $0x14b8] sm:$0xff]   ;;  %v10536_v48 = vld [vmem:[%s12967_s1 + $0x15c0] sm:$0xff]  }
 0x27c   :  { %v12725_v56 = vadd.f32 %v9438_v51, %v7305_v50  ;;  %9719 = vmatpush3.bf16.msra.mxu0 %v10496_v46  ;;  %v10537_v50 = vld [vmem:[%s12967_s1 + $0x1500] sm:$0xff]  }
 0x27d   :  { %9720 = vmatprep.subr.bf16.mxu0 %v10498_v53  ;;  %v1964_v46 = vcombine.high %v1956_v42, %v1956_v42  ;;  %v1972_v47 = vrot.slane %v1956_v42, %v10737_v41  ;;  %v10538_v52 = vld [vmem:[%s12967_s1 + $0x1580] sm:$0xff]  }
 0x27e   :  { %9741 = vmatpush3.bf16.msra.mxu1 %v10497_v49  ;;  %v12846_v49 = vrot.slane %v1949_v44, %v10737_v41 }
 0x27f   :  { %9742 = vmatprep.subr.bf16.mxu1 %v10499_v55  ;;  %v1986_v51 = vrot.slane %v1964_v46, %v10737_v41  ;;  %v1994_v54 = vcombine.high %v1972_v47, %v1972_v47  ;;  %v10539_v55 = vld [vmem:[%s12967_s1 + $0x1548] sm:$0xff]  }
 0x280   :  { %9721 = vmatpush3.bf16.msra.mxu0 %v10500_v57  ;;  %v1965_v53 = vcombine.high %v12846_v49, %v12846_v49  ;;  %v10540_v57 = vld [vmem:[%s12967_s1 + $0x15c8] sm:$0xff]  }
 0x281   :  { %9750 = vmatprep.subr.bf16.mxu0 %v10503_v60  ;;  %v10542_v60 = vld [vmem:[%s12967_s1 + $0x1588] sm:$0xff]  }
 0x282   :  { %9743 = vmatpush3.bf16.msra.mxu1 %v10501_v58  ;;  %v1993_v58 = vrot.slane %v1965_v53, %v10737_v41 }
 0x283   :  { %7863 = vmatmul.mubr.bf16.vlgmr.msra.gmra.mrb[76].mxu0 %v1930_v59  ;;  %9772 = vmatprep.subr.bf16.mxu1 %v10504_v61  ;;  %v10541_v59 = vld [vmem:[%s12967_s1 + $0x1508] sm:$0xff]  }
 0x284   :  { %9751 = vmatpush3.bf16.msra.mxu0 %v10505_v62  ;;  %7942 = vmatprep.mubr.bf16.mxu0 %v1986_v51  ;;  %v1997_v61 = vcombine.high %v1993_v58, %v1993_v58  ;;  %v10543_v62 = vld [vmem:[%s12967_s1 + $0x1550] sm:$0xff]  }
 0x285   :  { %7903 = vmatmul.mubr.bf16.vlgmr.msra.gmra.mrb[76].mxu1 %v1946_v0  ;;  %9752 = vmatprep.subr.bf16.mxu0 %v10507_v1  ;;  %v10545_v0 = vld [vmem:[%s12967_s1 + $0x1510] sm:$0xff]  }
 0x286   :  { %9773 = vmatpush3.bf16.msra.mxu1 %v10506_v63  ;;  %v10544_v63 = vld [vmem:[%s12967_s1 + $0x15d0] sm:$0xff]  }
 0x287   :  { %9774 = vmatprep.subr.bf16.mxu1 %v10508_v2  ;;  %v10546_v1 = vld [vmem:[%s12967_s1 + $0x1590] sm:$0xff]   ;;  %v10547_v2 = vld [vmem:[%s12967_s1 + $0x1558] sm:$0xff]  }
 0x288   :  { %9753 = vmatpush3.bf16.msra.mxu0 %v10509_v3  ;;  %v10548_v3 = vld [vmem:[%s12967_s1 + $0x15d8] sm:$0xff]  }
 0x289   :  { %9754 = vmatprep.subr.bf16.mxu0 %v10511_v5  ;;  %v10550_v5 = vld [vmem:[%s12967_s1 + $0x1598] sm:$0xff]  }
 0x28a   :  { %9775 = vmatpush3.bf16.msra.mxu1 %v10510_v4  ;;  %v10549_v4 = vld [vmem:[%s12967_s1 + $0x1518] sm:$0xff]  }
 0x28b   :  { %9776 = vmatprep.subr.bf16.mxu1 %v10512_v6  ;;  %v10551_v6 = vld [vmem:[%s12967_s1 + $0x1560] sm:$0xff]  }
 0x28c   :  { %9755 = vmatpush3.bf16.msra.mxu0 %v10513_v7  ;;  %v10552_v7 = vld [vmem:[%s12967_s1 + $0x15e0] sm:$0xff]  }
 0x28d   :  { %9756 = vmatprep.subr.bf16.mxu0 %v10515_v9  ;;  %v10554_v9 = vld [vmem:[%s12967_s1 + $0x15a0] sm:$0xff]  }
 0x28e   :  { %9777 = vmatpush3.bf16.msra.mxu1 %v10514_v8  ;;  %v10553_v8 = vld [vmem:[%s12967_s1 + $0x1520] sm:$0xff]  }
 0x28f   :  { %9778 = vmatprep.subr.bf16.mxu1 %v10516_v10  ;;  %v10555_v10 = vld [vmem:[%s12967_s1 + $0x1568] sm:$0xff]  }
 0x290   :  { %9757 = vmatpush3.bf16.msra.mxu0 %v10517_v11  ;;  %v10556_v11 = vld [vmem:[%s12967_s1 + $0x15e8] sm:$0xff]  }
 0x291   :  { %9758 = vmatprep.subr.bf16.mxu0 %v10519_v13 }
 0x292   :  { %9779 = vmatpush3.bf16.msra.mxu1 %v10518_v12  ;;  %v10557_v12 = vld [vmem:[%s12967_s1 + $0x1528] sm:$0xff]  }
 0x293   :  { %9780 = vmatprep.subr.bf16.mxu1 %v10520_v14  ;;  %v10558_v14 = vld [vmem:[%s12967_s1 + $0x15a8] sm:$0xff]  }
 0x294   :  { %9759 = vmatpush3.bf16.msra.mxu0 %v10521_v15 }
 0x295   :  { %9760 = vmatprep.subr.bf16.mxu0 %v10523_v17 }
 0x296   :  { %v9458_v21 = vpop.f32.mrb[52].mxu0  ;;  %9781 = vmatpush3.bf16.msra.mxu1 %v10522_v16  ;;  %v10559_v16 = vld [vmem:[%s12967_s1 + $0x1570] sm:$0xff]  }
 0x297   :  { %v9459_v23 = vpop.f32.mrb[53].mxu0  ;;  %9782 = vmatprep.subr.bf16.mxu1 %v10524_v18 }
 0x298   :  { %v9480_v25 = vpop.f32.mrb[52].mxu1  ;;  %v9460_v26 = vadd.f32 %v9459_v23, %v9458_v21  ;;  %v9461_v27 = vpop.f32.mrb[54].mxu0  ;;  %9761 = vmatpush3.bf16.msra.mxu0 %v10525_v19  ;;  %v10561_v21 = vld [vmem:[%s12967_s1 + $0x1530] sm:$0xff]  }
 0x299   :  { %v9481_v28 = vpop.f32.mrb[53].mxu1  ;;  %v9462_v29 = vpop.f32.mrb[55].mxu0  ;;  %9762 = vmatprep.subr.bf16.mxu0 %v10527_v22  ;;  %v10562_v27 = vld [vmem:[%s12967_s1 + $0x15b0] sm:$0xff]  }
 0x29a   :  { %v7385_v32 = vadd.f32 %v9460_v26, %v12725_v56  ;;  %v9482_v33 = vadd.f32 %v9481_v28, %v9480_v25  ;;  %v9483_v34 = vpop.f32.mrb[54].mxu1  ;;  %9783 = vmatpush3.bf16.msra.mxu1 %v10526_v20  ;;  %v1996_v56 = vcombine.high %v1986_v51, %v1986_v51  ;;  %v10560_v20 = vld [vmem:[%s12967_s1 + $0x15f0] sm:$0xff]   ;;  %v10563_v29 = vld [vmem:[%s12967_s1 + $0x1578] sm:$0xff]  }
 0x29b   :  { %v9484_v36 = vpop.f32.mrb[55].mxu1  ;;  %9784 = vmatprep.subr.bf16.mxu1 %v10528_v24 }
 0x29c   :  { %v12826_v38 = vadd.f32 %v9482_v33, %v7385_v32  ;;  %9763 = vmatpush3.bf16.msra.mxu0 %v10529_v30  ;;  %7982 = vmatprep.mubr.bf16.mxu1 %v1996_v56  ;;  %v10565_v32 = vld [vmem:[%s12967_s1 + $0x1538] sm:$0xff]   ;;  %v1979_v33 = vrot.slane %v12846_v49, %v10737_v41 }
 0x29d   :  { %9764 = vmatprep.subr.bf16.mxu0 %v10531_v35 }
 0x29e   :  { %9785 = vmatpush3.bf16.msra.mxu1 %v10530_v31  ;;  %v10564_v31 = vld [vmem:[%s12967_s1 + $0x15f8] sm:$0xff]  }
 0x29f   :  { %9786 = vmatprep.subr.bf16.mxu1 %v10532_v37 }
 0x2a0   :  { %9765 = vmatpush3.bf16.msra.mxu0 %v10533_v39 }
 0x2a1   :  { %9794 = vmatprep.subr.bf16.mxu0 %v10535_v43 }
 0x2a2   :  { %9787 = vmatpush3.bf16.msra.mxu1 %v10534_v45 }
 0x2a3   :  { %9816 = vmatprep.subr.bf16.mxu1 %v10536_v48  ;;  %7943 = vmatmul.mubr.bf16.vlgmr.msra.gmra.mrb[80].mxu0 %v1972_v47 }
 0x2a4   :  { %9795 = vmatpush3.bf16.msra.mxu0 %v10537_v50  ;;  %8022 = vmatprep.mubr.bf16.mxu0 %v1993_v58 }
 0x2a5   :  { %7983 = vmatmul.mubr.bf16.vlgmr.msra.gmra.mrb[80].mxu1 %v1994_v54  ;;  %9796 = vmatprep.subr.bf16.mxu0 %v10539_v55 }
 0x2a6   :  { %9817 = vmatpush3.bf16.msra.mxu1 %v10538_v52  ;;  %8062 = vmatprep.mubr.bf16.mxu1 %v1997_v61 }
 0x2a7   :  { %9818 = vmatprep.subr.bf16.mxu1 %v10540_v57 }
 0x2a8   :  { %9797 = vmatpush3.bf16.msra.mxu0 %v10541_v59 }
 0x2a9   :  { %9798 = vmatprep.subr.bf16.mxu0 %v10543_v62 }
 0x2aa   :  { %9819 = vmatpush3.bf16.msra.mxu1 %v10542_v60 }
 0x2ab   :  { %9820 = vmatprep.subr.bf16.mxu1 %v10544_v63 }
 0x2ac   :  { %9799 = vmatpush3.bf16.msra.mxu0 %v10545_v0 }
 0x2ad   :  { %9800 = vmatprep.subr.bf16.mxu0 %v10547_v2 }
 0x2ae   :  { %9821 = vmatpush3.bf16.msra.mxu1 %v10546_v1 }
 0x2af   :  { %9822 = vmatprep.subr.bf16.mxu1 %v10548_v3 }
 0x2b0   :  { %9801 = vmatpush3.bf16.msra.mxu0 %v10549_v4 }
 0x2b1   :  { %9802 = vmatprep.subr.bf16.mxu0 %v10551_v6 }
 0x2b2   :  { %9823 = vmatpush3.bf16.msra.mxu1 %v10550_v5 }
 0x2b3   :  { %9824 = vmatprep.subr.bf16.mxu1 %v10552_v7 }
 0x2b4   :  { %9803 = vmatpush3.bf16.msra.mxu0 %v10553_v8 }
 0x2b5   :  { %9804 = vmatprep.subr.bf16.mxu0 %v10555_v10 }
 0x2b6   :  { %v9502_v13 = vpop.f32.mrb[56].mxu0  ;;  %9825 = vmatpush3.bf16.msra.mxu1 %v10554_v9 }
 0x2b7   :  { %v9503_v15 = vpop.f32.mrb[57].mxu0  ;;  %9826 = vmatprep.subr.bf16.mxu1 %v10556_v11 }
 0x2b8   :  { %v9524_v17 = vpop.f32.mrb[56].mxu1  ;;  %v9504_v18 = vadd.f32 %v9503_v15, %v9502_v13  ;;  %v9505_v19 = vpop.f32.mrb[58].mxu0  ;;  %9805 = vmatpush3.bf16.msra.mxu0 %v10557_v12 }
 0x2b9   :  { %v9525_v22 = vpop.f32.mrb[57].mxu1  ;;  %v9506_v23 = vpop.f32.mrb[59].mxu0  ;;  %9806 = vmatprep.subr.bf16.mxu0 %v10559_v16 }
 0x2ba   :  { %v7465_v24 = vadd.f32 %v9504_v18, %v12826_v38  ;;  %v9526_v25 = vadd.f32 %v9525_v22, %v9524_v17  ;;  %v9527_v26 = vpop.f32.mrb[58].mxu1  ;;  %9827 = vmatpush3.bf16.msra.mxu1 %v10558_v14 }
 0x2bb   :  { %v9528_v28 = vpop.f32.mrb[59].mxu1  ;;  %9828 = vmatprep.subr.bf16.mxu1 %v10560_v20 }
 0x2bc   :  { %v7505_v30 = vadd.f32 %v9526_v25, %v7465_v24  ;;  %9807 = vmatpush3.bf16.msra.mxu0 %v10561_v21 }
 0x2bd   :  { %9808 = vmatprep.subr.bf16.mxu0 %v10563_v29 }
 0x2be   :  { %10 = vsyncpa [#allocation3], 0  ;;  %9829 = vmatpush3.bf16.msra.mxu1 %v10562_v27  ;;  %v10566_v34 = vld [vmem:[%s12967_s1 + $0x15b8] sm:$0xff]   ;;  %v1995_v35 = vcombine.high %v1979_v33, %v1979_v33  ;;  %v10568_v8 = vld [vmem:[%s12969_s3] sm:$0xff]   ;;  %v10599_v9 = vmov 0.0   ;;  %vm10600_vm0 = vmmov 0  }
 0x2bf   :  { %9830 = vmatprep.subr.bf16.mxu1 %v10564_v31  ;;  %v10569_v10 = vld [vmem:[%s12969_s3 + $0x8] sm:$0xff]   ;;  %vm8095_vm1 = vcmask 261120   ;;  %s10601_s15 = smov [#allocation2]   ;;  %vm8145_vm2 = vcmask 74752  }
 0x2c0   :  { %9809 = vmatpush3.bf16.msra.mxu0 %v10565_v32  ;;  %s8153_s16 = sshll.u32 %s10601_s15, 4  ;;  %s8154_s16 = int_to_ptr.vmem [resolvable:$true] %s8153_s16 }
 0x2c1   :  { %9841 = vmatprep.subr.bf16.mxu0 %v10599_v9  ;;  %s10574_s17 = scalar_lea.vmem %s8154_s16, 32  ;;  %p10579_p1 = scmp.lt.s32.totalorder %s8154_s16, %s8154_s16 }
 0x2c2   :  { %9831 = vmatpush3.bf16.msra.mxu1 %v10566_v34  ;;  %p10575_p0 = scmp.ne.s32.totalorder %s8154_s16, %s10574_s17  ;;  %p10580_p2 = scmp.lt.s32.totalorder %s10574_s17, %s10574_s17 }
 0x2c3   :  { %8023 = vmatmul.mubr.bf16.vlgmr.msra.gmra.mrb[84].mxu0 %v1979_v33 }
 0x2c4   :  { %9842 = vmatpush3.bf16.msra.mxu0 %v10568_v8  ;;  %9845 = vmatprep.mubr.msk.bf16.mxu0 %vm10600_vm0, %v10599_v9  ;;  %p10581_p3 = por %p10580_p2, %p10579_p1 }
 0x2c5   :  { %8063 = vmatmul.mubr.bf16.vlgmr.msra.gmra.mrb[84].mxu1 %v1995_v35  ;;  %9843 = vmatprep.subr.bf16.mxu0 %v10599_v9 }
 0x2c6   :  { %p10582_p4 = pnand %p10581_p3, %p10575_p0 }
 0x2c8   :  { %9844 = vmatpush3.bf16.msra.mxu0 %v10569_v10 }
 0x2d6   :  { %v9546_v36 = vpop.f32.mrb[60].mxu0 }
 0x2d7   :  { %v9547_v37 = vpop.f32.mrb[61].mxu0 }
 0x2d8   :  { %v9568_v38 = vpop.f32.mrb[60].mxu1  ;;  %v9548_v39 = vadd.f32 %v9547_v37, %v9546_v36  ;;  %v9549_v40 = vpop.f32.mrb[62].mxu0 }
 0x2d9   :  { %v9569_v42 = vpop.f32.mrb[61].mxu1  ;;  %v9550_v43 = vpop.f32.mrb[63].mxu0 }
 0x2da   :  { %v7545_v41 = vadd.f32 %v9548_v39, %v7505_v30  ;;  %v9570_v44 = vadd.f32 %v9569_v42, %v9568_v38  ;;  %v9571_v45 = vpop.f32.mrb[62].mxu1 }
 0x2db   :  { %v9572_v46 = vpop.f32.mrb[63].mxu1 }
 0x2dc   :  { %v7585_v47 = vadd.f32 %v9570_v44, %v7545_v41 }
 0x2f6   :  { %v9590_v48 = vpop.f32.mrb[64].mxu0 }
 0x2f7   :  { %v9591_v49 = vpop.f32.mrb[65].mxu0 }
 0x2f8   :  { %v9612_v50 = vpop.f32.mrb[64].mxu1  ;;  %v9592_v51 = vadd.f32 %v9591_v49, %v9590_v48  ;;  %v9593_v52 = vpop.f32.mrb[66].mxu0 }
 0x2f9   :  { %v9613_v53 = vpop.f32.mrb[65].mxu1  ;;  %v9594_v54 = vpop.f32.mrb[67].mxu0 }
 0x2fa   :  { %v7625_v55 = vadd.f32 %v9592_v51, %v7585_v47  ;;  %v9614_v56 = vadd.f32 %v9613_v53, %v9612_v50  ;;  %v9615_v57 = vpop.f32.mrb[66].mxu1 }
 0x2fb   :  { %v9616_v58 = vpop.f32.mrb[67].mxu1 }
 0x2fc   :  { %v7665_v59 = vadd.f32 %v9614_v56, %v7625_v55 }
 0x316   :  { %v9634_v60 = vpop.f32.mrb[68].mxu0 }
 0x317   :  { %v9635_v61 = vpop.f32.mrb[69].mxu0 }
 0x318   :  { %v9656_v62 = vpop.f32.mrb[68].mxu1  ;;  %v9636_v63 = vadd.f32 %v9635_v61, %v9634_v60  ;;  %v9637_v0 = vpop.f32.mrb[70].mxu0  ;;  %v8866_v61 = vld [vmem:[%s12970_s4] ss:$0 sm:$0xff] }
 0x319   :  { %v9657_v1 = vpop.f32.mrb[69].mxu1  ;;  %v9638_v2 = vpop.f32.mrb[71].mxu0 }
 0x31a   :  { %v7705_v3 = vadd.f32 %v9636_v63, %v7665_v59  ;;  %v9658_v4 = vadd.f32 %v9657_v1, %v9656_v62  ;;  %v9659_v5 = vpop.f32.mrb[70].mxu1 }
 0x31b   :  { %v9660_v6 = vpop.f32.mrb[71].mxu1 }
 0x31c   :  { %v7745_v7 = vadd.f32 %v9658_v4, %v7705_v3 }
 0x336   :  { %v9678_v11 = vpop.f32.mrb[72].mxu0 }
 0x337   :  { %v9679_v12 = vpop.f32.mrb[73].mxu0 }
 0x338   :  { %v9700_v13 = vpop.f32.mrb[72].mxu1  ;;  %v9680_v14 = vadd.f32 %v9679_v12, %v9678_v11  ;;  %v9681_v15 = vpop.f32.mrb[74].mxu0 }
 0x339   :  { %v9701_v16 = vpop.f32.mrb[73].mxu1  ;;  %v9682_v17 = vpop.f32.mrb[75].mxu0 }
 0x33a   :  { %v7785_v18 = vadd.f32 %v9680_v14, %v7745_v7  ;;  %v9702_v19 = vadd.f32 %v9701_v16, %v9700_v13  ;;  %v9703_v20 = vpop.f32.mrb[74].mxu1 }
 0x33b   :  { %v9704_v21 = vpop.f32.mrb[75].mxu1 }
 0x33c   :  { %v7825_v22 = vadd.f32 %v9702_v19, %v7785_v18 }
 0x356   :  { %v9722_v23 = vpop.f32.mrb[76].mxu0 }
 0x357   :  { %v9723_v24 = vpop.f32.mrb[77].mxu0 }
 0x358   :  { %v9744_v25 = vpop.f32.mrb[76].mxu1  ;;  %v9724_v26 = vadd.f32 %v9723_v24, %v9722_v23  ;;  %v9725_v27 = vpop.f32.mrb[78].mxu0 }
 0x359   :  { %v9745_v28 = vpop.f32.mrb[77].mxu1  ;;  %v9726_v29 = vpop.f32.mrb[79].mxu0 }
 0x35a   :  { %v7865_v30 = vadd.f32 %v9724_v26, %v7825_v22  ;;  %v9746_v31 = vadd.f32 %v9745_v28, %v9744_v25  ;;  %v9747_v32 = vpop.f32.mrb[78].mxu1 }
 0x35b   :  { %v9748_v33 = vpop.f32.mrb[79].mxu1 }
 0x35c   :  { %v7905_v34 = vadd.f32 %v9746_v31, %v7865_v30 }
 0x376   :  { %v9766_v35 = vpop.f32.mrb[80].mxu0 }
 0x377   :  { %v9767_v36 = vpop.f32.mrb[81].mxu0 }
 0x378   :  { %v9788_v37 = vpop.f32.mrb[80].mxu1  ;;  %v9768_v38 = vadd.f32 %v9767_v36, %v9766_v35  ;;  %v9769_v39 = vpop.f32.mrb[82].mxu0 }
 0x379   :  { %v9789_v40 = vpop.f32.mrb[81].mxu1  ;;  %v9770_v42 = vpop.f32.mrb[83].mxu0 }
 0x37a   :  { %v7945_v43 = vadd.f32 %v9768_v38, %v7905_v34  ;;  %v9790_v41 = vadd.f32 %v9789_v40, %v9788_v37  ;;  %v9791_v44 = vpop.f32.mrb[82].mxu1 }
 0x37b   :  { %v9792_v45 = vpop.f32.mrb[83].mxu1 }
 0x37c   :  { %v7985_v46 = vadd.f32 %v9790_v41, %v7945_v43 }
 0x396   :  { %v9810_v47 = vpop.f32.mrb[84].mxu0 }
 0x397   :  { %v9811_v48 = vpop.f32.mrb[85].mxu0 }
 0x398   :  { %v9832_v49 = vpop.f32.mrb[84].mxu1  ;;  %v9812_v50 = vadd.f32 %v9811_v48, %v9810_v47  ;;  %v9813_v51 = vpop.f32.mrb[86].mxu0 }
 0x399   :  { %v9833_v52 = vpop.f32.mrb[85].mxu1  ;;  %v9814_v53 = vpop.f32.mrb[87].mxu0 }
 0x39a   :  { %v8025_v54 = vadd.f32 %v9812_v50, %v7985_v46  ;;  %v9834_v55 = vadd.f32 %v9833_v52, %v9832_v49  ;;  %v9835_v56 = vpop.f32.mrb[86].mxu1 }
 0x39b   :  { %v9836_v57 = vpop.f32.mrb[87].mxu1 }
 0x39c   :  { %v8065_v58 = vadd.f32 %v9834_v55, %v8025_v54 }
 0x39e   :  { %v8070_v59 = vmax.f32 %v8065_v58, 0.0 }
 0x3a0   :  { %v8071_v60 = vpack.c.bf16 %v8070_v59, %v8070_v59 }
 0x3a2   :  { %9846 = vmatmul.mubr.msk.bf16.vlgmr.msra.gmra.mrb[88].mxu0 %vm8095_vm1, %v8071_v60 }
 0x475   :  { %v8133_v62 = vpop.f32.mrb[88].mxu0 }
 0x476   :  { %v8134_v63 = vadd.f32 %v8866_v61, %v8133_v62  ;;  %v9847_v0 = vpop.f32.mrb[89].mxu0 }
 0x477   :  { %v8136_v1 = vpop.f32.mrb[90].mxu0 }
 0x478   :  { %v8139_v2 = vsub.f32 0.0, %v8134_v63  ;;  %v9848_v3 = vpop.f32.mrb[91].mxu0 }
 0x47a   :  { %v8140_v4 = vmul.f32 1.442695, %v8139_v2 }
 0x47c   :  { %10570 = vpow2.f32 %v8140_v4 }
 0x486   :  { %v10571_v5 = vpop.eup %10570 }
 0x487   :  { %v8142_v6 = vadd.f32 1.0, %v10571_v5 }
 0x489   :  { %10572 = vrcp.f32 %v8142_v6 }
 0x493   :  { %v10573_v7 = vpop.eup %10572 }
 0x494   :  { %8146 = vst.msk [vmem:[#allocation2] sm:$0x3] %vm8145_vm2, %v10573_v7 }
 0x495   :  { %10585 = shalt.err (!%p10582_p4)
}
 0x496   :  { %s10586_s19 = scalar_lea.hbm %s12971_s5, 32 }
 0x497   :  { %p10587_p5 = scmp.ne.s32.totalorder %s12971_s5, %s10586_s19  ;;  %p10590_p6 = scmp.lt.u32.totalorder %s10586_s19, %s12971_s5 }
 0x499   :  { %p10592_p7 = pnand %p10590_p6, %p10587_p5 }
 0x49b   :  { %10595 = shalt.err (!%p10592_p7)
}
 0x49c   :  { %8156 = dma.vmem_to_hbm [thread:$0]  %s8154_s16, 32, %s12971_s5, [#allocation3]  }
 0x49d   :  { %10596 = dma.done.wait [#allocation3], 32  }
 0x49e   :  { %10597 = vsyncadd [#allocation3], 4294967264 }
 0x49f   :  { %8160 = vsyncpa [#allocation3], 1 }

</bundles_post_ra>
